<compile_context>
chip_gen: v7x
topology: tpu7x:2x2x1
jax: 0.10.0
libtpu: 0.0.40
codegen_flags: <defaults>
</compile_context>

<pallas_src>
import functools

import jax
import jax.numpy as jnp
from jax.experimental import pallas as pl
from jax.experimental.pallas import tpu as pltpu

GAT_ALPHA = 0.2           # LeakyReLU negative slope inside GAT
NEG_FILL = -9.0e15        # -9000000000000000.0 mask value from the reference
COS_EPS = 1e-8            # torch.nn.functional.cosine_similarity eps


# ----------------------------------------------------------------------------
# Fused kernel: GAT heads + output attention + log_softmax + 3 correlations.
#   x:(B,D) meta:(N,D) buf:(N,D) W_flat:(D,H*F) A1/A2:(H*F,H) W_out:(H*F,D)
#   a1_out/a2_out:(1,D)  ->  rep:(V,D), corr_row:(1,128)
# ----------------------------------------------------------------------------
def metagraph_fused_kernel(x_ref, meta_ref, buf_ref, wflat_ref, a1m_ref, a2m_ref,
                           wout_ref, a1o_ref, a2o_ref, rep_ref, corr_ref,
                           *, batch, nmeta, nheads, nhid, alpha):
    V = batch + nmeta

    x = x_ref[...].astype(jnp.float32)          # (B, D)
    meta = meta_ref[...].astype(jnp.float32)    # (N, D)
    h = jnp.concatenate([x, meta], axis=0)      # (V, D)

    # super_graph = ones(V,V) - eye(V)  ->  edge mask is simply (row != col)
    row = jax.lax.broadcasted_iota(jnp.int32, (V, V), 0)
    col = jax.lax.broadcasted_iota(jnp.int32, (V, V), 1)
    mask = row != col

    def leaky_relu(e):
        return jnp.where(e > 0, e, alpha * e)

    def elu(v):
        # clamp the exp argument: avoids wasted/overflowing EUP work on the discarded branch
        return jnp.where(v > 0, v, jnp.exp(jnp.minimum(v, 0.0)) - 1.0)

    def masked_softmax_rows(e):
        logits = jnp.where(mask, e, NEG_FILL)
        m = jnp.max(logits, axis=1, keepdims=True)
        p = jnp.exp(logits - m)
        s = jnp.sum(p, axis=1, keepdims=True)
        return p * pl.reciprocal(s, approx=True)

    # ---- 8 attention heads: one batched projection + two small matmuls --------------------
    Wh_all = jnp.dot(h, wflat_ref[...], preferred_element_type=jnp.float32)       # (V, H*F)
    wh1_all = jnp.dot(Wh_all, a1m_ref[...], preferred_element_type=jnp.float32)   # (V, H)
    wh2_all = jnp.dot(Wh_all, a2m_ref[...], preferred_element_type=jnp.float32)   # (V, H)

    head_outs = []
    for hd in range(nheads):                                       # static unrolled (H=8)
        wh1 = wh1_all[:, hd:hd + 1]                                # (V, 1)
        wh2 = wh2_all[:, hd:hd + 1]                                # (V, 1)
        e = leaky_relu(wh1 + jnp.transpose(wh2))                   # (V, V)
        att = masked_softmax_rows(e)
        Wh_h = Wh_all[:, hd * nhid:(hd + 1) * nhid]                # (V, F)
        hp = jnp.dot(att, Wh_h, preferred_element_type=jnp.float32)
        head_outs.append(elu(hp))                                  # concat=True -> ELU
    xcat = jnp.concatenate(head_outs, axis=1)                      # (V, H*F)

    # ---- output attention layer (concat=False) + outer ELU + log_softmax(dim=1) -----------
    Wh_o = jnp.dot(xcat, wout_ref[...], preferred_element_type=jnp.float32)       # (V, D)
    wh1o = jnp.sum(Wh_o * a1o_ref[...], axis=1, keepdims=True)                    # (V, 1)
    wh2o = jnp.sum(Wh_o * a2o_ref[...], axis=1, keepdims=True)                    # (V, 1)
    eo = leaky_relu(wh1o + jnp.transpose(wh2o))
    atto = masked_softmax_rows(eo)
    out = jnp.dot(atto, Wh_o, preferred_element_type=jnp.float32)                 # (V, D)
    out = elu(out)                                                 # F.elu(out_att(...))
    mm = jnp.max(out, axis=1, keepdims=True)
    z = out - mm
    lse = jnp.log(jnp.sum(jnp.exp(z), axis=1, keepdims=True))
    rep = z - lse                                                  # log_softmax(dim=1)
    rep_ref[...] = rep

    # ---- correlations: mean cosine similarity (torch clamps the norm product) -------------
    def corr_mean(a, b):
        n = a.shape[0]
        dot = jnp.sum(a * b, axis=1, keepdims=True)
        na = jnp.sqrt(jnp.sum(a * a, axis=1, keepdims=True))
        nb = jnp.sqrt(jnp.sum(b * b, axis=1, keepdims=True))
        cos = dot / jnp.maximum(na * nb, COS_EPS)                  # (n, 1)
        return jnp.sum(cos, axis=0, keepdims=True) * (1.0 / n)     # (1, 1)

    buf = buf_ref[...].astype(jnp.float32)
    c_meta = corr_mean(buf, meta)
    c_transfer = corr_mean(rep[batch:, :], meta)
    c_protos = corr_mean(rep[:batch, :], x)

    lane = jax.lax.broadcasted_iota(jnp.int32, (1, corr_ref.shape[1]), 1)
    corr_row = jnp.where(lane == 0, c_meta,
               jnp.where(lane == 1, c_transfer,
               jnp.where(lane == 2, c_protos, 0.0)))
    corr_ref[...] = corr_row


# ----------------------------------------------------------------------------
# Wrapper
# ----------------------------------------------------------------------------
def metagraph_fd_forward(inputs, packed):
    """inputs: (B, input_dim) protos.  Returns (rep[:B], rep[-B:], 3 correlations)."""
    B, D = inputs.shape
    meta = packed["meta_graph_vertex"]            # (N, D)
    buf = packed["meta_graph_vertex_buffer"]      # (N, D)
    N = meta.shape[0]
    V = B + N
    H = packed["nheads"]
    Fh = packed["nhid"]

    vmem = pl.BlockSpec(memory_space=pltpu.MemorySpace.VMEM)
    kernel = functools.partial(metagraph_fused_kernel, batch=B, nmeta=N,
                               nheads=H, nhid=Fh, alpha=GAT_ALPHA)

    rep, corr = pl.pallas_call(
        kernel,
        in_specs=[vmem] * 9,
        out_specs=(vmem, vmem),
        out_shape=(jax.ShapeDtypeStruct((V, D), jnp.float32),
                   jax.ShapeDtypeStruct((1, 128), jnp.float32)),
    )(inputs.astype(jnp.float32), meta, buf,
      packed["W_flat"], packed["A1"], packed["A2"],
      packed["W_out"], packed["a1_out"], packed["a2_out"])

    return (rep[:B],
            rep[-B:],
            (corr[0, 0], corr[0, 1], corr[0, 2]))


# ----------------------------------------------------------------------------
# Deterministic parameter initialization (shapes from MetaGraph_fd.__init__)
# ----------------------------------------------------------------------------
def xavier_uniform(key, shape, gain):
    bound = gain * jnp.sqrt(6.0 / (shape[0] + shape[1]))
    return jax.random.uniform(key, shape, jnp.float32, -bound, bound)


def init_params(key, input_dim, hidden_dim, nheads=8, nhid=8, meta_n=16):
    assert input_dim == hidden_dim, "GAT(nfeat=hidden_dim) consumes (·, input_dim) features"
    gain = 1.414
    keys = jax.random.split(key, 2 * nheads + 4)

    W_heads = jnp.stack([xavier_uniform(keys[i], (hidden_dim, nhid), gain)
                         for i in range(nheads)])                             # (H, D, F)
    a_heads = jnp.stack([xavier_uniform(keys[nheads + i], (2 * nhid, 1), gain)
                         for i in range(nheads)])                             # (H, 2F, 1)
    a1_heads = a_heads[:, :nhid, 0][:, None, :]                               # (H, 1, F)
    a2_heads = a_heads[:, nhid:, 0][:, None, :]                               # (H, 1, F)

    W_out = xavier_uniform(keys[2 * nheads], (nhid * nheads, input_dim), gain)  # (H*F, D)
    a_out = xavier_uniform(keys[2 * nheads + 1], (2 * input_dim, 1), gain)      # (2D, 1)
    a1_out = a_out[:input_dim, 0][None, :]                                      # (1, D)
    a2_out = a_out[input_dim:, 0][None, :]                                      # (1, D)

    meta = jax.random.uniform(keys[2 * nheads + 2], (meta_n, input_dim), jnp.float32)
    buf = jax.random.uniform(keys[2 * nheads + 3], (meta_n, input_dim), jnp.float32)

    return dict(W_heads=W_heads, a1_heads=a1_heads, a2_heads=a2_heads,
                W_out=W_out, a1_out=a1_out, a2_out=a2_out,
                meta_graph_vertex=meta, meta_graph_vertex_buffer=buf)


def pack_params(params):
    """Host-side, one-time: pack per-head weights into lane-dense matrices for the kernel."""
    W_heads = params["W_heads"]                         # (H, D, F)
    H, D, Fh = W_heads.shape
    # W_flat[:, h*F:(h+1)*F] = W_heads[h]  ->  h @ W_flat == concat_h(h @ W_h)
    W_flat = jnp.transpose(W_heads, (1, 0, 2)).reshape(D, H * Fh)
    # Block-structured a-matrices: A1[h*F + f, h] = a1_heads[h, 0, f]
    a1 = params["a1_heads"][:, 0, :]                    # (H, F)
    a2 = params["a2_heads"][:, 0, :]                    # (H, F)
    rows = jnp.arange(H * Fh)
    cols = rows // Fh
    A1 = jnp.zeros((H * Fh, H), jnp.float32).at[rows, cols].set(a1.reshape(-1))
    A2 = jnp.zeros((H * Fh, H), jnp.float32).at[rows, cols].set(a2.reshape(-1))
    return dict(W_flat=W_flat, A1=A1, A2=A2,
                W_out=params["W_out"], a1_out=params["a1_out"], a2_out=params["a2_out"],
                meta_graph_vertex=params["meta_graph_vertex"],
                meta_graph_vertex_buffer=params["meta_graph_vertex_buffer"],
                nheads=H, nhid=Fh)


if __name__ == "__main__":
    key = jax.random.PRNGKey(0)
    k_in, k_par = jax.random.split(key)

    D = 32      # hidden_dim == input_dim
    B = 8       # batch of protos
    N = 16      # meta_graph_vertex_num (small test size)

    params = init_params(k_par, input_dim=D, hidden_dim=D, nheads=8, nhid=8, meta_n=N)
    packed = pack_params(params)
    inputs = jax.random.normal(k_in, (B, D), jnp.float32)

    rep_protos, rep_tail, corrs = jax.block_until_ready(metagraph_fd_forward(inputs, packed))

    assert rep_protos.shape == (B, D) and rep_tail.shape == (B, D)
    assert all(bool(jnp.isfinite(c)) for c in corrs)
    assert bool(jnp.all(jnp.isfinite(rep_protos))) and bool(jnp.all(jnp.isfinite(rep_tail)))

    print("KERNEL_OK")
</pallas_src>

<mosaic_0001>
module attributes {stable_mosaic.version = 11 : i64} {
  func.func @metagraph_fused_kernel(%arg0: memref<8x32xf32, #tpu.memory_space<vmem>>, %arg1: memref<16x32xf32, #tpu.memory_space<vmem>>, %arg2: memref<16x32xf32, #tpu.memory_space<vmem>>, %arg3: memref<32x64xf32, #tpu.memory_space<vmem>>, %arg4: memref<64x8xf32, #tpu.memory_space<vmem>>, %arg5: memref<64x8xf32, #tpu.memory_space<vmem>>, %arg6: memref<64x32xf32, #tpu.memory_space<vmem>>, %arg7: memref<1x32xf32, #tpu.memory_space<vmem>>, %arg8: memref<1x32xf32, #tpu.memory_space<vmem>>, %arg9: memref<24x32xf32, #tpu.memory_space<vmem>>, %arg10: memref<1x128xf32, #tpu.memory_space<vmem>>) attributes {dimension_semantics = [], scalar_prefetch = 0 : i64, scratch_operands = 0 : i64, tpu.core_type = #tpu.core_type<tc>} {
    %c0 = arith.constant 0 : index
    %c0_0 = arith.constant 0 : index
    %0 = vector.load %arg0[%c0, %c0_0] : memref<8x32xf32, #tpu.memory_space<vmem>>, vector<8x32xf32>
    %c0_1 = arith.constant 0 : index
    %c0_2 = arith.constant 0 : index
    %1 = vector.load %arg1[%c0_1, %c0_2] : memref<16x32xf32, #tpu.memory_space<vmem>>, vector<16x32xf32>
    %2 = tpu.concatenate %0, %1 in 0 : vector<8x32xf32>, vector<16x32xf32> -> vector<24x32xf32>
    %3 = tpu.iota {dimensions = array<i32: 0>} : vector<24x24xi32>
    %4 = tpu.iota {dimensions = array<i32: 1>} : vector<24x24xi32>
    %5 = arith.cmpi ne, %3, %4 : vector<24x24xi32>
    %c0_3 = arith.constant 0 : index
    %c0_4 = arith.constant 0 : index
    %6 = vector.load %arg3[%c0_3, %c0_4] : memref<32x64xf32, #tpu.memory_space<vmem>>, vector<32x64xf32>
    %cst = arith.constant dense<0.000000e+00> : vector<24x64xf32>
    %7 = tpu.matmul %2, %6, %cst {dimension_numbers = #tpu.dot_dimension_numbers<[1], [0], [0], [1], [0, 0, 1, 1], [], []>} : vector<24x32xf32>, vector<32x64xf32>, vector<24x64xf32> -> vector<24x64xf32>
    %c0_5 = arith.constant 0 : index
    %c0_6 = arith.constant 0 : index
    %8 = vector.load %arg4[%c0_5, %c0_6] : memref<64x8xf32, #tpu.memory_space<vmem>>, vector<64x8xf32>
    %cst_7 = arith.constant dense<0.000000e+00> : vector<24x8xf32>
    %9 = tpu.matmul %7, %8, %cst_7 {dimension_numbers = #tpu.dot_dimension_numbers<[1], [0], [0], [1], [0, 0, 1, 1], [], []>} : vector<24x64xf32>, vector<64x8xf32>, vector<24x8xf32> -> vector<24x8xf32>
    %c0_8 = arith.constant 0 : index
    %c0_9 = arith.constant 0 : index
    %10 = vector.load %arg5[%c0_8, %c0_9] : memref<64x8xf32, #tpu.memory_space<vmem>>, vector<64x8xf32>
    %cst_10 = arith.constant dense<0.000000e+00> : vector<24x8xf32>
    %11 = tpu.matmul %7, %10, %cst_10 {dimension_numbers = #tpu.dot_dimension_numbers<[1], [0], [0], [1], [0, 0, 1, 1], [], []>} : vector<24x64xf32>, vector<64x8xf32>, vector<24x8xf32> -> vector<24x8xf32>
    %12 = vector.extract_strided_slice %9 {offsets = [0, 0], sizes = [24, 1], strides = [1, 1]} : vector<24x8xf32> to vector<24x1xf32>
    %13 = vector.extract_strided_slice %11 {offsets = [0, 0], sizes = [24, 1], strides = [1, 1]} : vector<24x8xf32> to vector<24x1xf32>
    %14 = tpu.transpose %13, [1, 0] : vector<24x1xf32> -> vector<1x24xf32>
    %15 = vector.broadcast %12 : vector<24x1xf32> to vector<24x24xf32>
    %16 = vector.broadcast %14 : vector<1x24xf32> to vector<24x24xf32>
    %17 = arith.addf %15, %16 : vector<24x24xf32>
    %cst_11 = arith.constant 0.000000e+00 : f32
    %18 = vector.broadcast %cst_11 : f32 to vector<24x24xf32>
    %19 = arith.cmpf ogt, %17, %18 : vector<24x24xf32>
    %cst_12 = arith.constant 2.000000e-01 : f32
    %20 = vector.broadcast %cst_12 : f32 to vector<24x24xf32>
    %21 = arith.mulf %20, %17 : vector<24x24xf32>
    %22 = arith.select %19, %17, %21 : vector<24x24xi1>, vector<24x24xf32>
    %cst_13 = arith.constant -9.000000e+15 : f32
    %23 = vector.broadcast %cst_13 : f32 to vector<24x24xf32>
    %24 = arith.select %5, %22, %23 : vector<24x24xi1>, vector<24x24xf32>
    %cst_14 = arith.constant dense<0xFF800000> : vector<24xf32>
    %25 = vector.multi_reduction <maximumf>, %24, %cst_14 [1] : vector<24x24xf32> to vector<24xf32>
    %26 = vector.shape_cast %25 : vector<24xf32> to vector<24x1xf32>
    %27 = vector.broadcast %26 : vector<24x1xf32> to vector<24x24xf32>
    %28 = arith.subf %24, %27 : vector<24x24xf32>
    %29 = math.exp %28 : vector<24x24xf32>
    %cst_15 = arith.constant dense<0.000000e+00> : vector<24xf32>
    %30 = vector.multi_reduction <add>, %29, %cst_15 [1] : vector<24x24xf32> to vector<24xf32>
    %31 = vector.shape_cast %30 : vector<24xf32> to vector<24x1xf32>
    %32 = tpu.reciprocal %31 {approx = true} : vector<24x1xf32> -> vector<24x1xf32>
    %33 = vector.broadcast %32 : vector<24x1xf32> to vector<24x24xf32>
    %34 = arith.mulf %29, %33 : vector<24x24xf32>
    %35 = vector.extract_strided_slice %7 {offsets = [0, 0], sizes = [24, 8], strides = [1, 1]} : vector<24x64xf32> to vector<24x8xf32>
    %cst_16 = arith.constant dense<0.000000e+00> : vector<24x8xf32>
    %36 = tpu.matmul %34, %35, %cst_16 {dimension_numbers = #tpu.dot_dimension_numbers<[1], [0], [0], [1], [0, 0, 1, 1], [], []>} : vector<24x24xf32>, vector<24x8xf32>, vector<24x8xf32> -> vector<24x8xf32>
    %cst_17 = arith.constant 0.000000e+00 : f32
    %37 = vector.broadcast %cst_17 : f32 to vector<24x8xf32>
    %38 = arith.cmpf ogt, %36, %37 : vector<24x8xf32>
    %cst_18 = arith.constant 0.000000e+00 : f32
    %39 = vector.broadcast %cst_18 : f32 to vector<24x8xf32>
    %40 = arith.minimumf %36, %39 : vector<24x8xf32>
    %41 = math.exp %40 : vector<24x8xf32>
    %cst_19 = arith.constant 1.000000e+00 : f32
    %42 = vector.broadcast %cst_19 : f32 to vector<24x8xf32>
    %43 = arith.subf %41, %42 : vector<24x8xf32>
    %44 = arith.select %38, %36, %43 : vector<24x8xi1>, vector<24x8xf32>
    %45 = vector.extract_strided_slice %9 {offsets = [0, 1], sizes = [24, 1], strides = [1, 1]} : vector<24x8xf32> to vector<24x1xf32>
    %46 = vector.extract_strided_slice %11 {offsets = [0, 1], sizes = [24, 1], strides = [1, 1]} : vector<24x8xf32> to vector<24x1xf32>
    %47 = tpu.transpose %46, [1, 0] : vector<24x1xf32> -> vector<1x24xf32>
    %48 = vector.broadcast %45 : vector<24x1xf32> to vector<24x24xf32>
    %49 = vector.broadcast %47 : vector<1x24xf32> to vector<24x24xf32>
    %50 = arith.addf %48, %49 : vector<24x24xf32>
    %cst_20 = arith.constant 0.000000e+00 : f32
    %51 = vector.broadcast %cst_20 : f32 to vector<24x24xf32>
    %52 = arith.cmpf ogt, %50, %51 : vector<24x24xf32>
    %cst_21 = arith.constant 2.000000e-01 : f32
    %53 = vector.broadcast %cst_21 : f32 to vector<24x24xf32>
    %54 = arith.mulf %53, %50 : vector<24x24xf32>
    %55 = arith.select %52, %50, %54 : vector<24x24xi1>, vector<24x24xf32>
    %cst_22 = arith.constant -9.000000e+15 : f32
    %56 = vector.broadcast %cst_22 : f32 to vector<24x24xf32>
    %57 = arith.select %5, %55, %56 : vector<24x24xi1>, vector<24x24xf32>
    %cst_23 = arith.constant dense<0xFF800000> : vector<24xf32>
    %58 = vector.multi_reduction <maximumf>, %57, %cst_23 [1] : vector<24x24xf32> to vector<24xf32>
    %59 = vector.shape_cast %58 : vector<24xf32> to vector<24x1xf32>
    %60 = vector.broadcast %59 : vector<24x1xf32> to vector<24x24xf32>
    %61 = arith.subf %57, %60 : vector<24x24xf32>
    %62 = math.exp %61 : vector<24x24xf32>
    %cst_24 = arith.constant dense<0.000000e+00> : vector<24xf32>
    %63 = vector.multi_reduction <add>, %62, %cst_24 [1] : vector<24x24xf32> to vector<24xf32>
    %64 = vector.shape_cast %63 : vector<24xf32> to vector<24x1xf32>
    %65 = tpu.reciprocal %64 {approx = true} : vector<24x1xf32> -> vector<24x1xf32>
    %66 = vector.broadcast %65 : vector<24x1xf32> to vector<24x24xf32>
    %67 = arith.mulf %62, %66 : vector<24x24xf32>
    %68 = vector.extract_strided_slice %7 {offsets = [0, 8], sizes = [24, 8], strides = [1, 1]} : vector<24x64xf32> to vector<24x8xf32>
    %cst_25 = arith.constant dense<0.000000e+00> : vector<24x8xf32>
    %69 = tpu.matmul %67, %68, %cst_25 {dimension_numbers = #tpu.dot_dimension_numbers<[1], [0], [0], [1], [0, 0, 1, 1], [], []>} : vector<24x24xf32>, vector<24x8xf32>, vector<24x8xf32> -> vector<24x8xf32>
    %cst_26 = arith.constant 0.000000e+00 : f32
    %70 = vector.broadcast %cst_26 : f32 to vector<24x8xf32>
    %71 = arith.cmpf ogt, %69, %70 : vector<24x8xf32>
    %cst_27 = arith.constant 0.000000e+00 : f32
    %72 = vector.broadcast %cst_27 : f32 to vector<24x8xf32>
    %73 = arith.minimumf %69, %72 : vector<24x8xf32>
    %74 = math.exp %73 : vector<24x8xf32>
    %cst_28 = arith.constant 1.000000e+00 : f32
    %75 = vector.broadcast %cst_28 : f32 to vector<24x8xf32>
    %76 = arith.subf %74, %75 : vector<24x8xf32>
    %77 = arith.select %71, %69, %76 : vector<24x8xi1>, vector<24x8xf32>
    %78 = vector.extract_strided_slice %9 {offsets = [0, 2], sizes = [24, 1], strides = [1, 1]} : vector<24x8xf32> to vector<24x1xf32>
    %79 = vector.extract_strided_slice %11 {offsets = [0, 2], sizes = [24, 1], strides = [1, 1]} : vector<24x8xf32> to vector<24x1xf32>
    %80 = tpu.transpose %79, [1, 0] : vector<24x1xf32> -> vector<1x24xf32>
    %81 = vector.broadcast %78 : vector<24x1xf32> to vector<24x24xf32>
    %82 = vector.broadcast %80 : vector<1x24xf32> to vector<24x24xf32>
    %83 = arith.addf %81, %82 : vector<24x24xf32>
    %cst_29 = arith.constant 0.000000e+00 : f32
    %84 = vector.broadcast %cst_29 : f32 to vector<24x24xf32>
    %85 = arith.cmpf ogt, %83, %84 : vector<24x24xf32>
    %cst_30 = arith.constant 2.000000e-01 : f32
    %86 = vector.broadcast %cst_30 : f32 to vector<24x24xf32>
    %87 = arith.mulf %86, %83 : vector<24x24xf32>
    %88 = arith.select %85, %83, %87 : vector<24x24xi1>, vector<24x24xf32>
    %cst_31 = arith.constant -9.000000e+15 : f32
    %89 = vector.broadcast %cst_31 : f32 to vector<24x24xf32>
    %90 = arith.select %5, %88, %89 : vector<24x24xi1>, vector<24x24xf32>
    %cst_32 = arith.constant dense<0xFF800000> : vector<24xf32>
    %91 = vector.multi_reduction <maximumf>, %90, %cst_32 [1] : vector<24x24xf32> to vector<24xf32>
    %92 = vector.shape_cast %91 : vector<24xf32> to vector<24x1xf32>
    %93 = vector.broadcast %92 : vector<24x1xf32> to vector<24x24xf32>
    %94 = arith.subf %90, %93 : vector<24x24xf32>
    %95 = math.exp %94 : vector<24x24xf32>
    %cst_33 = arith.constant dense<0.000000e+00> : vector<24xf32>
    %96 = vector.multi_reduction <add>, %95, %cst_33 [1] : vector<24x24xf32> to vector<24xf32>
    %97 = vector.shape_cast %96 : vector<24xf32> to vector<24x1xf32>
    %98 = tpu.reciprocal %97 {approx = true} : vector<24x1xf32> -> vector<24x1xf32>
    %99 = vector.broadcast %98 : vector<24x1xf32> to vector<24x24xf32>
    %100 = arith.mulf %95, %99 : vector<24x24xf32>
    %101 = vector.extract_strided_slice %7 {offsets = [0, 16], sizes = [24, 8], strides = [1, 1]} : vector<24x64xf32> to vector<24x8xf32>
    %cst_34 = arith.constant dense<0.000000e+00> : vector<24x8xf32>
    %102 = tpu.matmul %100, %101, %cst_34 {dimension_numbers = #tpu.dot_dimension_numbers<[1], [0], [0], [1], [0, 0, 1, 1], [], []>} : vector<24x24xf32>, vector<24x8xf32>, vector<24x8xf32> -> vector<24x8xf32>
    %cst_35 = arith.constant 0.000000e+00 : f32
    %103 = vector.broadcast %cst_35 : f32 to vector<24x8xf32>
    %104 = arith.cmpf ogt, %102, %103 : vector<24x8xf32>
    %cst_36 = arith.constant 0.000000e+00 : f32
    %105 = vector.broadcast %cst_36 : f32 to vector<24x8xf32>
    %106 = arith.minimumf %102, %105 : vector<24x8xf32>
    %107 = math.exp %106 : vector<24x8xf32>
    %cst_37 = arith.constant 1.000000e+00 : f32
    %108 = vector.broadcast %cst_37 : f32 to vector<24x8xf32>
    %109 = arith.subf %107, %108 : vector<24x8xf32>
    %110 = arith.select %104, %102, %109 : vector<24x8xi1>, vector<24x8xf32>
    %111 = vector.extract_strided_slice %9 {offsets = [0, 3], sizes = [24, 1], strides = [1, 1]} : vector<24x8xf32> to vector<24x1xf32>
    %112 = vector.extract_strided_slice %11 {offsets = [0, 3], sizes = [24, 1], strides = [1, 1]} : vector<24x8xf32> to vector<24x1xf32>
    %113 = tpu.transpose %112, [1, 0] : vector<24x1xf32> -> vector<1x24xf32>
    %114 = vector.broadcast %111 : vector<24x1xf32> to vector<24x24xf32>
    %115 = vector.broadcast %113 : vector<1x24xf32> to vector<24x24xf32>
    %116 = arith.addf %114, %115 : vector<24x24xf32>
    %cst_38 = arith.constant 0.000000e+00 : f32
    %117 = vector.broadcast %cst_38 : f32 to vector<24x24xf32>
    %118 = arith.cmpf ogt, %116, %117 : vector<24x24xf32>
    %cst_39 = arith.constant 2.000000e-01 : f32
    %119 = vector.broadcast %cst_39 : f32 to vector<24x24xf32>
    %120 = arith.mulf %119, %116 : vector<24x24xf32>
    %121 = arith.select %118, %116, %120 : vector<24x24xi1>, vector<24x24xf32>
    %cst_40 = arith.constant -9.000000e+15 : f32
    %122 = vector.broadcast %cst_40 : f32 to vector<24x24xf32>
    %123 = arith.select %5, %121, %122 : vector<24x24xi1>, vector<24x24xf32>
    %cst_41 = arith.constant dense<0xFF800000> : vector<24xf32>
    %124 = vector.multi_reduction <maximumf>, %123, %cst_41 [1] : vector<24x24xf32> to vector<24xf32>
    %125 = vector.shape_cast %124 : vector<24xf32> to vector<24x1xf32>
    %126 = vector.broadcast %125 : vector<24x1xf32> to vector<24x24xf32>
    %127 = arith.subf %123, %126 : vector<24x24xf32>
    %128 = math.exp %127 : vector<24x24xf32>
    %cst_42 = arith.constant dense<0.000000e+00> : vector<24xf32>
    %129 = vector.multi_reduction <add>, %128, %cst_42 [1] : vector<24x24xf32> to vector<24xf32>
    %130 = vector.shape_cast %129 : vector<24xf32> to vector<24x1xf32>
    %131 = tpu.reciprocal %130 {approx = true} : vector<24x1xf32> -> vector<24x1xf32>
    %132 = vector.broadcast %131 : vector<24x1xf32> to vector<24x24xf32>
    %133 = arith.mulf %128, %132 : vector<24x24xf32>
    %134 = vector.extract_strided_slice %7 {offsets = [0, 24], sizes = [24, 8], strides = [1, 1]} : vector<24x64xf32> to vector<24x8xf32>
    %cst_43 = arith.constant dense<0.000000e+00> : vector<24x8xf32>
    %135 = tpu.matmul %133, %134, %cst_43 {dimension_numbers = #tpu.dot_dimension_numbers<[1], [0], [0], [1], [0, 0, 1, 1], [], []>} : vector<24x24xf32>, vector<24x8xf32>, vector<24x8xf32> -> vector<24x8xf32>
    %cst_44 = arith.constant 0.000000e+00 : f32
    %136 = vector.broadcast %cst_44 : f32 to vector<24x8xf32>
    %137 = arith.cmpf ogt, %135, %136 : vector<24x8xf32>
    %cst_45 = arith.constant 0.000000e+00 : f32
    %138 = vector.broadcast %cst_45 : f32 to vector<24x8xf32>
    %139 = arith.minimumf %135, %138 : vector<24x8xf32>
    %140 = math.exp %139 : vector<24x8xf32>
    %cst_46 = arith.constant 1.000000e+00 : f32
    %141 = vector.broadcast %cst_46 : f32 to vector<24x8xf32>
    %142 = arith.subf %140, %141 : vector<24x8xf32>
    %143 = arith.select %137, %135, %142 : vector<24x8xi1>, vector<24x8xf32>
    %144 = vector.extract_strided_slice %9 {offsets = [0, 4], sizes = [24, 1], strides = [1, 1]} : vector<24x8xf32> to vector<24x1xf32>
    %145 = vector.extract_strided_slice %11 {offsets = [0, 4], sizes = [24, 1], strides = [1, 1]} : vector<24x8xf32> to vector<24x1xf32>
    %146 = tpu.transpose %145, [1, 0] : vector<24x1xf32> -> vector<1x24xf32>
    %147 = vector.broadcast %144 : vector<24x1xf32> to vector<24x24xf32>
    %148 = vector.broadcast %146 : vector<1x24xf32> to vector<24x24xf32>
    %149 = arith.addf %147, %148 : vector<24x24xf32>
    %cst_47 = arith.constant 0.000000e+00 : f32
    %150 = vector.broadcast %cst_47 : f32 to vector<24x24xf32>
    %151 = arith.cmpf ogt, %149, %150 : vector<24x24xf32>
    %cst_48 = arith.constant 2.000000e-01 : f32
    %152 = vector.broadcast %cst_48 : f32 to vector<24x24xf32>
    %153 = arith.mulf %152, %149 : vector<24x24xf32>
    %154 = arith.select %151, %149, %153 : vector<24x24xi1>, vector<24x24xf32>
    %cst_49 = arith.constant -9.000000e+15 : f32
    %155 = vector.broadcast %cst_49 : f32 to vector<24x24xf32>
    %156 = arith.select %5, %154, %155 : vector<24x24xi1>, vector<24x24xf32>
    %cst_50 = arith.constant dense<0xFF800000> : vector<24xf32>
    %157 = vector.multi_reduction <maximumf>, %156, %cst_50 [1] : vector<24x24xf32> to vector<24xf32>
    %158 = vector.shape_cast %157 : vector<24xf32> to vector<24x1xf32>
    %159 = vector.broadcast %158 : vector<24x1xf32> to vector<24x24xf32>
    %160 = arith.subf %156, %159 : vector<24x24xf32>
    %161 = math.exp %160 : vector<24x24xf32>
    %cst_51 = arith.constant dense<0.000000e+00> : vector<24xf32>
    %162 = vector.multi_reduction <add>, %161, %cst_51 [1] : vector<24x24xf32> to vector<24xf32>
    %163 = vector.shape_cast %162 : vector<24xf32> to vector<24x1xf32>
    %164 = tpu.reciprocal %163 {approx = true} : vector<24x1xf32> -> vector<24x1xf32>
    %165 = vector.broadcast %164 : vector<24x1xf32> to vector<24x24xf32>
    %166 = arith.mulf %161, %165 : vector<24x24xf32>
    %167 = vector.extract_strided_slice %7 {offsets = [0, 32], sizes = [24, 8], strides = [1, 1]} : vector<24x64xf32> to vector<24x8xf32>
    %cst_52 = arith.constant dense<0.000000e+00> : vector<24x8xf32>
    %168 = tpu.matmul %166, %167, %cst_52 {dimension_numbers = #tpu.dot_dimension_numbers<[1], [0], [0], [1], [0, 0, 1, 1], [], []>} : vector<24x24xf32>, vector<24x8xf32>, vector<24x8xf32> -> vector<24x8xf32>
    %cst_53 = arith.constant 0.000000e+00 : f32
    %169 = vector.broadcast %cst_53 : f32 to vector<24x8xf32>
    %170 = arith.cmpf ogt, %168, %169 : vector<24x8xf32>
    %cst_54 = arith.constant 0.000000e+00 : f32
    %171 = vector.broadcast %cst_54 : f32 to vector<24x8xf32>
    %172 = arith.minimumf %168, %171 : vector<24x8xf32>
    %173 = math.exp %172 : vector<24x8xf32>
    %cst_55 = arith.constant 1.000000e+00 : f32
    %174 = vector.broadcast %cst_55 : f32 to vector<24x8xf32>
    %175 = arith.subf %173, %174 : vector<24x8xf32>
    %176 = arith.select %170, %168, %175 : vector<24x8xi1>, vector<24x8xf32>
    %177 = vector.extract_strided_slice %9 {offsets = [0, 5], sizes = [24, 1], strides = [1, 1]} : vector<24x8xf32> to vector<24x1xf32>
    %178 = vector.extract_strided_slice %11 {offsets = [0, 5], sizes = [24, 1], strides = [1, 1]} : vector<24x8xf32> to vector<24x1xf32>
    %179 = tpu.transpose %178, [1, 0] : vector<24x1xf32> -> vector<1x24xf32>
    %180 = vector.broadcast %177 : vector<24x1xf32> to vector<24x24xf32>
    %181 = vector.broadcast %179 : vector<1x24xf32> to vector<24x24xf32>
    %182 = arith.addf %180, %181 : vector<24x24xf32>
    %cst_56 = arith.constant 0.000000e+00 : f32
    %183 = vector.broadcast %cst_56 : f32 to vector<24x24xf32>
    %184 = arith.cmpf ogt, %182, %183 : vector<24x24xf32>
    %cst_57 = arith.constant 2.000000e-01 : f32
    %185 = vector.broadcast %cst_57 : f32 to vector<24x24xf32>
    %186 = arith.mulf %185, %182 : vector<24x24xf32>
    %187 = arith.select %184, %182, %186 : vector<24x24xi1>, vector<24x24xf32>
    %cst_58 = arith.constant -9.000000e+15 : f32
    %188 = vector.broadcast %cst_58 : f32 to vector<24x24xf32>
    %189 = arith.select %5, %187, %188 : vector<24x24xi1>, vector<24x24xf32>
    %cst_59 = arith.constant dense<0xFF800000> : vector<24xf32>
    %190 = vector.multi_reduction <maximumf>, %189, %cst_59 [1] : vector<24x24xf32> to vector<24xf32>
    %191 = vector.shape_cast %190 : vector<24xf32> to vector<24x1xf32>
    %192 = vector.broadcast %191 : vector<24x1xf32> to vector<24x24xf32>
    %193 = arith.subf %189, %192 : vector<24x24xf32>
    %194 = math.exp %193 : vector<24x24xf32>
    %cst_60 = arith.constant dense<0.000000e+00> : vector<24xf32>
    %195 = vector.multi_reduction <add>, %194, %cst_60 [1] : vector<24x24xf32> to vector<24xf32>
    %196 = vector.shape_cast %195 : vector<24xf32> to vector<24x1xf32>
    %197 = tpu.reciprocal %196 {approx = true} : vector<24x1xf32> -> vector<24x1xf32>
    %198 = vector.broadcast %197 : vector<24x1xf32> to vector<24x24xf32>
    %199 = arith.mulf %194, %198 : vector<24x24xf32>
    %200 = vector.extract_strided_slice %7 {offsets = [0, 40], sizes = [24, 8], strides = [1, 1]} : vector<24x64xf32> to vector<24x8xf32>
    %cst_61 = arith.constant dense<0.000000e+00> : vector<24x8xf32>
    %201 = tpu.matmul %199, %200, %cst_61 {dimension_numbers = #tpu.dot_dimension_numbers<[1], [0], [0], [1], [0, 0, 1, 1], [], []>} : vector<24x24xf32>, vector<24x8xf32>, vector<24x8xf32> -> vector<24x8xf32>
    %cst_62 = arith.constant 0.000000e+00 : f32
    %202 = vector.broadcast %cst_62 : f32 to vector<24x8xf32>
    %203 = arith.cmpf ogt, %201, %202 : vector<24x8xf32>
    %cst_63 = arith.constant 0.000000e+00 : f32
    %204 = vector.broadcast %cst_63 : f32 to vector<24x8xf32>
    %205 = arith.minimumf %201, %204 : vector<24x8xf32>
    %206 = math.exp %205 : vector<24x8xf32>
    %cst_64 = arith.constant 1.000000e+00 : f32
    %207 = vector.broadcast %cst_64 : f32 to vector<24x8xf32>
    %208 = arith.subf %206, %207 : vector<24x8xf32>
    %209 = arith.select %203, %201, %208 : vector<24x8xi1>, vector<24x8xf32>
    %210 = vector.extract_strided_slice %9 {offsets = [0, 6], sizes = [24, 1], strides = [1, 1]} : vector<24x8xf32> to vector<24x1xf32>
    %211 = vector.extract_strided_slice %11 {offsets = [0, 6], sizes = [24, 1], strides = [1, 1]} : vector<24x8xf32> to vector<24x1xf32>
    %212 = tpu.transpose %211, [1, 0] : vector<24x1xf32> -> vector<1x24xf32>
    %213 = vector.broadcast %210 : vector<24x1xf32> to vector<24x24xf32>
    %214 = vector.broadcast %212 : vector<1x24xf32> to vector<24x24xf32>
    %215 = arith.addf %213, %214 : vector<24x24xf32>
    %cst_65 = arith.constant 0.000000e+00 : f32
    %216 = vector.broadcast %cst_65 : f32 to vector<24x24xf32>
    %217 = arith.cmpf ogt, %215, %216 : vector<24x24xf32>
    %cst_66 = arith.constant 2.000000e-01 : f32
    %218 = vector.broadcast %cst_66 : f32 to vector<24x24xf32>
    %219 = arith.mulf %218, %215 : vector<24x24xf32>
    %220 = arith.select %217, %215, %219 : vector<24x24xi1>, vector<24x24xf32>
    %cst_67 = arith.constant -9.000000e+15 : f32
    %221 = vector.broadcast %cst_67 : f32 to vector<24x24xf32>
    %222 = arith.select %5, %220, %221 : vector<24x24xi1>, vector<24x24xf32>
    %cst_68 = arith.constant dense<0xFF800000> : vector<24xf32>
    %223 = vector.multi_reduction <maximumf>, %222, %cst_68 [1] : vector<24x24xf32> to vector<24xf32>
    %224 = vector.shape_cast %223 : vector<24xf32> to vector<24x1xf32>
    %225 = vector.broadcast %224 : vector<24x1xf32> to vector<24x24xf32>
    %226 = arith.subf %222, %225 : vector<24x24xf32>
    %227 = math.exp %226 : vector<24x24xf32>
    %cst_69 = arith.constant dense<0.000000e+00> : vector<24xf32>
    %228 = vector.multi_reduction <add>, %227, %cst_69 [1] : vector<24x24xf32> to vector<24xf32>
    %229 = vector.shape_cast %228 : vector<24xf32> to vector<24x1xf32>
    %230 = tpu.reciprocal %229 {approx = true} : vector<24x1xf32> -> vector<24x1xf32>
    %231 = vector.broadcast %230 : vector<24x1xf32> to vector<24x24xf32>
    %232 = arith.mulf %227, %231 : vector<24x24xf32>
    %233 = vector.extract_strided_slice %7 {offsets = [0, 48], sizes = [24, 8], strides = [1, 1]} : vector<24x64xf32> to vector<24x8xf32>
    %cst_70 = arith.constant dense<0.000000e+00> : vector<24x8xf32>
    %234 = tpu.matmul %232, %233, %cst_70 {dimension_numbers = #tpu.dot_dimension_numbers<[1], [0], [0], [1], [0, 0, 1, 1], [], []>} : vector<24x24xf32>, vector<24x8xf32>, vector<24x8xf32> -> vector<24x8xf32>
    %cst_71 = arith.constant 0.000000e+00 : f32
    %235 = vector.broadcast %cst_71 : f32 to vector<24x8xf32>
    %236 = arith.cmpf ogt, %234, %235 : vector<24x8xf32>
    %cst_72 = arith.constant 0.000000e+00 : f32
    %237 = vector.broadcast %cst_72 : f32 to vector<24x8xf32>
    %238 = arith.minimumf %234, %237 : vector<24x8xf32>
    %239 = math.exp %238 : vector<24x8xf32>
    %cst_73 = arith.constant 1.000000e+00 : f32
    %240 = vector.broadcast %cst_73 : f32 to vector<24x8xf32>
    %241 = arith.subf %239, %240 : vector<24x8xf32>
    %242 = arith.select %236, %234, %241 : vector<24x8xi1>, vector<24x8xf32>
    %243 = vector.extract_strided_slice %9 {offsets = [0, 7], sizes = [24, 1], strides = [1, 1]} : vector<24x8xf32> to vector<24x1xf32>
    %244 = vector.extract_strided_slice %11 {offsets = [0, 7], sizes = [24, 1], strides = [1, 1]} : vector<24x8xf32> to vector<24x1xf32>
    %245 = tpu.transpose %244, [1, 0] : vector<24x1xf32> -> vector<1x24xf32>
    %246 = vector.broadcast %243 : vector<24x1xf32> to vector<24x24xf32>
    %247 = vector.broadcast %245 : vector<1x24xf32> to vector<24x24xf32>
    %248 = arith.addf %246, %247 : vector<24x24xf32>
    %cst_74 = arith.constant 0.000000e+00 : f32
    %249 = vector.broadcast %cst_74 : f32 to vector<24x24xf32>
    %250 = arith.cmpf ogt, %248, %249 : vector<24x24xf32>
    %cst_75 = arith.constant 2.000000e-01 : f32
    %251 = vector.broadcast %cst_75 : f32 to vector<24x24xf32>
    %252 = arith.mulf %251, %248 : vector<24x24xf32>
    %253 = arith.select %250, %248, %252 : vector<24x24xi1>, vector<24x24xf32>
    %cst_76 = arith.constant -9.000000e+15 : f32
    %254 = vector.broadcast %cst_76 : f32 to vector<24x24xf32>
    %255 = arith.select %5, %253, %254 : vector<24x24xi1>, vector<24x24xf32>
    %cst_77 = arith.constant dense<0xFF800000> : vector<24xf32>
    %256 = vector.multi_reduction <maximumf>, %255, %cst_77 [1] : vector<24x24xf32> to vector<24xf32>
    %257 = vector.shape_cast %256 : vector<24xf32> to vector<24x1xf32>
    %258 = vector.broadcast %257 : vector<24x1xf32> to vector<24x24xf32>
    %259 = arith.subf %255, %258 : vector<24x24xf32>
    %260 = math.exp %259 : vector<24x24xf32>
    %cst_78 = arith.constant dense<0.000000e+00> : vector<24xf32>
    %261 = vector.multi_reduction <add>, %260, %cst_78 [1] : vector<24x24xf32> to vector<24xf32>
    %262 = vector.shape_cast %261 : vector<24xf32> to vector<24x1xf32>
    %263 = tpu.reciprocal %262 {approx = true} : vector<24x1xf32> -> vector<24x1xf32>
    %264 = vector.broadcast %263 : vector<24x1xf32> to vector<24x24xf32>
    %265 = arith.mulf %260, %264 : vector<24x24xf32>
    %266 = vector.extract_strided_slice %7 {offsets = [0, 56], sizes = [24, 8], strides = [1, 1]} : vector<24x64xf32> to vector<24x8xf32>
    %cst_79 = arith.constant dense<0.000000e+00> : vector<24x8xf32>
    %267 = tpu.matmul %265, %266, %cst_79 {dimension_numbers = #tpu.dot_dimension_numbers<[1], [0], [0], [1], [0, 0, 1, 1], [], []>} : vector<24x24xf32>, vector<24x8xf32>, vector<24x8xf32> -> vector<24x8xf32>
    %cst_80 = arith.constant 0.000000e+00 : f32
    %268 = vector.broadcast %cst_80 : f32 to vector<24x8xf32>
    %269 = arith.cmpf ogt, %267, %268 : vector<24x8xf32>
    %cst_81 = arith.constant 0.000000e+00 : f32
    %270 = vector.broadcast %cst_81 : f32 to vector<24x8xf32>
    %271 = arith.minimumf %267, %270 : vector<24x8xf32>
    %272 = math.exp %271 : vector<24x8xf32>
    %cst_82 = arith.constant 1.000000e+00 : f32
    %273 = vector.broadcast %cst_82 : f32 to vector<24x8xf32>
    %274 = arith.subf %272, %273 : vector<24x8xf32>
    %275 = arith.select %269, %267, %274 : vector<24x8xi1>, vector<24x8xf32>
    %276 = tpu.concatenate %44, %77, %110, %143, %176, %209, %242, %275 in 1 : vector<24x8xf32>, vector<24x8xf32>, vector<24x8xf32>, vector<24x8xf32>, vector<24x8xf32>, vector<24x8xf32>, vector<24x8xf32>, vector<24x8xf32> -> vector<24x64xf32>
    %c0_83 = arith.constant 0 : index
    %c0_84 = arith.constant 0 : index
    %277 = vector.load %arg6[%c0_83, %c0_84] : memref<64x32xf32, #tpu.memory_space<vmem>>, vector<64x32xf32>
    %cst_85 = arith.constant dense<0.000000e+00> : vector<24x32xf32>
    %278 = tpu.matmul %276, %277, %cst_85 {dimension_numbers = #tpu.dot_dimension_numbers<[1], [0], [0], [1], [0, 0, 1, 1], [], []>} : vector<24x64xf32>, vector<64x32xf32>, vector<24x32xf32> -> vector<24x32xf32>
    %c0_86 = arith.constant 0 : index
    %c0_87 = arith.constant 0 : index
    %279 = vector.load %arg7[%c0_86, %c0_87] : memref<1x32xf32, #tpu.memory_space<vmem>>, vector<1x32xf32>
    %280 = vector.broadcast %279 : vector<1x32xf32> to vector<24x32xf32>
    %281 = arith.mulf %278, %280 : vector<24x32xf32>
    %cst_88 = arith.constant dense<0.000000e+00> : vector<24xf32>
    %282 = vector.multi_reduction <add>, %281, %cst_88 [1] : vector<24x32xf32> to vector<24xf32>
    %283 = vector.shape_cast %282 : vector<24xf32> to vector<24x1xf32>
    %c0_89 = arith.constant 0 : index
    %c0_90 = arith.constant 0 : index
    %284 = vector.load %arg8[%c0_89, %c0_90] : memref<1x32xf32, #tpu.memory_space<vmem>>, vector<1x32xf32>
    %285 = vector.broadcast %284 : vector<1x32xf32> to vector<24x32xf32>
    %286 = arith.mulf %278, %285 : vector<24x32xf32>
    %cst_91 = arith.constant dense<0.000000e+00> : vector<24xf32>
    %287 = vector.multi_reduction <add>, %286, %cst_91 [1] : vector<24x32xf32> to vector<24xf32>
    %288 = vector.shape_cast %287 : vector<24xf32> to vector<24x1xf32>
    %289 = tpu.transpose %288, [1, 0] : vector<24x1xf32> -> vector<1x24xf32>
    %290 = vector.broadcast %283 : vector<24x1xf32> to vector<24x24xf32>
    %291 = vector.broadcast %289 : vector<1x24xf32> to vector<24x24xf32>
    %292 = arith.addf %290, %291 : vector<24x24xf32>
    %cst_92 = arith.constant 0.000000e+00 : f32
    %293 = vector.broadcast %cst_92 : f32 to vector<24x24xf32>
    %294 = arith.cmpf ogt, %292, %293 : vector<24x24xf32>
    %cst_93 = arith.constant 2.000000e-01 : f32
    %295 = vector.broadcast %cst_93 : f32 to vector<24x24xf32>
    %296 = arith.mulf %295, %292 : vector<24x24xf32>
    %297 = arith.select %294, %292, %296 : vector<24x24xi1>, vector<24x24xf32>
    %cst_94 = arith.constant -9.000000e+15 : f32
    %298 = vector.broadcast %cst_94 : f32 to vector<24x24xf32>
    %299 = arith.select %5, %297, %298 : vector<24x24xi1>, vector<24x24xf32>
    %cst_95 = arith.constant dense<0xFF800000> : vector<24xf32>
    %300 = vector.multi_reduction <maximumf>, %299, %cst_95 [1] : vector<24x24xf32> to vector<24xf32>
    %301 = vector.shape_cast %300 : vector<24xf32> to vector<24x1xf32>
    %302 = vector.broadcast %301 : vector<24x1xf32> to vector<24x24xf32>
    %303 = arith.subf %299, %302 : vector<24x24xf32>
    %304 = math.exp %303 : vector<24x24xf32>
    %cst_96 = arith.constant dense<0.000000e+00> : vector<24xf32>
    %305 = vector.multi_reduction <add>, %304, %cst_96 [1] : vector<24x24xf32> to vector<24xf32>
    %306 = vector.shape_cast %305 : vector<24xf32> to vector<24x1xf32>
    %307 = tpu.reciprocal %306 {approx = true} : vector<24x1xf32> -> vector<24x1xf32>
    %308 = vector.broadcast %307 : vector<24x1xf32> to vector<24x24xf32>
    %309 = arith.mulf %304, %308 : vector<24x24xf32>
    %cst_97 = arith.constant dense<0.000000e+00> : vector<24x32xf32>
    %310 = tpu.matmul %309, %278, %cst_97 {dimension_numbers = #tpu.dot_dimension_numbers<[1], [0], [0], [1], [0, 0, 1, 1], [], []>} : vector<24x24xf32>, vector<24x32xf32>, vector<24x32xf32> -> vector<24x32xf32>
    %cst_98 = arith.constant 0.000000e+00 : f32
    %311 = vector.broadcast %cst_98 : f32 to vector<24x32xf32>
    %312 = arith.cmpf ogt, %310, %311 : vector<24x32xf32>
    %cst_99 = arith.constant 0.000000e+00 : f32
    %313 = vector.broadcast %cst_99 : f32 to vector<24x32xf32>
    %314 = arith.minimumf %310, %313 : vector<24x32xf32>
    %315 = math.exp %314 : vector<24x32xf32>
    %cst_100 = arith.constant 1.000000e+00 : f32
    %316 = vector.broadcast %cst_100 : f32 to vector<24x32xf32>
    %317 = arith.subf %315, %316 : vector<24x32xf32>
    %318 = arith.select %312, %310, %317 : vector<24x32xi1>, vector<24x32xf32>
    %cst_101 = arith.constant dense<0xFF800000> : vector<24xf32>
    %319 = vector.multi_reduction <maximumf>, %318, %cst_101 [1] : vector<24x32xf32> to vector<24xf32>
    %320 = vector.shape_cast %319 : vector<24xf32> to vector<24x1xf32>
    %321 = vector.broadcast %320 : vector<24x1xf32> to vector<24x32xf32>
    %322 = arith.subf %318, %321 : vector<24x32xf32>
    %323 = math.exp %322 : vector<24x32xf32>
    %cst_102 = arith.constant dense<0.000000e+00> : vector<24xf32>
    %324 = vector.multi_reduction <add>, %323, %cst_102 [1] : vector<24x32xf32> to vector<24xf32>
    %325 = vector.shape_cast %324 : vector<24xf32> to vector<24x1xf32>
    %326 = math.log %325 : vector<24x1xf32>
    %327 = vector.broadcast %326 : vector<24x1xf32> to vector<24x32xf32>
    %328 = arith.subf %322, %327 : vector<24x32xf32>
    %c0_103 = arith.constant 0 : index
    %c0_104 = arith.constant 0 : index
    %329 = vector.load %arg9[%c0_103, %c0_104] : memref<24x32xf32, #tpu.memory_space<vmem>>, vector<24x32xf32>
    tpu.vector_store %arg9[%c0_103, %c0_104], %328 {strides = array<i32>} : memref<24x32xf32, #tpu.memory_space<vmem>>, vector<24x32xf32>,
    %c0_105 = arith.constant 0 : index
    %c0_106 = arith.constant 0 : index
    %330 = vector.load %arg2[%c0_105, %c0_106] : memref<16x32xf32, #tpu.memory_space<vmem>>, vector<16x32xf32>
    %331 = arith.mulf %330, %1 : vector<16x32xf32>
    %cst_107 = arith.constant dense<0.000000e+00> : vector<16xf32>
    %332 = vector.multi_reduction <add>, %331, %cst_107 [1] : vector<16x32xf32> to vector<16xf32>
    %333 = vector.shape_cast %332 : vector<16xf32> to vector<16x1xf32>
    %334 = arith.mulf %330, %330 : vector<16x32xf32>
    %cst_108 = arith.constant dense<0.000000e+00> : vector<16xf32>
    %335 = vector.multi_reduction <add>, %334, %cst_108 [1] : vector<16x32xf32> to vector<16xf32>
    %336 = vector.shape_cast %335 : vector<16xf32> to vector<16x1xf32>
    %337 = math.sqrt %336 : vector<16x1xf32>
    %338 = arith.mulf %1, %1 : vector<16x32xf32>
    %cst_109 = arith.constant dense<0.000000e+00> : vector<16xf32>
    %339 = vector.multi_reduction <add>, %338, %cst_109 [1] : vector<16x32xf32> to vector<16xf32>
    %340 = vector.shape_cast %339 : vector<16xf32> to vector<16x1xf32>
    %341 = math.sqrt %340 : vector<16x1xf32>
    %342 = arith.mulf %337, %341 : vector<16x1xf32>
    %cst_110 = arith.constant 9.99999993E-9 : f32
    %343 = vector.broadcast %cst_110 : f32 to vector<16x1xf32>
    %344 = arith.maximumf %342, %343 : vector<16x1xf32>
    %345 = arith.divf %333, %344 : vector<16x1xf32>
    %cst_111 = arith.constant dense<0.000000e+00> : vector<1xf32>
    %346 = vector.multi_reduction <add>, %345, %cst_111 [0] : vector<16x1xf32> to vector<1xf32>
    %347 = vector.shape_cast %346 : vector<1xf32> to vector<1x1xf32>
    %cst_112 = arith.constant 6.250000e-02 : f32
    %348 = vector.broadcast %cst_112 : f32 to vector<1x1xf32>
    %349 = arith.mulf %347, %348 : vector<1x1xf32>
    %350 = vector.extract_strided_slice %328 {offsets = [8, 0], sizes = [16, 32], strides = [1, 1]} : vector<24x32xf32> to vector<16x32xf32>
    %351 = arith.mulf %350, %1 : vector<16x32xf32>
    %cst_113 = arith.constant dense<0.000000e+00> : vector<16xf32>
    %352 = vector.multi_reduction <add>, %351, %cst_113 [1] : vector<16x32xf32> to vector<16xf32>
    %353 = vector.shape_cast %352 : vector<16xf32> to vector<16x1xf32>
    %354 = arith.mulf %350, %350 : vector<16x32xf32>
    %cst_114 = arith.constant dense<0.000000e+00> : vector<16xf32>
    %355 = vector.multi_reduction <add>, %354, %cst_114 [1] : vector<16x32xf32> to vector<16xf32>
    %356 = vector.shape_cast %355 : vector<16xf32> to vector<16x1xf32>
    %357 = math.sqrt %356 : vector<16x1xf32>
    %358 = arith.mulf %1, %1 : vector<16x32xf32>
    %cst_115 = arith.constant dense<0.000000e+00> : vector<16xf32>
    %359 = vector.multi_reduction <add>, %358, %cst_115 [1] : vector<16x32xf32> to vector<16xf32>
    %360 = vector.shape_cast %359 : vector<16xf32> to vector<16x1xf32>
    %361 = math.sqrt %360 : vector<16x1xf32>
    %362 = arith.mulf %357, %361 : vector<16x1xf32>
    %cst_116 = arith.constant 9.99999993E-9 : f32
    %363 = vector.broadcast %cst_116 : f32 to vector<16x1xf32>
    %364 = arith.maximumf %362, %363 : vector<16x1xf32>
    %365 = arith.divf %353, %364 : vector<16x1xf32>
    %cst_117 = arith.constant dense<0.000000e+00> : vector<1xf32>
    %366 = vector.multi_reduction <add>, %365, %cst_117 [0] : vector<16x1xf32> to vector<1xf32>
    %367 = vector.shape_cast %366 : vector<1xf32> to vector<1x1xf32>
    %cst_118 = arith.constant 6.250000e-02 : f32
    %368 = vector.broadcast %cst_118 : f32 to vector<1x1xf32>
    %369 = arith.mulf %367, %368 : vector<1x1xf32>
    %370 = vector.extract_strided_slice %328 {offsets = [0, 0], sizes = [8, 32], strides = [1, 1]} : vector<24x32xf32> to vector<8x32xf32>
    %371 = arith.mulf %370, %0 : vector<8x32xf32>
    %cst_119 = arith.constant dense<0.000000e+00> : vector<8xf32>
    %372 = vector.multi_reduction <add>, %371, %cst_119 [1] : vector<8x32xf32> to vector<8xf32>
    %373 = vector.shape_cast %372 : vector<8xf32> to vector<8x1xf32>
    %374 = arith.mulf %370, %370 : vector<8x32xf32>
    %cst_120 = arith.constant dense<0.000000e+00> : vector<8xf32>
    %375 = vector.multi_reduction <add>, %374, %cst_120 [1] : vector<8x32xf32> to vector<8xf32>
    %376 = vector.shape_cast %375 : vector<8xf32> to vector<8x1xf32>
    %377 = math.sqrt %376 : vector<8x1xf32>
    %378 = arith.mulf %0, %0 : vector<8x32xf32>
    %cst_121 = arith.constant dense<0.000000e+00> : vector<8xf32>
    %379 = vector.multi_reduction <add>, %378, %cst_121 [1] : vector<8x32xf32> to vector<8xf32>
    %380 = vector.shape_cast %379 : vector<8xf32> to vector<8x1xf32>
    %381 = math.sqrt %380 : vector<8x1xf32>
    %382 = arith.mulf %377, %381 : vector<8x1xf32>
    %cst_122 = arith.constant 9.99999993E-9 : f32
    %383 = vector.broadcast %cst_122 : f32 to vector<8x1xf32>
    %384 = arith.maximumf %382, %383 : vector<8x1xf32>
    %385 = arith.divf %373, %384 : vector<8x1xf32>
    %cst_123 = arith.constant dense<0.000000e+00> : vector<1xf32>
    %386 = vector.multi_reduction <add>, %385, %cst_123 [0] : vector<8x1xf32> to vector<1xf32>
    %387 = vector.shape_cast %386 : vector<1xf32> to vector<1x1xf32>
    %cst_124 = arith.constant 1.250000e-01 : f32
    %388 = vector.broadcast %cst_124 : f32 to vector<1x1xf32>
    %389 = arith.mulf %387, %388 : vector<1x1xf32>
    %390 = tpu.iota {dimensions = array<i32: 1>} : vector<1x128xi32>
    %c0_i32 = arith.constant 0 : i32
    %391 = vector.broadcast %c0_i32 : i32 to vector<1x128xi32>
    %392 = arith.cmpi eq, %390, %391 : vector<1x128xi32>
    %c1_i32 = arith.constant 1 : i32
    %393 = vector.broadcast %c1_i32 : i32 to vector<1x128xi32>
    %394 = arith.cmpi eq, %390, %393 : vector<1x128xi32>
    %c2_i32 = arith.constant 2 : i32
    %395 = vector.broadcast %c2_i32 : i32 to vector<1x128xi32>
    %396 = arith.cmpi eq, %390, %395 : vector<1x128xi32>
    %cst_125 = arith.constant 0.000000e+00 : f32
    %397 = vector.shape_cast %389 : vector<1x1xf32> to vector<1x1xf32>
    %398 = vector.broadcast %397 : vector<1x1xf32> to vector<1x128xf32>
    %399 = vector.broadcast %cst_125 : f32 to vector<1x128xf32>
    %400 = arith.select %396, %398, %399 : vector<1x128xi1>, vector<1x128xf32>
    %401 = vector.shape_cast %369 : vector<1x1xf32> to vector<1x1xf32>
    %402 = vector.broadcast %401 : vector<1x1xf32> to vector<1x128xf32>
    %403 = arith.select %394, %402, %400 : vector<1x128xi1>, vector<1x128xf32>
    %404 = vector.shape_cast %349 : vector<1x1xf32> to vector<1x1xf32>
    %405 = vector.broadcast %404 : vector<1x1xf32> to vector<1x128xf32>
    %406 = arith.select %392, %405, %403 : vector<1x128xi1>, vector<1x128xf32>
    %c0_126 = arith.constant 0 : index
    %c0_127 = arith.constant 0 : index
    %407 = vector.load %arg10[%c0_126, %c0_127] : memref<1x128xf32, #tpu.memory_space<vmem>>, vector<1x128xf32>
    tpu.vector_store %arg10[%c0_126, %c0_127], %406 {strides = array<i32>} : memref<1x128xf32, #tpu.memory_space<vmem>>, vector<1x128xf32>,
    return
  }
}

</mosaic_0001>

<bundles_post_ra>
// kernel: tpu_custom_call.1
= control target key start
LH: loop header
LB: loop body
LE: loop exit
PB: predicated region body
PF: predicated region fallthrough
CT: control target
= control target key end

     0   :  { %16 = vsyncpa [#allocation3], 0  ;;  %v3554_v3 = vmov 0.0|0.0   ;;  %vm3555_vm0 = vmmov 0   ;;  %v3556_v6 = vmov 0.0   ;;  %vm52_vm1 = vcmask 261120   ;;  %s4595_s0 = inlined_call_operand.vmem [shape: f32[8,32], index: 0, kind: input, shape index: {}]   ;;  %s4596_s1 = inlined_call_operand.vmem [shape: f32[16,32], index: 1, kind: input, shape index: {}]   ;;  %s4597_s2 = inlined_call_operand.vmem [shape: f32[16,32], index: 2, kind: input, shape index: {}]   ;;  %s4598_s3 = inlined_call_operand.vmem [shape: f32[32,64], index: 3, kind: input, shape index: {}]   ;;  %s4599_s4 = inlined_call_operand.vmem [shape: f32[64,8], index: 4, kind: input, shape index: {}]   ;;  %s4600_s5 = inlined_call_operand.vmem [shape: f32[64,8], index: 5, kind: input, shape index: {}]   ;;  %s4601_s6 = inlined_call_operand.vmem [shape: f32[64,32], index: 6, kind: input, shape index: {}]   ;;  %s4602_s7 = inlined_call_operand.vmem [shape: f32[1,32], index: 7, kind: input, shape index: {}]   ;;  %s4603_s8 = inlined_call_operand.vmem [shape: f32[1,32], index: 8, kind: input, shape index: {}]   ;;  %s4604_s9 = inlined_call_operand.hbm [shape: f32[24,32], index: 9, kind: output, shape index: {0}]   ;;  %s4605_s10 = inlined_call_operand.hbm [shape: f32[1,128], index: 10, kind: output, shape index: {1}]  }
   0x1   :  { %v48_v0 = vld [vmem:[%s4598_s3] sm:$0xff]  ;;  %v49_v1 = vld [vmem:[%s4598_s3 + $0x8] sm:$0xff]  ;;  %v50_v2 = vld [vmem:[%s4598_s3 + $0x10] sm:$0xff]  ;;  %3139 = vmatprep.subr.bf16.mxu0 %v3554_v3  ;;  %2920 = vmatprep.mubr.msk.f32.mxu0 %vm3555_vm0, %v3556_v6 }
   0x2   :  { %v3140_v4 = vpack.c.bf16 %v49_v1, %v48_v0  ;;  %v51_v5 = vld [vmem:[%s4598_s3 + $0x18] sm:$0xff]  ;;  %3145 = vmatprep.subr.bf16.mxu1 %v3554_v3  ;;  %v142_v7 = vld [vmem:[%s4599_s4] sm:$0xff]  ;;  %v143_v8 = vld [vmem:[%s4599_s4 + $0x8] sm:$0xff]  ;;  %2945 = vmatprep.mubr.msk.f32.mxu1 %vm3555_vm0, %v3556_v6 }
   0x3   :  { %v3143_v9 = vpack.c.bf16 %v51_v5, %v50_v2  ;;  %v3146_v10 = vpack.c.bf16 %v143_v8, %v142_v7  ;;  %v144_v11 = vld [vmem:[%s4599_s4 + $0x10] sm:$0xff]  ;;  %v240_v12 = vld [vmem:[%s4600_s5] sm:$0xff]  ;;  %v241_v13 = vld [vmem:[%s4600_s5 + $0x8] sm:$0xff] }
   0x4   :  { %3141 = vmatpush3.bf16.msra.mxu0 %v3140_v4  ;;  %v145_v14 = vld [vmem:[%s4599_s4 + $0x18] sm:$0xff]  ;;  %v146_v16 = vld [vmem:[%s4599_s4 + $0x20] sm:$0xff]  ;;  %v147_v17 = vld [vmem:[%s4599_s4 + $0x28] sm:$0xff]  ;;  %v3158_v19 = vpack.c.bf16 %v241_v13, %v240_v12 }
   0x5   :  { %3142 = vmatprep.subr.bf16.mxu0 %v3554_v3  ;;  %3147 = vmatpush3.bf16.msra.mxu1 %v3146_v10  ;;  %v3149_v15 = vpack.c.bf16 %v145_v14, %v144_v11  ;;  %v36_v18 = vld [vmem:[%s4595_s0] sm:$0xff] }
   0x6   :  { %3148 = vmatprep.subr.bf16.mxu1 %v3554_v3 }
   0x8   :  { %3144 = vmatpush3.bf16.msra.mxu0 %v3143_v9 }
   0x9   :  { %17 = vsyncpa [#allocation5], 0  ;;  %3157 = vmatprep.subr.bf16.mxu0 %v3554_v3  ;;  %v242_v20 = vld [vmem:[%s4600_s5 + $0x10] sm:$0xff]  ;;  %v243_v21 = vld [vmem:[%s4600_s5 + $0x18] sm:$0xff]  ;;  %3150 = vmatpush3.bf16.msra.mxu1 %v3149_v15  ;;  %v3152_v22 = vpack.c.bf16 %v147_v17, %v146_v16  ;;  %vm150_vm2 = vcmask 523264   ;;  %s3558_s16 = smov 112  }
   0xa   :  { %3151 = vmatprep.subr.bf16.mxu1 %v3554_v3  ;;  %v148_v23 = vld [vmem:[%s4599_s4 + $0x30] sm:$0xff]  ;;  %v149_v24 = vld [vmem:[%s4599_s4 + $0x38] sm:$0xff]  ;;  %v37_v25 = vld [vmem:[%s4596_s1] sm:$0xff]  ;;  %v3161_v26 = vpack.c.bf16 %v243_v21, %v242_v20  ;;  %s3559_s17 = smov 104   ;;  %s3560_s18 = smov 96   ;;  %v3561_v43 = vmov 0  }
   0xb   :  { %2921 = vmatmul.mubr.msk.f32.vlgmr.msra.gmra.mrb[0].mxu0 %vm52_vm1, %v36_v18  ;;  %v244_v27 = vld [vmem:[%s4600_s5 + $0x20] sm:$0xff]  ;;  %v245_v28 = vld [vmem:[%s4600_s5 + $0x28] sm:$0xff]  ;;  %v3155_v29 = vpack.c.bf16 %v149_v24, %v148_v23  ;;  %v246_v32 = vld [vmem:[%s4600_s5 + $0x30] sm:$0xff]  ;;  %3263 = vset.pattern.permute.xlu1 %v3561_v43  ;;  %v3562_v44 = vmov 1   ;;  %s3563_s19 = smov 126   ;;  %s3564_s20 = smov 127  }
   0xc   :  { %2923 = vmatprep.mubr.msk.f32.mxu0 %vm3555_vm0, %v3556_v6  ;;  %3159 = vmatpush3.bf16.msra.mxu0 %v3158_v19  ;;  %v38_v30 = vld [vmem:[%s4596_s1 + $0x8] sm:$0xff]  ;;  %v3164_v31 = vpack.c.bf16 %v245_v28, %v244_v27  ;;  %v247_v33 = vld [vmem:[%s4600_s5 + $0x38] sm:$0xff]  ;;  %s3557_s5 = smov 120   ;;  %s3565_s21 = smov 124   ;;  %v3569_v62 = vmov 2   ;;  %v3571_v63 = vmov 6  }
   0xd   :  { %3160 = vmatprep.subr.bf16.mxu0 %v3554_v3  ;;  %3153 = vmatpush3.bf16.msra.mxu1 %v3152_v22  ;;  %v3167_v34 = vpack.c.bf16 %v247_v33, %v246_v32  ;;  %s3566_s22 = smov 125   ;;  %s3567_s23 = smov 123   ;;  %v3572_v0 = vmov 3   ;;  %v3573_v1 = vmov 4   ;;  %v3574_v2 = vmov 5  }
   0xe   :  { %3154 = vmatprep.subr.bf16.mxu1 %v3554_v3  ;;  %3264 = vset.pattern.permute.xlu0 %v3562_v44  ;;  %s3568_s24 = smov 122   ;;  %s3570_s3 = smov 121   ;;  %v3575_v4 = vmov 7   ;;  %vm394_vm6 = vcmask 195584  }
   0xf   :  { %2924 = vmatmul.mubr.msk.f32.gmra.mrb[2].mxu0 %vm52_vm1, %v37_v25  ;;  %s3576_s25 = smov 88   ;;  %s3577_s26 = smov 80  }
  0x10   :  { %2926 = vmatprep.mubr.msk.f32.mxu0 %vm3555_vm0, %v3556_v6  ;;  %3162 = vmatpush3.bf16.msra.mxu0 %v3161_v26  ;;  %s3578_s27 = smov 72   ;;  %s3579_s28 = smov 8  }
  0x11   :  { %3163 = vmatprep.subr.bf16.mxu0 %v3554_v3  ;;  %3156 = vmatpush3.bf16.msra.mxu1 %v3155_v29  ;;  %s3580_s29 = smov 16   ;;  %s3581_s30 = smov 24  }
  0x12   :  { %3169 = vmatprep.subr.bf16.mxu1 %v3554_v3  ;;  %s3582_s4 = smov 32   ;;  %s3583_s11 = smov 40  }
  0x13   :  { %2927 = vmatmul.mubr.msk.f32.gmra.mrb[4].mxu0 %vm52_vm1, %v38_v30 }
  0x14   :  { %3165 = vmatpush3.bf16.msra.mxu0 %v3164_v31  ;;  %2970 = vmatprep.mubr.msk.f32.mxu0 %vm3555_vm0, %v3556_v6 }
  0x15   :  { %3166 = vmatprep.subr.bf16.mxu0 %v3554_v3 }
  0x18   :  { %3168 = vmatpush3.bf16.msra.mxu0 %v3167_v34 }
  0x19   :  { %3172 = vmatprep.subr.bf16.mxu0 %v3554_v3 }
  0xde   :  { %v128_v35 = vpop.f32.mrb[0].mxu0 }
  0xdf   :  { %v2922_v36 = vpop.f32.mrb[1].mxu0  ;;  %2946 = vmatmul.mubr.msk.f32.vlgmr.msra.gmra.mrb[0].mxu1 %vm150_vm2, %v128_v35  ;;  %2971 = vmatmul.mubr.msk.f32.vlgmr.msra.gmra.mrb[6].mxu0 %vm150_vm2, %v128_v35 }
  0xe0   :  { %2973 = vmatprep.mubr.msk.f32.mxu0 %vm3555_vm0, %v3556_v6  ;;  %2948 = vmatprep.mubr.msk.f32.mxu1 %vm3555_vm0, %v3556_v6 }
  0xe2   :  { %v133_v37 = vpop.f32.mrb[2].mxu0 }
  0xe3   :  { %v3744_v38 = vpack.i.bf16 %v133_v37, %v128_v35  ;;  %v3170_v39 = vpack.c.bf16 %v133_v37, %v128_v35  ;;  %2974 = vmatmul.mubr.msk.f32.gmra.mrb[8].mxu0 %vm150_vm2, %v133_v37  ;;  %v2925_v40 = vpop.f32.mrb[3].mxu0  ;;  %2949 = vmatmul.mubr.msk.f32.gmra.mrb[2].mxu1 %vm150_vm2, %v133_v37 }
  0xe4   :  { %2976 = vmatprep.mubr.msk.f32.mxu0 %vm3555_vm0, %v3556_v6  ;;  %2951 = vmatprep.mubr.msk.f32.mxu1 %vm3555_vm0, %v3556_v6 }
  0xe5   :  { %3244 = vrot.lane.b32.xlu1 %v3744_v38, %s3557_s5  ;;  %3171 = vmatpush3.bf16.msra.mxu1 %v3170_v39 }
  0xe6   :  { %v3751_v41 = vpop.f32.mrb[4].mxu0  ;;  %2983 = vmatprep.subr.mxu1 %v3556_v6 }
  0xe7   :  { %2977 = vmatmul.mubr.msk.f32.gmra.mrb[10].mxu0 %vm150_vm2, %v3751_v41  ;;  %647 = vrot.lane.b32.xlu0 %v3751_v41, %s3557_s5  ;;  %v2928_v42 = vpop.f32.mrb[5].mxu0 }
  0xe8   :  { %2952 = vmatmul.mubr.msk.f32.gmra.mrb[4].mxu1 %vm150_vm2, %v3751_v41  ;;  %3000 = vmatprep.mubr.msk.f32.mxu0 %vm3555_vm0, %v3556_v6 }
  0xe9   :  { %3249 = vrot.lane.b32.xlu1 %v3744_v38, %s3558_s16  ;;  %2984 = vmatpush3.msra.mxu1 %v3751_v41 }
  0xea   :  { %2985 = vmatprep.mubr.msk.f32.mxu1 %vm3555_vm0, %v3556_v6  ;;  %3175 = vmatprep.subr.bf16.mxu1 %v3554_v3 }
  0xeb   :  { %868 = vrot.lane.b32.xlu0 %v3751_v41, %s3558_s16 }
  0xed   :  { %3254 = vrot.lane.b32.xlu1 %v3744_v38, %s3559_s17 }
  0xef   :  { %1089 = vrot.lane.b32.xlu0 %v3751_v41, %s3559_s17 }
  0xf1   :  { %3259 = vrot.lane.b32.xlu1 %v3744_v38, %s3560_s18 }
 0x157   :  { %v3245_v45 = vpop.permute.xlu1 %3244 }
 0x158   :  { %v3247_v46 = vunpack.i.h.bf16 %v3245_v45  ;;  %v3246_v47 = vunpack.i.l.bf16 %v3245_v45 }
 0x159   :  { %v648_v49 = vpop.permute.xlu0 %647 }
 0x15a   :  { %v3173_v48 = vpack.c.bf16 %v3247_v46, %v3246_v47 }
 0x15b   :  { %v3844_v5 = vpop.permute.xlu1 %3249 }
 0x15c   :  { %3174 = vmatpush3.bf16.msra.mxu0 %v3173_v48 }
 0x15d   :  { %2998 = vmatprep.subr.mxu0 %v3556_v6  ;;  %v3847_v7 = vpop.permute.xlu0 %868 }
 0x15f   :  { %v3849_v8 = vpop.permute.xlu1 %3254 }
 0x160   :  { %2999 = vmatpush3.msra.mxu0 %v648_v49 }
 0x161   :  { %3178 = vmatprep.subr.bf16.mxu0 %v3554_v3  ;;  %v3852_v9 = vpop.permute.xlu0 %1089 }
 0x163   :  { %v3854_v10 = vpop.permute.xlu1 %3259 }
 0x1b2   :  { %v226_v50 = vpop.f32.mrb[0].mxu1  ;;  %v3777_v51 = vpop.f32.mrb[6].mxu0 }
 0x1b3   :  { %v2947_v52 = vpop.f32.mrb[1].mxu1  ;;  %759 = vrot.lane.b32.xlu1 %v3777_v51, %s3563_s19  ;;  %538 = vrot.lane.b32.xlu0 %v3777_v51, %s3564_s20  ;;  %v2972_v53 = vpop.f32.mrb[7].mxu0 }
 0x1b6   :  { %v3783_v54 = vpop.f32.mrb[8].mxu0  ;;  %v231_v55 = vpop.f32.mrb[2].mxu1 }
 0x1b7   :  { %1201 = vrot.lane.b32.xlu1 %v3777_v51, %s3565_s21  ;;  %980 = vrot.lane.b32.xlu0 %v3777_v51, %s3566_s22  ;;  %v2975_v56 = vpop.f32.mrb[9].mxu0  ;;  %v2950_v57 = vpop.f32.mrb[3].mxu1 }
 0x1ba   :  { %v3789_v58 = vpop.f32.mrb[10].mxu0 }
 0x1bb   :  { %362 = vperm.xlu1 %3263, %v226_v50   ;;  %1422 = vrot.lane.b32.xlu0 %v3777_v51, %s3567_s23  ;;  %v3793_v59 = vpop.f32.mrb[4].mxu1  ;;  %v2978_v60 = vpop.f32.mrb[11].mxu0 }
 0x1bc   :  { %v2953_v61 = vpop.f32.mrb[5].mxu1 }
 0x1bf   :  { %1643 = vrot.lane.b32.xlu1 %v3777_v51, %s3568_s24  ;;  %580 = vperm.xlu0 %3264, %v226_v50  }
 0x1c0   :  { %3265 = vset.pattern.permute.xlu1 %v3569_v62 }
 0x1c3   :  { %1864 = vrot.lane.b32.xlu1 %v3777_v51, %s3570_s3  ;;  %3269 = vset.pattern.permute.xlu0 %v3571_v63 }
 0x1c4   :  { %1685 = vperm.xlu0 %3269, %v226_v50  }
 0x1c7   :  { %801 = vperm.xlu1 %3265, %v226_v50  }
 0x1c8   :  { %540 = vrot.lane.b32.xlu0 %v3783_v54, %s3564_s20 }
 0x1c9   :  { %3271 = vset.pattern.permute.xlu0 %v3561_v43 }
 0x1cb   :  { %3266 = vset.pattern.permute.xlu1 %v3572_v0 }
 0x1cc   :  { %1022 = vperm.xlu1 %3266, %v226_v50   ;;  %982 = vrot.lane.b32.xlu0 %v3783_v54, %s3566_s22 }
 0x1d0   :  { %3267 = vset.pattern.permute.xlu1 %v3573_v1  ;;  %1424 = vrot.lane.b32.xlu0 %v3783_v54, %s3567_s23 }
 0x1d1   :  { %1243 = vperm.xlu1 %3267, %v226_v50  }
 0x1d4   :  { %367 = vperm.xlu0 %3271, %v231_v55  }
 0x1d5   :  { %3268 = vset.pattern.permute.xlu1 %v3574_v2 }
 0x1d6   :  { %1464 = vperm.xlu1 %3268, %v226_v50  }
 0x1d8   :  { %1866 = vrot.lane.b32.xlu0 %v3783_v54, %s3570_s3 }
 0x1d9   :  { %3273 = vset.pattern.permute.xlu0 %v3569_v62 }
 0x1da   :  { %3270 = vset.pattern.permute.xlu1 %v3575_v4 }
 0x1db   :  { %1906 = vperm.xlu1 %3270, %v226_v50  }
 0x1dc   :  { %805 = vperm.xlu0 %3273, %v231_v55  }
 0x1df   :  { %761 = vrot.lane.b32.xlu1 %v3783_v54, %s3563_s19 }
 0x1e0   :  { %3276 = vset.pattern.permute.xlu0 %v3574_v2  ;;  %3272 = vset.pattern.permute.xlu1 %v3562_v44 }
 0x1e1   :  { %1468 = vperm.xlu0 %3276, %v231_v55  }
 0x1e3   :  { %1203 = vrot.lane.b32.xlu1 %v3783_v54, %s3565_s21 }
 0x1e5   :  { %3277 = vset.pattern.permute.xlu0 %v3571_v63 }
 0x1e6   :  { %1689 = vperm.xlu0 %3277, %v231_v55  }
 0x1e7   :  { %1645 = vrot.lane.b32.xlu1 %v3783_v54, %s3568_s24 }
 0x1ea   :  { %3278 = vset.pattern.permute.xlu0 %v3575_v4 }
 0x1eb   :  { %584 = vperm.xlu1 %3272, %v231_v55   ;;  %1910 = vperm.xlu0 %3278, %v231_v55  }
 0x1ef   :  { %3274 = vset.pattern.permute.xlu1 %v3572_v0  ;;  %984 = vrot.lane.b32.xlu0 %v3789_v58, %s3566_s22 }
 0x1f0   :  { %1026 = vperm.xlu1 %3274, %v231_v55   ;;  %3280 = vset.pattern.permute.xlu0 %v3562_v44 }
 0x1f3   :  { %1426 = vrot.lane.b32.xlu0 %v3789_v58, %s3567_s23 }
 0x1f4   :  { %3275 = vset.pattern.permute.xlu1 %v3573_v1 }
 0x1f5   :  { %1247 = vperm.xlu1 %3275, %v231_v55  }
 0x1f7   :  { %1868 = vrot.lane.b32.xlu0 %v3789_v58, %s3570_s3 }
 0x1f9   :  { %542 = vrot.lane.b32.xlu1 %v3789_v58, %s3564_s20 }
 0x1fa   :  { %3279 = vset.pattern.permute.xlu1 %v3561_v43 }
 0x1fb   :  { %588 = vperm.xlu0 %3280, %v3793_v59  }
 0x1fd   :  { %763 = vrot.lane.b32.xlu1 %v3789_v58, %s3563_s19  ;;  %s3584_s19 = smov 48  }
 0x1ff   :  { %3282 = vset.pattern.permute.xlu0 %v3572_v0 }
 0x200   :  { %1030 = vperm.xlu0 %3282, %v3793_v59  }
 0x201   :  { %1205 = vrot.lane.b32.xlu1 %v3789_v58, %s3565_s21 }
 0x205   :  { %1647 = vrot.lane.b32.xlu1 %v3789_v58, %s3568_s24 }
 0x209   :  { %372 = vperm.xlu1 %3279, %v3793_v59  }
 0x20d   :  { %3281 = vset.pattern.permute.xlu1 %v3569_v62 }
 0x20e   :  { %809 = vperm.xlu1 %3281, %v3793_v59  }
 0x212   :  { %3283 = vset.pattern.permute.xlu1 %v3573_v1 }
 0x213   :  { %1251 = vperm.xlu1 %3283, %v3793_v59  }
 0x217   :  { %3285 = vset.pattern.permute.xlu1 %v3571_v63 }
 0x218   :  { %1693 = vperm.xlu1 %3285, %v3793_v59  }
 0x21c   :  { %3286 = vset.pattern.permute.xlu1 %v3575_v4 }
 0x21d   :  { %1914 = vperm.xlu1 %3286, %v3793_v59  }
 0x21e   :  { %328 = vxpose.xlu0.b32.start [1/3] (short) (narrow) %v3777_v51, 8  ;;  %v39_v51 = vlaneseq }
 0x220   :  { %v40_v52 = vshrl.u32 %v39_v51, 7 }
 0x222   :  { %329 = vxpose.xlu0.b32.cont [2/3] (short) (narrow) %v3783_v54, 8  ;;  %v3888_v54 = vsub.s32 0, %v40_v52  ;;  %v41_v1 = vadd.s32 8, %v40_v52 }
 0x225   :  { %v539_v11 = vpop.permute.xlu0 %538  ;;  %v760_v12 = vpop.permute.xlu1 %759 }
 0x226   :  { %330 = vxpose.xlu0.b32.end [3/3] (short) (narrow) %v3789_v58, 8  ;;  %v3891_v58 = vand.u32 127, %v39_v51 }
 0x228   :  { %vm3894_vm4 = vcmp.ne.s32.totalorder %v40_v52, %v3891_v58  ;;  %vm3904_vm7 = vcmp.ne.s32.totalorder %v41_v1, %v3891_v58 }
 0x229   :  { %v981_v13 = vpop.permute.xlu0 %980  ;;  %v1202_v14 = vpop.permute.xlu1 %1201 }
 0x22d   :  { %v1423_v15 = vpop.permute.xlu0 %1422 }
 0x23a   :  { %v363_v16 = vpop.permute.xlu1 %362 }
 0x23e   :  { %v1644_v17 = vpop.permute.xlu1 %1643  ;;  %v3856_v18 = vpop.permute.xlu0 %580 }
 0x242   :  { %v1865_v19 = vpop.permute.xlu1 %1864 }
 0x243   :  { %v3858_v20 = vpop.permute.xlu0 %1685 }
 0x246   :  { %v3860_v21 = vpop.permute.xlu1 %801  ;;  %547 = vxpose.xlu1.b32.start [1/3] (short) (narrow) %v539_v11, 8 }
 0x247   :  { %v541_v22 = vpop.permute.xlu0 %540 }
 0x24a   :  { %548 = vxpose.xlu1.b32.cont [2/3] (short) (narrow) %v541_v22, 8 }
 0x24b   :  { %v3862_v23 = vpop.permute.xlu1 %1022  ;;  %v983_v24 = vpop.permute.xlu0 %982 }
 0x24f   :  { %v1425_v25 = vpop.permute.xlu0 %1424  ;;  %3284 = vset.pattern.permute.xlu0 %v3574_v2 }
 0x250   :  { %v3865_v26 = vpop.permute.xlu1 %1243  ;;  %1472 = vperm.xlu0 %3284, %v3793_v59  }
 0x253   :  { %v368_v27 = vpop.permute.xlu0 %367 }
 0x255   :  { %v3868_v28 = vpop.permute.xlu1 %1464 }
 0x257   :  { %v1867_v29 = vpop.permute.xlu0 %1866 }
 0x25a   :  { %v3870_v30 = vpop.permute.xlu1 %1906 }
 0x25b   :  { %v3872_v31 = vpop.permute.xlu0 %805 }
 0x25e   :  { %v762_v32 = vpop.permute.xlu1 %761 }
 0x260   :  { %v3874_v34 = vpop.permute.xlu0 %1468 }
 0x262   :  { %v1204_v33 = vpop.permute.xlu1 %1203 }
 0x265   :  { %v3876_v36 = vpop.permute.xlu0 %1689 }
 0x266   :  { %v1646_v35 = vpop.permute.xlu1 %1645 }
 0x26a   :  { %v3878_v37 = vpop.permute.xlu1 %584  ;;  %v3880_v39 = vpop.permute.xlu0 %1910 }
 0x26e   :  { %989 = vxpose.xlu0.b32.start [1/3] (short) (narrow) %v981_v13, 8  ;;  %v985_v43 = vpop.permute.xlu0 %984 }
 0x26f   :  { %v3882_v40 = vpop.permute.xlu1 %1026 }
 0x272   :  { %990 = vxpose.xlu0.b32.cont [2/3] (short) (narrow) %v983_v24, 8  ;;  %v1427_v45 = vpop.permute.xlu0 %1426 }
 0x274   :  { %v3884_v42 = vpop.permute.xlu1 %1247 }
 0x276   :  { %991 = vxpose.xlu0.b32.end [3/3] (short) (narrow) %v985_v43, 8  ;;  %v1869_v49 = vpop.permute.xlu0 %1868 }
 0x278   :  { %v543_v44 = vpop.permute.xlu1 %542 }
 0x279   :  { %549 = vxpose.xlu1.b32.end [3/3] (short) (narrow) %v543_v44, 8 }
 0x27a   :  { %1431 = vxpose.xlu0.b32.start [1/3] (short) (narrow) %v1423_v15, 8  ;;  %v589_v50 = vpop.permute.xlu0 %588 }
 0x27c   :  { %v764_v46 = vpop.permute.xlu1 %763 }
 0x27d   :  { %768 = vxpose.xlu1.b32.start [1/3] (short) (narrow) %v760_v12, 8 }
 0x27e   :  { %1432 = vxpose.xlu0.b32.cont [2/3] (short) (narrow) %v1425_v25, 8 }
 0x27f   :  { %v3886_v53 = vpop.permute.xlu0 %1030 }
 0x280   :  { %v1206_v47 = vpop.permute.xlu1 %1205 }
 0x281   :  { %769 = vxpose.xlu1.b32.cont [2/3] (short) (narrow) %v762_v32, 8 }
 0x282   :  { %1433 = vxpose.xlu0.b32.end [3/3] (short) (narrow) %v1427_v45, 8 }
 0x284   :  { %v1648_v48 = vpop.permute.xlu1 %1647 }
 0x285   :  { %770 = vxpose.xlu1.b32.end [3/3] (short) (narrow) %v764_v46, 8 }
 0x286   :  { %1652 = vxpose.xlu0.b32.start [1/3] (short) (narrow) %v1644_v17, 8 }
 0x288   :  { %v373_v61 = vpop.permute.xlu1 %372 }
 0x289   :  { %1210 = vxpose.xlu1.b32.start [1/3] (short) (narrow) %v1202_v14, 8  ;;  %v42_v14 = vadd.s32 16, %v40_v52 }
 0x28a   :  { %1653 = vxpose.xlu0.b32.cont [2/3] (short) (narrow) %v1646_v35, 8 }
 0x28b   :  { %vm3915_vm9 = vcmp.ne.s32.totalorder %v42_v14, %v3891_v58 }
 0x28d   :  { %1211 = vxpose.xlu1.b32.cont [2/3] (short) (narrow) %v1204_v33, 8 }
 0x28e   :  { %1654 = vxpose.xlu0.b32.end [3/3] (short) (narrow) %v1648_v48, 8 }
 0x291   :  { %1212 = vxpose.xlu1.b32.end [3/3] (short) (narrow) %v1206_v47, 8 }
 0x295   :  { %1873 = vxpose.xlu1.b32.start [1/3] (short) (narrow) %v1865_v19, 8 }
 0x299   :  { %1874 = vxpose.xlu1.b32.cont [2/3] (short) (narrow) %v1867_v29, 8 }
 0x29d   :  { %1875 = vxpose.xlu1.b32.end [3/3] (short) (narrow) %v1869_v49, 8 }
 0x29e   :  { %v344_v55 = vpop.trf.xlu0 }
 0x29f   :  { %v378_v56 = vrot.slane %v344_v55, %v3888_v54 }
 0x2a1   :  { %v379_v57 = vadd.f32 %v378_v56, %v363_v16  ;;  %v380_v59 = vadd.f32 %v378_v56, %v368_v27  ;;  %v381_v63 = vadd.f32 %v378_v56, %v373_v61  ;;  %v810_v27 = vpop.permute.xlu1 %809 }
 0x2a3   :  { %v385_v60 = vmul.f32 0.2, %v379_v57  ;;  %vm382_vm3 = vcmp.gt.f32.partialorder %v379_v57, 0.0  ;;  %v386_v2 = vmul.f32 0.2, %v380_v59  ;;  %vm383_vm5 = vcmp.gt.f32.partialorder %v380_v59, 0.0 }
 0x2a4   :  { %v387_v15 = vmul.f32 0.2, %v381_v63  ;;  %vm384_vm8 = vcmp.gt.f32.partialorder %v381_v63, 0.0 }
 0x2a5   :  { %v388_v0 = vsel %vm382_vm3, %v379_v57, %v385_v60  ;;  %v389_v13 = vsel %vm383_vm5, %v380_v59, %v386_v2  ;;  %v3927_v29 = vpop.permute.xlu1 %1251 }
 0x2a6   :  { %v3900_v11 = vsel %vm3894_vm4, %v388_v0, -9e+15  ;;  %v3912_v17 = vsel %vm3904_vm7, %v389_v13, -9e+15  ;;  %v390_v19 = vsel %vm384_vm8, %v381_v63, %v387_v15 }
 0x2a7   :  { %v395_v16 = vsel %vm394_vm6, %v3900_v11, -inf  ;;  %v398_v22 = vsel %vm394_vm6, %v3912_v17, -inf  ;;  %v3923_v24 = vsel %vm3915_vm9, %v390_v19, -9e+15 }
 0x2a8   :  { %v401_v25 = vsel %vm394_vm6, %v3923_v24, -inf }
 0x2a9   :  { %v3929_v32 = vpop.permute.xlu1 %1693 }
 0x2ad   :  { %v3931_v33 = vpop.permute.xlu1 %1914 }
 0x2b7   :  { %3302 = vset.pattern.permute.xlu0 %v3575_v4 }
 0x2bb   :  { %396 = vmax.xlane.f32.xlu0 %v395_v16 }
 0x2bf   :  { %399 = vmax.xlane.f32.xlu0 %v398_v22 }
 0x2c3   :  { %402 = vmax.xlane.f32.xlu0 %v401_v25 }
 0x2cf   :  { %v3933_v35 = vpop.permute.xlu0 %1472 }
 0x2ee   :  { %v1005_v43 = vpop.trf.xlu0 }
 0x2ef   :  { %v1036_v46 = vrot.slane %v1005_v43, %v3888_v54 }
 0x2f1   :  { %v563_v44 = vpop.trf.xlu1  ;;  %v1037_v56 = vadd.f32 %v1036_v46, %v3862_v23  ;;  %v1039_v0 = vadd.f32 %v1036_v46, %v3886_v53 }
 0x2f2   :  { %v594_v45 = vrot.slane %v563_v44, %v3888_v54 }
 0x2f3   :  { %v1043_v23 = vmul.f32 0.2, %v1037_v56  ;;  %vm1040_vm13 = vcmp.gt.f32.partialorder %v1037_v56, 0.0  ;;  %vm1042_vm15 = vcmp.gt.f32.partialorder %v1039_v0, 0.0  ;;  %v1045_v43 = vmul.f32 0.2, %v1039_v0 }
 0x2f4   :  { %v595_v47 = vadd.f32 %v594_v45, %v3856_v18  ;;  %v596_v48 = vadd.f32 %v594_v45, %v3878_v37  ;;  %v597_v49 = vadd.f32 %v594_v45, %v589_v50  ;;  %v1038_v37 = vadd.f32 %v1036_v46, %v3882_v40 }
 0x2f5   :  { %v1046_v22 = vsel %vm1040_vm13, %v1037_v56, %v1043_v23 }
 0x2f6   :  { %vm598_vm10 = vcmp.gt.f32.partialorder %v595_v47, 0.0  ;;  %v601_v51 = vmul.f32 0.2, %v595_v47  ;;  %vm599_vm11 = vcmp.gt.f32.partialorder %v596_v48, 0.0  ;;  %v602_v52 = vmul.f32 0.2, %v596_v48 }
 0x2f7   :  { %v603_v55 = vmul.f32 0.2, %v597_v49  ;;  %vm600_vm12 = vcmp.gt.f32.partialorder %v597_v49, 0.0  ;;  %vm1041_vm14 = vcmp.gt.f32.partialorder %v1038_v37, 0.0  ;;  %v1044_v15 = vmul.f32 0.2, %v1038_v37 }
 0x2f8   :  { %v604_v57 = vsel %vm598_vm10, %v595_v47, %v601_v51  ;;  %v605_v59 = vsel %vm599_vm11, %v596_v48, %v602_v52  ;;  %v3967_v47 = vsel %vm3894_vm4, %v1046_v22, -9e+15 }
 0x2f9   :  { %v3942_v60 = vsel %vm3894_vm4, %v604_v57, -9e+15  ;;  %v3949_v50 = vsel %vm3904_vm7, %v605_v59, -9e+15  ;;  %v606_v61 = vsel %vm600_vm12, %v597_v49, %v603_v55  ;;  %v1052_v51 = vsel %vm394_vm6, %v3967_v47, -inf }
 0x2fa   :  { %v610_v18 = vsel %vm394_vm6, %v3942_v60, -inf  ;;  %v1447_v63 = vpop.trf.xlu0  ;;  %v613_v13 = vsel %vm394_vm6, %v3949_v50, -inf  ;;  %v3957_v40 = vsel %vm3915_vm9, %v606_v61, -9e+15  ;;  %v1048_v55 = vsel %vm1042_vm15, %v1039_v0, %v1045_v43 }
 0x2fb   :  { %611 = vmax.xlane.f32.xlu1 %v610_v18  ;;  %v1478_v14 = vrot.slane %v1447_v63, %v3888_v54  ;;  %v616_v25 = vsel %vm394_vm6, %v3957_v40, -inf }
 0x2fd   :  { %v784_v1 = vpop.trf.xlu1  ;;  %v1479_v46 = vadd.f32 %v1478_v14, %v3868_v28  ;;  %v1480_v56 = vadd.f32 %v1478_v14, %v3874_v34 }
 0x2fe   :  { %v815_v2 = vrot.slane %v784_v1, %v3888_v54  ;;  %v3996_v1 = vsel %vm3915_vm9, %v1048_v55, -9e+15 }
 0x2ff   :  { %614 = vmax.xlane.f32.xlu1 %v613_v13  ;;  %v1485_v18 = vmul.f32 0.2, %v1479_v46  ;;  %vm1482_vm10 = vcmp.gt.f32.partialorder %v1479_v46, 0.0  ;;  %vm1483_vm11 = vcmp.gt.f32.partialorder %v1480_v56, 0.0  ;;  %v1486_v13 = vmul.f32 0.2, %v1480_v56 }
 0x300   :  { %v816_v16 = vadd.f32 %v815_v2, %v3860_v21  ;;  %v817_v53 = vadd.f32 %v815_v2, %v3872_v31  ;;  %v818_v19 = vadd.f32 %v815_v2, %v810_v27  ;;  %v1047_v21 = vsel %vm1041_vm14, %v1038_v37, %v1044_v15 }
 0x301   :  { %v3980_v52 = vsel %vm3904_vm7, %v1047_v21, -9e+15  ;;  %v1481_v37 = vadd.f32 %v1478_v14, %v3933_v35  ;;  %v1488_v35 = vsel %vm1482_vm10, %v1479_v46, %v1485_v18 }
 0x302   :  { %vm819_vm3 = vcmp.gt.f32.partialorder %v816_v16, 0.0  ;;  %v822_v44 = vmul.f32 0.2, %v816_v16  ;;  %vm820_vm5 = vcmp.gt.f32.partialorder %v817_v53, 0.0  ;;  %v823_v45 = vmul.f32 0.2, %v817_v53 }
 0x303   :  { %617 = vmax.xlane.f32.xlu1 %v616_v25  ;;  %v824_v31 = vmul.f32 0.2, %v818_v19  ;;  %vm821_vm8 = vcmp.gt.f32.partialorder %v818_v19, 0.0  ;;  %v1055_v23 = vsel %vm394_vm6, %v3980_v52, -inf  ;;  %vm1484_vm12 = vcmp.gt.f32.partialorder %v1481_v37, 0.0 }
 0x304   :  { %v825_v27 = vsel %vm819_vm3, %v816_v16, %v822_v44  ;;  %v826_v48 = vsel %vm820_vm5, %v817_v53, %v823_v45 }
 0x305   :  { %v3972_v49 = vsel %vm3894_vm4, %v825_v27, -9e+15  ;;  %v3986_v57 = vsel %vm3904_vm7, %v826_v48, -9e+15  ;;  %v827_v59 = vsel %vm821_vm8, %v818_v19, %v824_v31  ;;  %v1058_v19 = vsel %vm394_vm6, %v3996_v1, -inf }
 0x306   :  { %v831_v28 = vsel %vm394_vm6, %v3972_v49, -inf  ;;  %v1668_v61 = vpop.trf.xlu0  ;;  %v834_v34 = vsel %vm394_vm6, %v3986_v57, -inf  ;;  %v4000_v2 = vsel %vm3915_vm9, %v827_v59, -9e+15 }
 0x307   :  { %1053 = vmax.xlane.f32.xlu1 %v1052_v51  ;;  %832 = vmax.xlane.f32.xlu0 %v831_v28  ;;  %v1699_v14 = vrot.slane %v1668_v61, %v3888_v54  ;;  %v837_v22 = vsel %vm394_vm6, %v4000_v2, -inf }
 0x309   :  { %v1226_v63 = vpop.trf.xlu1  ;;  %v1700_v45 = vadd.f32 %v1699_v14, %v3858_v20 }
 0x30a   :  { %v1257_v0 = vrot.slane %v1226_v63, %v3888_v54 }
 0x30b   :  { %1056 = vmax.xlane.f32.xlu1 %v1055_v23  ;;  %835 = vmax.xlane.f32.xlu0 %v834_v34  ;;  %v1706_v59 = vmul.f32 0.2, %v1700_v45  ;;  %vm1703_vm3 = vcmp.gt.f32.partialorder %v1700_v45, 0.0 }
 0x30c   :  { %v1258_v15 = vadd.f32 %v1257_v0, %v3865_v26  ;;  %v1259_v16 = vadd.f32 %v1257_v0, %v3884_v42  ;;  %v1260_v53 = vadd.f32 %v1257_v0, %v3927_v29  ;;  %v4012_v26 = vsel %vm3894_vm4, %v1488_v35, -9e+15 }
 0x30d   :  { %v1489_v42 = vsel %vm1483_vm11, %v1480_v56, %v1486_v13  ;;  %v1487_v29 = vmul.f32 0.2, %v1481_v37  ;;  %v1494_v27 = vsel %vm394_vm6, %v4012_v26, -inf  ;;  %v1701_v56 = vadd.f32 %v1699_v14, %v3876_v36 }
 0x30e   :  { %vm1261_vm13 = vcmp.gt.f32.partialorder %v1258_v15, 0.0  ;;  %v1264_v25 = vmul.f32 0.2, %v1258_v15  ;;  %vm1262_vm14 = vcmp.gt.f32.partialorder %v1259_v16, 0.0  ;;  %v1265_v43 = vmul.f32 0.2, %v1259_v16 }
 0x30f   :  { %1059 = vmax.xlane.f32.xlu1 %v1058_v19  ;;  %838 = vmax.xlane.f32.xlu0 %v837_v22  ;;  %v1266_v44 = vmul.f32 0.2, %v1260_v53  ;;  %vm1263_vm15 = vcmp.gt.f32.partialorder %v1260_v53, 0.0  ;;  %v4026_v51 = vsel %vm3904_vm7, %v1489_v42, -9e+15  ;;  %v1490_v28 = vsel %vm1484_vm12, %v1481_v37, %v1487_v29 }
 0x310   :  { %v1267_v46 = vsel %vm1261_vm13, %v1258_v15, %v1264_v25  ;;  %v1268_v21 = vsel %vm1262_vm14, %v1259_v16, %v1265_v43  ;;  %v1497_v61 = vsel %vm394_vm6, %v4026_v51, -inf  ;;  %v4041_v0 = vsel %vm3915_vm9, %v1490_v28, -9e+15 }
 0x311   :  { %v4018_v31 = vsel %vm3894_vm4, %v1267_v46, -9e+15  ;;  %v4030_v20 = vsel %vm3904_vm7, %v1268_v21, -9e+15  ;;  %v1269_v55 = vsel %vm1263_vm15, %v1260_v53, %v1266_v44  ;;  %v1702_v36 = vadd.f32 %v1699_v14, %v3929_v32 }
 0x312   :  { %v1273_v48 = vsel %vm394_vm6, %v4018_v31, -inf  ;;  %v1276_v23 = vsel %vm394_vm6, %v4030_v20, -inf  ;;  %v4045_v37 = vsel %vm3915_vm9, %v1269_v55, -9e+15  ;;  %v1709_v13 = vsel %vm1703_vm3, %v1700_v45, %v1706_v59 }
 0x313   :  { %1495 = vmax.xlane.f32.xlu1 %v1494_v27  ;;  %1274 = vmax.xlane.f32.xlu0 %v1273_v48  ;;  %v1707_v15 = vmul.f32 0.2, %v1701_v56  ;;  %v1500_v16 = vsel %vm394_vm6, %v4041_v0, -inf  ;;  %v1279_v53 = vsel %vm394_vm6, %v4045_v37, -inf  ;;  %vm1704_vm5 = vcmp.gt.f32.partialorder %v1701_v56, 0.0 }
 0x314   :  { %v1708_v25 = vmul.f32 0.2, %v1702_v36  ;;  %vm1705_vm11 = vcmp.gt.f32.partialorder %v1702_v36, 0.0 }
 0x315   :  { %v1889_v18 = vpop.trf.xlu1  ;;  %v1710_v32 = vsel %vm1704_vm5, %v1701_v56, %v1707_v15 }
 0x316   :  { %v1920_v63 = vrot.slane %v1889_v18, %v3888_v54  ;;  %v4068_v44 = vsel %vm3904_vm7, %v1710_v32, -9e+15  ;;  %v1711_v46 = vsel %vm1705_vm11, %v1702_v36, %v1708_v25 }
 0x317   :  { %1498 = vmax.xlane.f32.xlu1 %v1497_v61  ;;  %1277 = vmax.xlane.f32.xlu0 %v1276_v23  ;;  %v1718_v21 = vsel %vm394_vm6, %v4068_v44, -inf  ;;  %v4080_v48 = vsel %vm3915_vm9, %v1711_v46, -9e+15 }
 0x318   :  { %v1921_v34 = vadd.f32 %v1920_v63, %v3870_v30  ;;  %v1922_v35 = vadd.f32 %v1920_v63, %v3880_v39  ;;  %v4056_v30 = vsel %vm3894_vm4, %v1709_v13, -9e+15  ;;  %v1721_v28 = vsel %vm394_vm6, %v4080_v48, -inf }
 0x319   :  { %v1715_v42 = vsel %vm394_vm6, %v4056_v30, -inf  ;;  %v1923_v61 = vadd.f32 %v1920_v63, %v3931_v33 }
 0x31a   :  { %vm1924_vm8 = vcmp.gt.f32.partialorder %v1921_v34, 0.0  ;;  %v1927_v19 = vmul.f32 0.2, %v1921_v34  ;;  %vm1925_vm10 = vcmp.gt.f32.partialorder %v1922_v35, 0.0  ;;  %v1928_v22 = vmul.f32 0.2, %v1922_v35 }
 0x31b   :  { %1501 = vmax.xlane.f32.xlu1 %v1500_v16  ;;  %1280 = vmax.xlane.f32.xlu0 %v1279_v53  ;;  %v1929_v13 = vmul.f32 0.2, %v1923_v61  ;;  %vm1926_vm12 = vcmp.gt.f32.partialorder %v1923_v61, 0.0 }
 0x31c   :  { %v1930_v39 = vsel %vm1924_vm8, %v1921_v34, %v1927_v19  ;;  %v1931_v14 = vsel %vm1925_vm10, %v1922_v35, %v1928_v22 }
 0x31d   :  { %v4060_v43 = vsel %vm3894_vm4, %v1930_v39, -9e+15  ;;  %v4072_v45 = vsel %vm3904_vm7, %v1931_v14, -9e+15  ;;  %v1932_v16 = vsel %vm1926_vm12, %v1923_v61, %v1929_v13 }
 0x31e   :  { %v1936_v29 = vsel %vm394_vm6, %v4060_v43, -inf  ;;  %v1939_v27 = vsel %vm394_vm6, %v4072_v45, -inf }
 0x31f   :  { %1716 = vmax.xlane.f32.xlu0 %v1715_v42  ;;  %1937 = vmax.xlane.f32.xlu1 %v1936_v29 }
 0x323   :  { %1719 = vmax.xlane.f32.xlu0 %v1718_v21  ;;  %1940 = vmax.xlane.f32.xlu1 %v1939_v27 }
 0x327   :  { %1722 = vmax.xlane.f32.xlu0 %v1721_v28 }
 0x334   :  { %1310 = vrot.lane.b32.xlu1 %v3751_v41, %s3560_s18 }
 0x338   :  { %1531 = vrot.lane.b32.xlu1 %v3751_v41, %s3576_s25 }
 0x33d   :  { %3288 = vrot.lane.b32.xlu0 %v3744_v38, %s3576_s25 }
 0x348   :  { %v397_v55 = vpop.xlane.xlu0 %396 }
 0x349   :  { %v404_v56 = vsub.f32 %v3900_v11, %v397_v55  ;;  %v4096_v11 = vsel %vm3915_vm9, %v1932_v16, -9e+15 }
 0x34a   :  { %v1942_v33 = vsel %vm394_vm6, %v4096_v11, -inf }
 0x34b   :  { %v407_v59 = vmul.f32 1.442695, %v404_v56 }
 0x34c   :  { %v400_v18 = vpop.xlane.xlu0 %399 }
 0x34d   :  { %v405_v23 = vsub.f32 %v3912_v17, %v400_v18  ;;  %3303 = vpow2.f32 %v407_v59 }
 0x34f   :  { %v409_v36 = vmul.f32 1.442695, %v405_v23 }
 0x350   :  { %v403_v34 = vpop.xlane.xlu0 %402 }
 0x351   :  { %v406_v35 = vsub.f32 %v3923_v24, %v403_v34  ;;  %3305 = vpow2.f32 %v409_v36 }
 0x353   :  { %v411_v15 = vmul.f32 1.442695, %v406_v35 }
 0x355   :  { %3307 = vpow2.f32 %v411_v15 }
 0x357   :  { %v4092_v53 = vpop.eup %3303 }
 0x358   :  { %v413_v17 = vsel %vm394_vm6, %v4092_v53, 0.0 }
 0x35b   :  { %v4102_v63 = vpop.eup %3305 }
 0x35c   :  { %414 = vadd.xlane.f32.xlu0 %v413_v17  ;;  %1943 = vmax.xlane.f32.xlu1 %v1942_v33  ;;  %v416_v24 = vsel %vm394_vm6, %v4102_v63, 0.0 }
 0x35f   :  { %v4106_v19 = vpop.eup %3307 }
 0x360   :  { %417 = vadd.xlane.f32.xlu0 %v416_v24  ;;  %v419_v22 = vsel %vm394_vm6, %v4106_v19, 0.0 }
 0x364   :  { %420 = vadd.xlane.f32.xlu0 %v419_v22 }
 0x36d   :  { %3293 = vrot.lane.b32.xlu1 %v3744_v38, %s3577_s26 }
 0x388   :  { %v612_v39 = vpop.xlane.xlu1 %611 }
 0x389   :  { %v619_v32 = vsub.f32 %v3942_v60, %v612_v39 }
 0x38b   :  { %v622_v14 = vmul.f32 1.442695, %v619_v32 }
 0x38c   :  { %v615_v25 = vpop.xlane.xlu1 %614 }
 0x38d   :  { %3309 = vpow2.f32 %v622_v14  ;;  %v620_v42 = vsub.f32 %v3949_v50, %v615_v25 }
 0x38f   :  { %v624_v29 = vmul.f32 1.442695, %v620_v42 }
 0x390   :  { %v618_v46 = vpop.xlane.xlu1 %617 }
 0x391   :  { %3311 = vpow2.f32 %v624_v29  ;;  %v621_v21 = vsub.f32 %v3957_v40, %v618_v46 }
 0x393   :  { %v626_v27 = vmul.f32 1.442695, %v621_v21 }
 0x394   :  { %v833_v28 = vpop.xlane.xlu0 %832  ;;  %v1054_v55 = vpop.xlane.xlu1 %1053 }
 0x395   :  { %3313 = vpow2.f32 %v626_v27  ;;  %v840_v56 = vsub.f32 %v3972_v49, %v833_v28  ;;  %v1061_v59 = vsub.f32 %v3967_v47, %v1054_v55 }
 0x397   :  { %v4117_v18 = vpop.eup %3309  ;;  %v843_v60 = vmul.f32 1.442695, %v840_v56  ;;  %v1064_v61 = vmul.f32 1.442695, %v1061_v59 }
 0x398   :  { %v836_v23 = vpop.xlane.xlu0 %835  ;;  %v1057_v36 = vpop.xlane.xlu1 %1056  ;;  %v628_v50 = vsel %vm394_vm6, %v4117_v18, 0.0 }
 0x399   :  { %3315 = vpow2.f32 %v843_v60  ;;  %v841_v40 = vsub.f32 %v3986_v57, %v836_v23  ;;  %v1062_v34 = vsub.f32 %v3980_v52, %v1057_v36  ;;  %629 = vadd.xlane.f32.xlu1 %v628_v50 }
 0x39a   :  { %3317 = vpow2.f32 %v1064_v61 }
 0x39b   :  { %v4123_v35 = vpop.eup %3311  ;;  %v845_v49 = vmul.f32 1.442695, %v841_v40  ;;  %v1066_v47 = vmul.f32 1.442695, %v1062_v34 }
 0x39c   :  { %v839_v13 = vpop.xlane.xlu0 %838  ;;  %v1060_v15 = vpop.xlane.xlu1 %1059  ;;  %v631_v16 = vsel %vm394_vm6, %v4123_v35, 0.0 }
 0x39d   :  { %3319 = vpow2.f32 %v845_v49  ;;  %v842_v17 = vsub.f32 %v4000_v2, %v839_v13  ;;  %v1063_v33 = vsub.f32 %v3996_v1, %v1060_v15  ;;  %632 = vadd.xlane.f32.xlu1 %v631_v16 }
 0x39e   :  { %3321 = vpow2.f32 %v1066_v47 }
 0x39f   :  { %v4129_v57 = vpop.eup %3313  ;;  %v847_v52 = vmul.f32 1.442695, %v842_v17  ;;  %v1068_v24 = vmul.f32 1.442695, %v1063_v33 }
 0x3a0   :  { %v1275_v22 = vpop.xlane.xlu0 %1274  ;;  %v1496_v39 = vpop.xlane.xlu1 %1495  ;;  %v634_v32 = vsel %vm394_vm6, %v4129_v57, 0.0 }
 0x3a1   :  { %3323 = vpow2.f32 %v847_v52  ;;  %v1282_v14 = vsub.f32 %v4018_v31, %v1275_v22  ;;  %635 = vadd.xlane.f32.xlu1 %v634_v32  ;;  %v1503_v1 = vsub.f32 %v4012_v26, %v1496_v39 }
 0x3a2   :  { %3325 = vpow2.f32 %v1068_v24 }
 0x3a3   :  { %v4134_v25 = vpop.eup %3315  ;;  %v1285_v2 = vmul.f32 1.442695, %v1282_v14  ;;  %v1506_v55 = vmul.f32 1.442695, %v1503_v1 }
 0x3a4   :  { %v4137_v42 = vpop.eup %3317  ;;  %v1278_v29 = vpop.xlane.xlu0 %1277  ;;  %v849_v21 = vsel %vm394_vm6, %v4134_v25, 0.0 }
 0x3a5   :  { %v1499_v46 = vpop.xlane.xlu1 %1498  ;;  %v1283_v27 = vsub.f32 %v4030_v20, %v1278_v29  ;;  %850 = vadd.xlane.f32.xlu0 %v849_v21  ;;  %v1070_v31 = vsel %vm394_vm6, %v4137_v42, 0.0  ;;  %3327 = vpow2.f32 %v1285_v2 }
 0x3a6   :  { %1071 = vadd.xlane.f32.xlu1 %v1070_v31  ;;  %v1504_v26 = vsub.f32 %v4026_v51, %v1499_v46 }
 0x3a7   :  { %v4144_v28 = vpop.eup %3319  ;;  %v1287_v56 = vmul.f32 1.442695, %v1283_v27 }
 0x3a8   :  { %v4147_v59 = vpop.eup %3321  ;;  %v1281_v60 = vpop.xlane.xlu0 %1280  ;;  %v852_v23 = vsel %vm394_vm6, %v4144_v28, 0.0  ;;  %v1508_v50 = vmul.f32 1.442695, %v1504_v26 }
 0x3a9   :  { %v1502_v61 = vpop.xlane.xlu1 %1501  ;;  %3329 = vpow2.f32 %v1287_v56  ;;  %853 = vadd.xlane.f32.xlu0 %v852_v23  ;;  %v1073_v20 = vsel %vm394_vm6, %v4147_v59, 0.0  ;;  %v1284_v40 = vsub.f32 %v4045_v37, %v1281_v60 }
 0x3aa   :  { %1074 = vadd.xlane.f32.xlu1 %v1073_v20  ;;  %3331 = vpow2.f32 %v1506_v55  ;;  %v1505_v16 = vsub.f32 %v4041_v0, %v1502_v61 }
 0x3ab   :  { %v4153_v36 = vpop.eup %3323  ;;  %3333 = vpow2.f32 %v1508_v50  ;;  %v1289_v15 = vmul.f32 1.442695, %v1284_v40 }
 0x3ac   :  { %v1717_v51 = vpop.xlane.xlu0 %1716  ;;  %v855_v49 = vsel %vm394_vm6, %v4153_v36, 0.0  ;;  %v4158_v47 = vpop.eup %3325 }
 0x3ad   :  { %v1938_v34 = vpop.xlane.xlu1 %1937  ;;  %v1724_v13 = vsub.f32 %v4056_v30, %v1717_v51  ;;  %856 = vadd.xlane.f32.xlu0 %v855_v49  ;;  %v1076_v37 = vsel %vm394_vm6, %v4158_v47, 0.0  ;;  %v1510_v30 = vmul.f32 1.442695, %v1505_v16 }
 0x3ae   :  { %v1945_v32 = vsub.f32 %v4060_v43, %v1938_v34 }
 0x3af   :  { %v1727_v17 = vmul.f32 1.442695, %v1724_v13  ;;  %v4164_v24 = vpop.eup %3327 }
 0x3b0   :  { %v1720_v33 = vpop.xlane.xlu0 %1719  ;;  %v1291_v1 = vsel %vm394_vm6, %v4164_v24, 0.0 }
 0x3b1   :  { %v1941_v52 = vpop.xlane.xlu1 %1940  ;;  %3335 = vpow2.f32 %v1727_v17  ;;  %1077 = vadd.xlane.f32.xlu0 %v1076_v37  ;;  %v1725_v21 = vsub.f32 %v4068_v44, %v1720_v33 }
 0x3b2   :  { %v1946_v22 = vsub.f32 %v4072_v45, %v1941_v52  ;;  %3337 = vpow2.f32 %v1289_v15  ;;  %v1948_v45 = vmul.f32 1.442695, %v1945_v32 }
 0x3b3   :  { %v4167_v39 = vpop.eup %3329  ;;  %v1729_v56 = vmul.f32 1.442695, %v1725_v21 }
 0x3b4   :  { %v1950_v14 = vmul.f32 1.442695, %v1946_v22  ;;  %v1723_v0 = vpop.xlane.xlu0 %1722  ;;  %v1294_v2 = vsel %vm394_vm6, %v4167_v39, 0.0  ;;  %v4174_v29 = vpop.eup %3331 }
 0x3b5   :  { %v1726_v46 = vsub.f32 %v4080_v48, %v1723_v0  ;;  %1295 = vadd.xlane.f32.xlu1 %v1294_v2  ;;  %1292 = vadd.xlane.f32.xlu0 %v1291_v1  ;;  %v1512_v27 = vsel %vm394_vm6, %v4174_v29, 0.0  ;;  %v4180_v31 = vpop.eup %3333  ;;  %v4216_v16 = vpop.permute.xlu1 %1310  ;;  %v3252_v0 = vunpack.i.h.bf16 %v3844_v5 }
 0x3b6   :  { %3339 = vpow2.f32 %v1950_v14  ;;  %v1515_v26 = vsel %vm394_vm6, %v4180_v31, 0.0 }
 0x3b7   :  { %3341 = vpow2.f32 %v1510_v30  ;;  %v1731_v43 = vmul.f32 1.442695, %v1726_v46 }
 0x3b8   :  { %v4218_v17 = vpop.permute.xlu0 %3288 }
 0x3b9   :  { %3343 = vpow2.f32 %v1731_v43  ;;  %1513 = vadd.xlane.f32.xlu0 %v1512_v27  ;;  %v4220_v33 = vpop.permute.xlu1 %1531 }
 0x3ba   :  { %3345 = vpow2.f32 %v1948_v45 }
 0x3bb   :  { %v4182_v55 = vpop.eup %3335  ;;  %3347 = vpow2.f32 %v1729_v56 }
 0x3bc   :  { %v1733_v48 = vsel %vm394_vm6, %v4182_v55, 0.0  ;;  %v4188_v60 = vpop.eup %3337 }
 0x3bd   :  { %1734 = vadd.xlane.f32.xlu1 %v1733_v48  ;;  %1516 = vadd.xlane.f32.xlu0 %v1515_v26  ;;  %v1297_v61 = vsel %vm394_vm6, %v4188_v60, 0.0  ;;  %v3257_v48 = vunpack.i.h.bf16 %v3849_v8 }
 0x3c0   :  { %v4190_v44 = vpop.eup %3339 }
 0x3c1   :  { %v4194_v23 = vpop.eup %3341  ;;  %1298 = vadd.xlane.f32.xlu0 %v1297_v61  ;;  %v1957_v20 = vsel %vm394_vm6, %v4190_v44, 0.0 }
 0x3c2   :  { %1958 = vadd.xlane.f32.xlu1 %v1957_v20  ;;  %v1518_v40 = vsel %vm394_vm6, %v4194_v23, 0.0 }
 0x3c3   :  { %v4198_v50 = vpop.eup %3343 }
 0x3c4   :  { %v1739_v51 = vsel %vm394_vm6, %v4198_v50, 0.0  ;;  %v4204_v34 = vpop.eup %3345 }
 0x3c5   :  { %1519 = vadd.xlane.f32.xlu0 %v1518_v40  ;;  %v1954_v49 = vsel %vm394_vm6, %v4204_v34, 0.0  ;;  %v4208_v13 = vpop.eup %3347 }
 0x3c6   :  { %1740 = vadd.xlane.f32.xlu1 %v1739_v51  ;;  %v1736_v15 = vsel %vm394_vm6, %v4208_v13, 0.0 }
 0x3c9   :  { %1955 = vadd.xlane.f32.xlu0 %v1954_v49 }
 0x3cd   :  { %1737 = vadd.xlane.f32.xlu0 %v1736_v15 }
 0x3d7   :  { %1752 = vrot.lane.b32.xlu1 %v3751_v41, %s3577_s26 }
 0x3db   :  { %1973 = vrot.lane.b32.xlu1 %v3751_v41, %s3578_s27  ;;  %v3251_v41 = vunpack.i.l.bf16 %v3844_v5 }
 0x3dd   :  { %v3176_v46 = vpack.c.bf16 %v3252_v0, %v3251_v41 }
 0x3e9   :  { %v415_v52 = vpop.xlane.xlu0 %414  ;;  %v1944_v37 = vpop.xlane.xlu1 %1943 }
 0x3ea   :  { %3349 = vrcp.f32 %v415_v52  ;;  %v1947_v22 = vsub.f32 %v4096_v11, %v1944_v37 }
 0x3ec   :  { %v1952_v30 = vmul.f32 1.442695, %v1947_v22  ;;  %v3262_v22 = vunpack.i.h.bf16 %v3854_v10 }
 0x3ed   :  { %v418_v32 = vpop.xlane.xlu0 %417 }
 0x3ee   :  { %3351 = vpow2.f32 %v1952_v30  ;;  %v3291_v30 = vunpack.i.h.bf16 %v4218_v17 }
 0x3ef   :  { %3353 = vrcp.f32 %v418_v32  ;;  %v3290_v32 = vunpack.i.l.bf16 %v4218_v17 }
 0x3f1   :  { %v421_v14 = vpop.xlane.xlu0 %420 }
 0x3f2   :  { %3355 = vrcp.f32 %v421_v14 }
 0x3f4   :  { %v3350_v2 = vpop.eup %3349 }
 0x3f5   :  { %v425_v1 = vmul.f32 %v3350_v2, %v4092_v53 }
 0x3f7   :  { %2986 = vmatmul.mubr.msk.f32.vlgmr.msra.gmra.mrb[6].mxu1 %vm394_vm6, %v425_v1 }
 0x3f8   :  { %v4227_v45 = vpop.eup %3351  ;;  %3177 = vmatpush3.bf16.msra.mxu1 %v3176_v46  ;;  %2988 = vmatprep.mubr.msk.f32.mxu1 %vm3555_vm0, %v3556_v6 }
 0x3f9   :  { %v3354_v11 = vpop.eup %3353  ;;  %3013 = vmatprep.subr.mxu1 %v3556_v6  ;;  %v1960_v21 = vsel %vm394_vm6, %v4227_v45, 0.0 }
 0x3fa   :  { %1961 = vadd.xlane.f32.xlu0 %v1960_v21  ;;  %v426_v5 = vmul.f32 %v3354_v11, %v4102_v63  ;;  %v4246_v63 = vpop.permute.xlu1 %3293 }
 0x3fc   :  { %v3356_v43 = vpop.eup %3355  ;;  %2989 = vmatmul.mubr.msk.f32.gmra.mrb[8].mxu1 %vm394_vm6, %v426_v5 }
 0x3fd   :  { %3014 = vmatpush3.msra.mxu1 %v3847_v7  ;;  %2991 = vmatprep.mubr.msk.f32.mxu1 %vm3555_vm0, %v3556_v6  ;;  %v427_v53 = vmul.f32 %v3356_v43, %v4106_v19  ;;  %v3256_v19 = vunpack.i.l.bf16 %v3849_v8 }
 0x3fe   :  { %3181 = vmatprep.subr.bf16.mxu1 %v3554_v3 }
 0x3ff   :  { %v3179_v40 = vpack.c.bf16 %v3257_v48, %v3256_v19 }
 0x400   :  { %2992 = vmatmul.mubr.msk.f32.gmra.mrb[10].mxu1 %vm394_vm6, %v427_v53  ;;  %v3295_v53 = vunpack.i.l.bf16 %v4246_v63 }
 0x401   :  { %3015 = vmatprep.mubr.msk.f32.mxu1 %vm3555_vm0, %v3556_v6 }
 0x410   :  { %3298 = vrot.lane.b32.xlu0 %v3744_v38, %s3578_s27 }
 0x426   :  { %v630_v27 = vpop.xlane.xlu1 %629 }
 0x427   :  { %3357 = vrcp.f32 %v630_v27 }
 0x42a   :  { %v633_v7 = vpop.xlane.xlu1 %632 }
 0x42b   :  { %3359 = vrcp.f32 %v633_v7 }
 0x42e   :  { %v636_v56 = vpop.xlane.xlu1 %635 }
 0x42f   :  { %3361 = vrcp.f32 %v636_v56 }
 0x431   :  { %v3358_v26 = vpop.eup %3357 }
 0x432   :  { %v640_v61 = vmul.f32 %v3358_v26, %v4117_v18  ;;  %v851_v20 = vpop.xlane.xlu0 %850 }
 0x433   :  { %3363 = vrcp.f32 %v851_v20  ;;  %v1072_v51 = vpop.xlane.xlu1 %1071 }
 0x434   :  { %3365 = vrcp.f32 %v1072_v51  ;;  %3001 = vmatmul.mubr.msk.f32.vlgmr.msra.gmra.mrb[12].mxu0 %vm394_vm6, %v640_v61 }
 0x435   :  { %v3360_v38 = vpop.eup %3359  ;;  %3180 = vmatpush3.bf16.msra.mxu0 %v3179_v40  ;;  %3003 = vmatprep.mubr.msk.f32.mxu0 %vm3555_vm0, %v3556_v6 }
 0x436   :  { %v854_v49 = vpop.xlane.xlu0 %853  ;;  %3028 = vmatprep.subr.mxu0 %v3556_v6  ;;  %v641_v8 = vmul.f32 %v3360_v38, %v4123_v35  ;;  %v3261_v35 = vunpack.i.l.bf16 %v3854_v10  ;;  %v3185_v10 = vpack.c.bf16 %v3291_v30, %v3290_v32 }
 0x437   :  { %3367 = vrcp.f32 %v854_v49  ;;  %v1075_v15 = vpop.xlane.xlu1 %1074 }
 0x438   :  { %3369 = vrcp.f32 %v1075_v15  ;;  %3004 = vmatmul.mubr.msk.f32.gmra.mrb[14].mxu0 %vm394_vm6, %v641_v8  ;;  %v3182_v41 = vpack.c.bf16 %v3262_v22, %v3261_v35 }
 0x439   :  { %v3362_v18 = vpop.eup %3361  ;;  %3029 = vmatpush3.msra.mxu0 %v3852_v9  ;;  %3006 = vmatprep.mubr.msk.f32.mxu0 %vm3555_vm0, %v3556_v6 }
 0x43a   :  { %v857_v52 = vpop.xlane.xlu0 %856  ;;  %v642_v37 = vmul.f32 %v3362_v18, %v4129_v57  ;;  %3184 = vmatprep.subr.bf16.mxu0 %v3554_v3 }
 0x43b   :  { %3371 = vrcp.f32 %v857_v52 }
 0x43c   :  { %3007 = vmatmul.mubr.msk.f32.gmra.mrb[16].mxu0 %vm394_vm6, %v642_v37 }
 0x43d   :  { %v3364_v9 = vpop.eup %3363  ;;  %3030 = vmatprep.mubr.msk.f32.mxu0 %vm3555_vm0, %v3556_v6 }
 0x43e   :  { %v3366_v14 = vpop.eup %3365  ;;  %v861_v57 = vmul.f32 %v3364_v9, %v4134_v25  ;;  %v1078_v0 = vpop.xlane.xlu0 %1077 }
 0x43f   :  { %v1082_v2 = vmul.f32 %v3366_v14, %v4137_v42  ;;  %3373 = vrcp.f32 %v1078_v0 }
 0x440   :  { %3016 = vmatmul.mubr.msk.f32.vlgmr.msra.gmra.mrb[12].mxu1 %vm394_vm6, %v861_v57 }
 0x441   :  { %v3368_v1 = vpop.eup %3367  ;;  %3031 = vmatmul.mubr.msk.f32.vlgmr.msra.gmra.mrb[18].mxu0 %vm394_vm6, %v1082_v2  ;;  %3183 = vmatpush3.bf16.msra.mxu1 %v3182_v41 }
 0x442   :  { %v3370_v17 = vpop.eup %3369  ;;  %3186 = vmatpush3.bf16.msra.mxu0 %v3185_v10  ;;  %v1293_v46 = vpop.xlane.xlu0 %1292  ;;  %3018 = vmatprep.mubr.msk.f32.mxu1 %vm3555_vm0, %v3556_v6  ;;  %v862_v25 = vmul.f32 %v3368_v1, %v4144_v28 }
 0x443   :  { %v1296_v11 = vpop.xlane.xlu1 %1295  ;;  %3375 = vrcp.f32 %v1293_v46  ;;  %3033 = vmatprep.mubr.msk.f32.mxu0 %vm3555_vm0, %v3556_v6  ;;  %3043 = vmatprep.subr.mxu1 %v3556_v6  ;;  %v1083_v42 = vmul.f32 %v3370_v17, %v4147_v59 }
 0x444   :  { %3058 = vmatprep.subr.mxu0 %v3556_v6  ;;  %3019 = vmatmul.mubr.msk.f32.gmra.mrb[14].mxu1 %vm394_vm6, %v862_v25  ;;  %3377 = vrcp.f32 %v1296_v11 }
 0x445   :  { %v3372_v21 = vpop.eup %3371  ;;  %3034 = vmatmul.mubr.msk.f32.gmra.mrb[20].mxu0 %vm394_vm6, %v1083_v42  ;;  %3044 = vmatpush3.msra.mxu1 %v4216_v16 }
 0x446   :  { %3059 = vmatpush3.msra.mxu0 %v4220_v33  ;;  %v1514_v28 = vpop.xlane.xlu0 %1513  ;;  %3021 = vmatprep.mubr.msk.f32.mxu1 %vm3555_vm0, %v3556_v6  ;;  %v863_v5 = vmul.f32 %v3372_v21, %v4153_v36  ;;  %v3296_v36 = vunpack.i.h.bf16 %v4246_v63 }
 0x447   :  { %3379 = vrcp.f32 %v1514_v28  ;;  %3036 = vmatprep.mubr.msk.f32.mxu0 %vm3555_vm0, %v3556_v6  ;;  %3187 = vmatprep.subr.bf16.mxu1 %v3554_v3 }
 0x448   :  { %3022 = vmatmul.mubr.msk.f32.gmra.mrb[16].mxu1 %vm394_vm6, %v863_v5  ;;  %3190 = vmatprep.subr.bf16.mxu0 %v3554_v3  ;;  %v3188_v19 = vpack.c.bf16 %v3296_v36, %v3295_v53 }
 0x449   :  { %v3374_v59 = vpop.eup %3373  ;;  %3045 = vmatprep.mubr.msk.f32.mxu1 %vm3555_vm0, %v3556_v6 }
 0x44a   :  { %v1517_v16 = vpop.xlane.xlu0 %1516  ;;  %v1735_v33 = vpop.xlane.xlu1 %1734  ;;  %v1084_v43 = vmul.f32 %v3374_v59, %v4158_v47 }
 0x44b   :  { %3381 = vrcp.f32 %v1517_v16 }
 0x44c   :  { %3037 = vmatmul.mubr.msk.f32.gmra.mrb[22].mxu0 %vm394_vm6, %v1084_v43 }
 0x44d   :  { %v3376_v27 = vpop.eup %3375  ;;  %3060 = vmatprep.mubr.msk.f32.mxu0 %vm3555_vm0, %v3556_v6 }
 0x44e   :  { %v1303_v7 = vmul.f32 %v3376_v27, %v4164_v24  ;;  %v1299_v56 = vpop.xlane.xlu0 %1298  ;;  %v3378_v48 = vpop.eup %3377 }
 0x44f   :  { %3383 = vrcp.f32 %v1299_v56  ;;  %v1959_v26 = vpop.xlane.xlu1 %1958  ;;  %v1304_v20 = vmul.f32 %v3378_v48, %v4167_v39 }
 0x450   :  { %3046 = vmatmul.mubr.msk.f32.vlgmr.msra.gmra.mrb[18].mxu1 %vm394_vm6, %v1303_v7  ;;  %3385 = vrcp.f32 %v1735_v33 }
 0x451   :  { %v3380_v47 = vpop.eup %3379  ;;  %3189 = vmatpush3.bf16.msra.mxu1 %v3188_v19  ;;  %3048 = vmatprep.mubr.msk.f32.mxu1 %vm3555_vm0, %v3556_v6 }
 0x452   :  { %v1524_v63 = vmul.f32 %v3380_v47, %v4174_v29  ;;  %v1520_v61 = vpop.xlane.xlu0 %1519  ;;  %3073 = vmatprep.subr.mxu1 %v3556_v6 }
 0x453   :  { %3387 = vrcp.f32 %v1520_v61  ;;  %v1741_v24 = vpop.xlane.xlu1 %1740 }
 0x454   :  { %3049 = vmatmul.mubr.msk.f32.gmra.mrb[20].mxu1 %vm394_vm6, %v1304_v20  ;;  %3061 = vmatmul.mubr.msk.f32.vlgmr.msra.gmra.mrb[24].mxu0 %vm394_vm6, %v1524_v63 }
 0x455   :  { %v3382_v40 = vpop.eup %3381  ;;  %3063 = vmatprep.mubr.msk.f32.mxu0 %vm3555_vm0, %v3556_v6  ;;  %3051 = vmatprep.mubr.msk.f32.mxu1 %vm3555_vm0, %v3556_v6 }
 0x456   :  { %v1956_v51 = vpop.xlane.xlu0 %1955  ;;  %v1525_v29 = vmul.f32 %v3382_v40, %v4180_v31 }
 0x457   :  { %v1753_v38 = vpop.permute.xlu1 %1752 }
 0x458   :  { %3074 = vmatpush3.msra.mxu1 %v1753_v38  ;;  %3064 = vmatmul.mubr.msk.f32.gmra.mrb[26].mxu0 %vm394_vm6, %v1525_v29 }
 0x459   :  { %v3384_v39 = vpop.eup %3383  ;;  %3066 = vmatprep.mubr.msk.f32.mxu0 %vm3555_vm0, %v3556_v6  ;;  %3193 = vmatprep.subr.bf16.mxu1 %v3554_v3 }
 0x45a   :  { %v1738_v49 = vpop.xlane.xlu0 %1737  ;;  %v1305_v8 = vmul.f32 %v3384_v39, %v4188_v60  ;;  %v3386_v15 = vpop.eup %3385 }
 0x45b   :  { %3389 = vrcp.f32 %v1738_v49  ;;  %v1745_v31 = vmul.f32 %v3386_v15, %v4182_v55 }
 0x45c   :  { %3052 = vmatmul.mubr.msk.f32.gmra.mrb[22].mxu1 %vm394_vm6, %v1305_v8  ;;  %3391 = vrcp.f32 %v1741_v24 }
 0x45d   :  { %v3388_v18 = vpop.eup %3387  ;;  %3075 = vmatprep.mubr.msk.f32.mxu1 %vm3555_vm0, %v3556_v6  ;;  %3393 = vrcp.f32 %v1956_v51 }
 0x45e   :  { %v1526_v52 = vmul.f32 %v3388_v18, %v4194_v23  ;;  %3395 = vrcp.f32 %v1959_v26 }
 0x460   :  { %3067 = vmatmul.mubr.msk.f32.gmra.mrb[28].mxu0 %vm394_vm6, %v1526_v52  ;;  %3076 = vmatmul.mubr.msk.f32.vlgmr.msra.gmra.mrb[24].mxu1 %vm394_vm6, %v1745_v31 }
 0x461   :  { %3078 = vmatprep.mubr.msk.f32.mxu1 %vm3555_vm0, %v3556_v6  ;;  %3090 = vmatprep.mubr.msk.f32.mxu0 %vm3555_vm0, %v3556_v6 }
 0x465   :  { %v3390_v60 = vpop.eup %3389 }
 0x466   :  { %v1746_v37 = vmul.f32 %v3390_v60, %v4208_v13  ;;  %v3392_v22 = vpop.eup %3391 }
 0x467   :  { %v1747_v55 = vmul.f32 %v3392_v22, %v4198_v50  ;;  %v3394_v9 = vpop.eup %3393  ;;  %v1974_v50 = vpop.permute.xlu1 %1973 }
 0x468   :  { %3079 = vmatmul.mubr.msk.f32.gmra.mrb[26].mxu1 %vm394_vm6, %v1746_v37  ;;  %v1966_v14 = vmul.f32 %v3394_v9, %v4204_v34  ;;  %v3396_v57 = vpop.eup %3395 }
 0x469   :  { %3081 = vmatprep.mubr.msk.f32.mxu1 %vm3555_vm0, %v3556_v6  ;;  %v1967_v0 = vmul.f32 %v3396_v57, %v4190_v44 }
 0x46c   :  { %3082 = vmatmul.mubr.msk.f32.gmra.mrb[28].mxu1 %vm394_vm6, %v1747_v55 }
 0x46d   :  { %3115 = vmatprep.mubr.msk.f32.mxu1 %vm3555_vm0, %v3556_v6 }
 0x487   :  { %v1962_v23 = vpop.xlane.xlu0 %1961 }
 0x488   :  { %3397 = vrcp.f32 %v1962_v23 }
 0x48b   :  { %v3299_v35 = vpop.permute.xlu0 %3298 }
 0x48c   :  { %v3301_v30 = vunpack.i.h.bf16 %v3299_v35  ;;  %v3300_v32 = vunpack.i.l.bf16 %v3299_v35 }
 0x48e   :  { %v3191_v13 = vpack.c.bf16 %v3301_v30, %v3300_v32 }
 0x490   :  { %3192 = vmatpush3.bf16.msra.mxu0 %v3191_v13 }
 0x491   :  { %3088 = vmatprep.subr.mxu0 %v3556_v6 }
 0x492   :  { %v3398_v41 = vpop.eup %3397 }
 0x493   :  { %v1968_v34 = vmul.f32 %v3398_v41, %v4227_v45 }
 0x494   :  { %3089 = vmatpush3.msra.mxu0 %v1974_v50 }
 0x495   :  { %3091 = vmatmul.mubr.msk.f32.vlgmr.msra.gmra.mrb[30].mxu0 %vm394_vm6, %v1966_v14  ;;  %3205 = vmatprep.subr.bf16.mxu0 %v3554_v3 }
 0x496   :  { %3093 = vmatprep.mubr.msk.f32.mxu0 %vm3555_vm0, %v3556_v6 }
 0x499   :  { %3094 = vmatmul.mubr.msk.f32.gmra.mrb[32].mxu0 %vm394_vm6, %v1967_v0 }
 0x49a   :  { %3096 = vmatprep.mubr.msk.f32.mxu0 %vm3555_vm0, %v3556_v6 }
 0x49d   :  { %3097 = vmatmul.mubr.msk.f32.gmra.mrb[34].mxu0 %vm394_vm6, %v1968_v34 }
 0x49e   :  { %3130 = vmatprep.mubr.msk.f32.mxu0 %vm3555_vm0, %v3556_v6 }
 0x4ca   :  { %v4353_v2 = vpop.f32.mrb[6].mxu1 }
 0x4cb   :  { %v2987_v10 = vpop.f32.mrb[7].mxu1 }
 0x4cf   :  { %v4355_v1 = vpop.f32.mrb[8].mxu1 }
 0x4d0   :  { %v2990_v17 = vpop.f32.mrb[9].mxu1 }
 0x4d3   :  { %v4357_v44 = vpop.f32.mrb[10].mxu1 }
 0x4d4   :  { %v2993_v46 = vpop.f32.mrb[11].mxu1 }
 0x507   :  { %v727_v11 = vpop.f32.mrb[12].mxu0 }
 0x508   :  { %v744_v25 = vmin.f32 %v727_v11, 0.0  ;;  %v3002_v42 = vpop.f32.mrb[13].mxu0  ;;  %vm741_vm13 = vcmp.gt.f32.partialorder %v727_v11, 0.0 }
 0x50a   :  { %v747_v21 = vmul.f32 1.442695, %v744_v25 }
 0x50b   :  { %v4359_v28 = vpop.f32.mrb[14].mxu0 }
 0x50c   :  { %3399 = vpow2.f32 %v747_v21  ;;  %v3005_v45 = vpop.f32.mrb[15].mxu0  ;;  %v745_v5 = vmin.f32 %v4359_v28, 0.0  ;;  %vm742_vm3 = vcmp.gt.f32.partialorder %v4359_v28, 0.0 }
 0x50e   :  { %v749_v36 = vmul.f32 1.442695, %v745_v5 }
 0x50f   :  { %v737_v59 = vpop.f32.mrb[16].mxu0 }
 0x510   :  { %v746_v16 = vmin.f32 %v737_v59, 0.0  ;;  %v3008_v33 = vpop.f32.mrb[17].mxu0  ;;  %vm743_vm14 = vcmp.gt.f32.partialorder %v737_v59, 0.0 }
 0x512   :  { %v751_v43 = vmul.f32 1.442695, %v746_v16 }
 0x513   :  { %v948_v53 = vpop.f32.mrb[12].mxu1 }
 0x514   :  { %3401 = vpow2.f32 %v751_v43  ;;  %v965_v27 = vmin.f32 %v948_v53, 0.0  ;;  %v4362_v7 = vpop.f32.mrb[18].mxu0  ;;  %v3017_v56 = vpop.f32.mrb[13].mxu1  ;;  %vm962_vm15 = vcmp.gt.f32.partialorder %v948_v53, 0.0 }
 0x515   :  { %v3032_v48 = vpop.f32.mrb[19].mxu0  ;;  %3403 = vpow2.f32 %v749_v36  ;;  %v1186_v63 = vmin.f32 %v4362_v7, 0.0  ;;  %vm1183_vm10 = vcmp.gt.f32.partialorder %v4362_v7, 0.0 }
 0x516   :  { %v3400_v19 = vpop.eup %3399  ;;  %v968_v26 = vmul.f32 1.442695, %v965_v27 }
 0x517   :  { %v2768_v47 = vadd.f32 -1.0, %v3400_v19  ;;  %v4365_v61 = vpop.f32.mrb[14].mxu1  ;;  %v1189_v39 = vmul.f32 1.442695, %v1186_v63 }
 0x518   :  { %3405 = vpow2.f32 %v968_v26  ;;  %v966_v20 = vmin.f32 %v4365_v61, 0.0  ;;  %v4368_v24 = vpop.f32.mrb[20].mxu0  ;;  %v3020_v40 = vpop.f32.mrb[15].mxu1  ;;  %vm963_vm5 = vcmp.gt.f32.partialorder %v4365_v61, 0.0 }
 0x519   :  { %v3035_v51 = vpop.f32.mrb[21].mxu0  ;;  %v756_v29 = vsel %vm741_vm13, %v727_v11, %v2768_v47  ;;  %v1187_v8 = vmin.f32 %v4368_v24, 0.0  ;;  %vm1184_vm11 = vcmp.gt.f32.partialorder %v4368_v24, 0.0 }
 0x51a   :  { %v970_v38 = vmul.f32 1.442695, %v966_v20  ;;  %2088 = vrot.lane.b32.xlu1 %v756_v29, %s3579_s28 }
 0x51b   :  { %v958_v49 = vpop.f32.mrb[16].mxu1  ;;  %v1191_v22 = vmul.f32 1.442695, %v1187_v8 }
 0x51c   :  { %3407 = vpow2.f32 %v970_v38  ;;  %v967_v15 = vmin.f32 %v958_v49, 0.0  ;;  %v3023_v18 = vpop.f32.mrb[17].mxu1  ;;  %vm964_vm8 = vcmp.gt.f32.partialorder %v958_v49, 0.0 }
 0x51d   :  { %3409 = vpow2.f32 %v1189_v39 }
 0x51e   :  { %v3402_v31 = vpop.eup %3401  ;;  %v972_v52 = vmul.f32 1.442695, %v967_v15 }
 0x51f   :  { %v2770_v60 = vadd.f32 -1.0, %v3402_v31  ;;  %v4372_v37 = vpop.f32.mrb[22].mxu0  ;;  %v3404_v35 = vpop.eup %3403 }
 0x520   :  { %3411 = vpow2.f32 %v972_v52  ;;  %v1188_v55 = vmin.f32 %v4372_v37, 0.0  ;;  %v3038_v23 = vpop.f32.mrb[23].mxu0  ;;  %v2769_v0 = vadd.f32 -1.0, %v3404_v35  ;;  %vm1185_vm13 = vcmp.gt.f32.partialorder %v4372_v37, 0.0 }
 0x521   :  { %v758_v30 = vsel %vm743_vm14, %v737_v59, %v2770_v60  ;;  %3413 = vpow2.f32 %v1191_v22 }
 0x522   :  { %v3406_v32 = vpop.eup %3405  ;;  %2092 = vrot.lane.b32.xlu0 %v758_v30, %s3579_s28  ;;  %v1193_v9 = vmul.f32 1.442695, %v1188_v55  ;;  %v757_v59 = vsel %vm742_vm3, %v4359_v28, %v2769_v0 }
 0x523   :  { %v2774_v13 = vadd.f32 -1.0, %v3406_v32  ;;  %v1390_v14 = vpop.f32.mrb[18].mxu1 }
 0x524   :  { %v1407_v50 = vmin.f32 %v1390_v14, 0.0  ;;  %v3047_v57 = vpop.f32.mrb[19].mxu1  ;;  %3415 = vpow2.f32 %v1193_v9  ;;  %vm1404_vm12 = vcmp.gt.f32.partialorder %v1390_v14, 0.0 }
 0x525   :  { %v977_v41 = vsel %vm962_vm15, %v948_v53, %v2774_v13 }
 0x526   :  { %v3408_v34 = vpop.eup %3407  ;;  %v1410_v10 = vmul.f32 1.442695, %v1407_v50  ;;  %2100 = vrot.lane.b32.xlu1 %v977_v41, %s3580_s29 }
 0x527   :  { %v4377_v17 = vpop.f32.mrb[20].mxu1  ;;  %v4379_v46 = vpop.f32.mrb[24].mxu0  ;;  %v2775_v45 = vadd.f32 -1.0, %v3408_v34 }
 0x528   :  { %3417 = vpow2.f32 %v1410_v10  ;;  %v1408_v11 = vmin.f32 %v4377_v17, 0.0  ;;  %v3050_v25 = vpop.f32.mrb[21].mxu1  ;;  %v3062_v42 = vpop.f32.mrb[25].mxu0  ;;  %v1628_v5 = vmin.f32 %v4379_v46, 0.0  ;;  %vm1405_vm14 = vcmp.gt.f32.partialorder %v4377_v17, 0.0 }
 0x529   :  { %v3410_v21 = vpop.eup %3409  ;;  %v978_v19 = vsel %vm963_vm5, %v4365_v61, %v2775_v45  ;;  %vm1625_vm15 = vcmp.gt.f32.partialorder %v4379_v46, 0.0  ;;  %v2195_v42 = vld [vmem:[%s4601_s6] sm:$0xff] }
 0x52a   :  { %v3412_v16 = vpop.eup %3411  ;;  %v1412_v33 = vmul.f32 1.442695, %v1408_v11  ;;  %2090 = vrot.lane.b32.xlu1 %v757_v59, %s3579_s28  ;;  %v1631_v36 = vmul.f32 1.442695, %v1628_v5  ;;  %v2780_v48 = vadd.f32 -1.0, %v3410_v21  ;;  %v2197_v21 = vld [vmem:[%s4601_s6 + $0x10] sm:$0xff] }
 0x52b   :  { %v2776_v43 = vadd.f32 -1.0, %v3412_v16  ;;  %v1616_v53 = vpop.f32.mrb[26].mxu0  ;;  %v3414_v47 = vpop.eup %3413  ;;  %v2198_v5 = vld [vmem:[%s4601_s6 + $0x18] sm:$0xff] }
 0x52c   :  { %3419 = vpow2.f32 %v1412_v33  ;;  %v1629_v27 = vmin.f32 %v1616_v53, 0.0  ;;  %v3065_v56 = vpop.f32.mrb[27].mxu0  ;;  %v2781_v51 = vadd.f32 -1.0, %v3414_v47  ;;  %v1198_v29 = vsel %vm1183_vm10, %v4362_v7, %v2780_v48  ;;  %v2199_v33 = vld [vmem:[%s4601_s6 + $0x20] sm:$0xff]  ;;  %v2201_v48 = vld [vmem:[%s4601_s6 + $0x30] sm:$0xff] }
 0x52d   :  { %3421 = vpow2.f32 %v1631_v36  ;;  %v979_v26 = vsel %vm964_vm8, %v958_v49, %v2776_v43  ;;  %vm1626_vm3 = vcmp.gt.f32.partialorder %v1616_v53, 0.0  ;;  %v3197_v16 = vpack.c.bf16 %v2198_v5, %v2197_v21  ;;  %v2200_v43 = vld [vmem:[%s4601_s6 + $0x28] sm:$0xff] }
 0x52e   :  { %v1633_v28 = vmul.f32 1.442695, %v1629_v27  ;;  %2102 = vrot.lane.b32.xlu1 %v978_v19, %s3580_s29  ;;  %2104 = vrot.lane.b32.xlu0 %v979_v26, %s3580_s29  ;;  %v3416_v40 = vpop.eup %3415  ;;  %v1199_v60 = vsel %vm1184_vm11, %v4368_v24, %v2781_v51  ;;  %v3200_v56 = vpack.c.bf16 %v2200_v43, %v2199_v33  ;;  %v2202_v19 = vld [vmem:[%s4601_s6 + $0x38] sm:$0xff]  ;;  %v521_v5 = vmin.f32 %v4355_v1, 0.0 }
 0x52f   :  { %v4390_v63 = vpop.f32.mrb[22].mxu1  ;;  %v2782_v18 = vadd.f32 -1.0, %v3416_v40 }
 0x530   :  { %3423 = vpow2.f32 %v1633_v28  ;;  %v3053_v20 = vpop.f32.mrb[23].mxu1  ;;  %v3203_v28 = vpack.c.bf16 %v2202_v19, %v2201_v48  ;;  %v1409_v40 = vmin.f32 %v4390_v63, 0.0 }
 0x531   :  { %v1200_v24 = vsel %vm1185_vm13, %v4372_v37, %v2782_v18 }
 0x532   :  { %v3418_v38 = vpop.eup %3417  ;;  %2112 = vrot.lane.b32.xlu1 %v1198_v29, %s3581_s30  ;;  %v1414_v51 = vmul.f32 1.442695, %v1409_v40 }
 0x533   :  { %v2786_v61 = vadd.f32 -1.0, %v3418_v38  ;;  %v4394_v39 = vpop.f32.mrb[28].mxu0  ;;  %v1832_v49 = vpop.f32.mrb[24].mxu1 }
 0x534   :  { %v3068_v8 = vpop.f32.mrb[29].mxu0  ;;  %v3077_v15 = vpop.f32.mrb[25].mxu1  ;;  %v1849_v31 = vmin.f32 %v1832_v49, 0.0  ;;  %v1630_v23 = vmin.f32 %v4394_v39, 0.0  ;;  %vm1846_vm5 = vcmp.gt.f32.partialorder %v1832_v49, 0.0  ;;  %vm1627_vm10 = vcmp.gt.f32.partialorder %v4394_v39, 0.0 }
 0x535   :  { %v1419_v52 = vsel %vm1404_vm12, %v1390_v14, %v2786_v61  ;;  %vm1406_vm12 = vcmp.gt.f32.partialorder %v4390_v63, 0.0 }
 0x536   :  { %v3420_v22 = vpop.eup %3419  ;;  %2124 = vrot.lane.b32.xlu0 %v1419_v52, %s3582_s4  ;;  %2114 = vrot.lane.b32.xlu1 %v1199_v60, %s3581_s30  ;;  %v1852_v35 = vmul.f32 1.442695, %v1849_v31  ;;  %v1635_v14 = vmul.f32 1.442695, %v1630_v23 }
 0x537   :  { %v3422_v7 = vpop.eup %3421  ;;  %v2787_v55 = vadd.f32 -1.0, %v3420_v22 }
 0x538   :  { %v2792_v30 = vadd.f32 -1.0, %v3422_v7  ;;  %3425 = vpow2.f32 %v1852_v35 }
 0x539   :  { %v1420_v32 = vsel %vm1405_vm14, %v4377_v17, %v2787_v55  ;;  %3427 = vpow2.f32 %v1635_v14 }
 0x53a   :  { %v3424_v13 = vpop.eup %3423  ;;  %2126 = vrot.lane.b32.xlu1 %v1420_v32, %s3582_s4  ;;  %2116 = vrot.lane.b32.xlu0 %v1200_v24, %s3581_s30  ;;  %v1640_v41 = vsel %vm1625_vm15, %v4379_v46, %v2792_v30  ;;  %v2196_v46 = vld [vmem:[%s4601_s6 + $0x8] sm:$0xff]  ;;  %s3585_s6 = smov 56  }
 0x53b   :  { %v2793_v9 = vadd.f32 -1.0, %v3424_v13  ;;  %v1837_v50 = vpop.f32.mrb[26].mxu1  ;;  %v3194_v45 = vpack.c.bf16 %v2196_v46, %v2195_v42 }
 0x53c   :  { %v1850_v57 = vmin.f32 %v1837_v50, 0.0  ;;  %v3080_v0 = vpop.f32.mrb[27].mxu1  ;;  %vm1847_vm8 = vcmp.gt.f32.partialorder %v1837_v50, 0.0 }
 0x53d   :  { %v1641_v34 = vsel %vm1626_vm3, %v1616_v53, %v2793_v9  ;;  %3195 = vmatpush3.bf16.msra.mxu1 %v3194_v45  ;;  %vm2169_vm3 = vcmask 64512  }
 0x53e   :  { %v1854_v10 = vmul.f32 1.442695, %v1850_v57  ;;  %2136 = vrot.lane.b32.xlu0 %v1640_v41, %s3583_s11  ;;  %2138 = vrot.lane.b32.xlu1 %v1641_v34, %s3583_s11 }
 0x53f   :  { %v4409_v37 = vpop.f32.mrb[28].mxu1  ;;  %3196 = vmatprep.subr.bf16.mxu1 %v3554_v3 }
 0x540   :  { %3429 = vpow2.f32 %v1854_v10  ;;  %v3083_v17 = vpop.f32.mrb[29].mxu1  ;;  %v1851_v29 = vmin.f32 %v4409_v37, 0.0  ;;  %vm1848_vm14 = vcmp.gt.f32.partialorder %v4409_v37, 0.0 }
 0x541   :  { %3198 = vmatpush3.bf16.msra.mxu1 %v3197_v16  ;;  %3431 = vpow2.f32 %v1414_v51 }
 0x542   :  { %v3426_v11 = vpop.eup %3425  ;;  %3199 = vmatprep.subr.bf16.mxu1 %v3554_v3  ;;  %v1856_v15 = vmul.f32 1.442695, %v1851_v29 }
 0x543   :  { %v2798_v25 = vadd.f32 -1.0, %v3426_v11  ;;  %v3428_v36 = vpop.eup %3427 }
 0x544   :  { %v2794_v26 = vadd.f32 -1.0, %v3428_v36 }
 0x545   :  { %v1861_v59 = vsel %vm1846_vm5, %v1832_v49, %v2798_v25  ;;  %3201 = vmatpush3.bf16.msra.mxu1 %v3200_v56  ;;  %vm517_vm5 = vcmp.gt.f32.partialorder %v4353_v2, 0.0 }
 0x546   :  { %2148 = vrot.lane.b32.xlu0 %v1861_v59, %s3584_s19  ;;  %3202 = vmatprep.subr.bf16.mxu1 %v3554_v3  ;;  %v1642_v20 = vsel %vm1627_vm10, %v4394_v39, %v2794_v26  ;;  %v522_v59 = vmin.f32 %v4357_v44, 0.0  ;;  %vm2183_vm10 = vcmask 326656  }
 0x548   :  { %v527_v43 = vmul.f32 1.442695, %v522_v59 }
 0x549   :  { %3204 = vmatpush3.bf16.msra.mxu1 %v3203_v28 }
 0x54a   :  { %v3430_v53 = vpop.eup %3429 }
 0x54b   :  { %v2799_v27 = vadd.f32 -1.0, %v3430_v53  ;;  %v3432_v55 = vpop.eup %3431 }
 0x54c   :  { %v2788_v32 = vadd.f32 -1.0, %v3432_v55 }
 0x54d   :  { %v1862_v47 = vsel %vm1847_vm8, %v1837_v50, %v2799_v27  ;;  %vm2173_vm8 = vcmask 130048  }
 0x54e   :  { %2150 = vrot.lane.b32.xlu1 %v1862_v47, %s3584_s19  ;;  %v1421_v50 = vsel %vm1406_vm12, %v4390_v63, %v2788_v32  ;;  %v520_v63 = vmin.f32 %v4353_v2, 0.0  ;;  %vm2187_vm12 = vcmask 392192  }
 0x550   :  { %v523_v45 = vmul.f32 1.442695, %v520_v63 }
 0x552   :  { %2140 = vrot.lane.b32.xlu1 %v1642_v20, %s3583_s11 }
 0x568   :  { %v2053_v38 = vpop.f32.mrb[30].mxu0 }
 0x569   :  { %v2070_v61 = vmin.f32 %v2053_v38, 0.0  ;;  %v3092_v49 = vpop.f32.mrb[31].mxu0  ;;  %vm2067_vm11 = vcmp.gt.f32.partialorder %v2053_v38, 0.0 }
 0x56b   :  { %v2073_v8 = vmul.f32 1.442695, %v2070_v61 }
 0x56c   :  { %v2058_v18 = vpop.f32.mrb[32].mxu0 }
 0x56d   :  { %3433 = vpow2.f32 %v2073_v8  ;;  %v2071_v31 = vmin.f32 %v2058_v18, 0.0  ;;  %v3095_v3 = vpop.f32.mrb[33].mxu0  ;;  %vm2068_vm13 = vcmp.gt.f32.partialorder %v2058_v18, 0.0 }
 0x56e   :  { %3435 = vpow2.f32 %v1856_v15 }
 0x56f   :  { %v2075_v52 = vmul.f32 1.442695, %v2071_v31 }
 0x570   :  { %v2063_v39 = vpop.f32.mrb[34].mxu0 }
 0x571   :  { %3437 = vpow2.f32 %v2075_v52  ;;  %v2072_v60 = vmin.f32 %v2063_v39, 0.0  ;;  %v3098_v22 = vpop.f32.mrb[35].mxu0  ;;  %vm2069_vm15 = vcmp.gt.f32.partialorder %v2063_v39, 0.0 }
 0x573   :  { %v2077_v7 = vmul.f32 1.442695, %v2072_v60 }
 0x575   :  { %3439 = vpow2.f32 %v2077_v7 }
 0x576   :  { %3441 = vpow2.f32 %v523_v45 }
 0x577   :  { %v3434_v23 = vpop.eup %3433 }
 0x578   :  { %v2804_v35 = vadd.f32 -1.0, %v3434_v23  ;;  %v3436_v30 = vpop.eup %3435 }
 0x579   :  { %v2800_v14 = vadd.f32 -1.0, %v3436_v30 }
 0x57a   :  { %v2082_v24 = vsel %vm2067_vm11, %v2053_v38, %v2804_v35  ;;  %vm518_vm11 = vcmp.gt.f32.partialorder %v4355_v1, 0.0 }
 0x57b   :  { %v3438_v13 = vpop.eup %3437  ;;  %2160 = vrot.lane.b32.xlu0 %v2082_v24, %s3585_s6  ;;  %v1863_v34 = vsel %vm1848_vm14, %v4409_v37, %v2800_v14  ;;  %v525_v37 = vmul.f32 1.442695, %v521_v5  ;;  %vm519_vm14 = vcmp.gt.f32.partialorder %v4357_v44, 0.0  ;;  %v2810_v5 = vld [vmem:[%s4602_s7] ss:$0 sm:$0xff] }
 0x57c   :  { %v2805_v9 = vadd.f32 -1.0, %v3438_v13 }
 0x57d   :  { %3443 = vpow2.f32 %v525_v37 }
 0x57e   :  { %v2083_v57 = vsel %vm2068_vm13, %v2058_v18, %v2805_v9  ;;  %3445 = vpow2.f32 %v527_v43  ;;  %vm2191_vm13 = vcmask 457728  }
 0x57f   :  { %v3440_v0 = vpop.eup %3439  ;;  %2128 = vrot.lane.b32.xlu0 %v1421_v50, %s3582_s4  ;;  %2162 = vrot.lane.b32.xlu1 %v2083_v57, %s3585_s6 }
 0x580   :  { %v2806_v41 = vadd.f32 -1.0, %v3440_v0  ;;  %v3442_v56 = vpop.eup %3441 }
 0x581   :  { %v2762_v48 = vadd.f32 -1.0, %v3442_v56 }
 0x582   :  { %v2084_v10 = vsel %vm2069_vm15, %v2063_v39, %v2806_v41 }
 0x583   :  { %2152 = vrot.lane.b32.xlu0 %v1863_v34, %s3584_s19  ;;  %2164 = vrot.lane.b32.xlu1 %v2084_v10, %s3585_s6  ;;  %v532_v20 = vsel %vm517_vm5, %v4353_v2, %v2762_v48  ;;  %v2811_v10 = vld [vmem:[%s4603_s8] ss:$0 sm:$0xff] }
 0x587   :  { %v3444_v26 = vpop.eup %3443 }
 0x588   :  { %v3446_v28 = vpop.eup %3445  ;;  %v2763_v40 = vadd.f32 -1.0, %v3444_v26 }
 0x589   :  { %v2764_v49 = vadd.f32 -1.0, %v3446_v28 }
 0x58a   :  { %v533_v15 = vsel %vm518_vm11, %v4355_v1, %v2763_v40 }
 0x58b   :  { %v534_v22 = vsel %vm519_vm14, %v4357_v44, %v2764_v49 }
 0x58c   :  { %v2089_v17 = vpop.permute.xlu1 %2088 }
 0x58d   :  { %v2170_v29 = vsel %vm2169_vm3, %v532_v20, %v2089_v17 }
 0x594   :  { %v2093_v46 = vpop.permute.xlu0 %2092 }
 0x595   :  { %v2172_v55 = vsel %vm2169_vm3, %v534_v22, %v2093_v46 }
 0x598   :  { %v2101_v11 = vpop.permute.xlu1 %2100 }
 0x599   :  { %v2174_v38 = vsel %vm2173_vm8, %v2170_v29, %v2101_v11 }
 0x59c   :  { %v2091_v25 = vpop.permute.xlu1 %2090 }
 0x59d   :  { %v2171_v2 = vsel %vm2169_vm3, %v533_v15, %v2091_v25 }
 0x5a0   :  { %v2103_v42 = vpop.permute.xlu1 %2102  ;;  %v2105_v16 = vpop.permute.xlu0 %2104 }
 0x5a1   :  { %v2175_v3 = vsel %vm2173_vm8, %v2171_v2, %v2103_v42  ;;  %v2176_v35 = vsel %vm2173_vm8, %v2172_v55, %v2105_v16 }
 0x5a4   :  { %v2113_v21 = vpop.permute.xlu1 %2112 }
 0x5a5   :  { %v2177_v8 = vsel %vm394_vm6, %v2174_v38, %v2113_v21 }
 0x5a8   :  { %v2115_v33 = vpop.permute.xlu1 %2114  ;;  %v2125_v36 = vpop.permute.xlu0 %2124 }
 0x5a9   :  { %v2180_v18 = vsel %vm52_vm1, %v2177_v8, %v2125_v36  ;;  %v2178_v7 = vsel %vm394_vm6, %v2175_v3, %v2115_v33 }
 0x5ac   :  { %v2127_v53 = vpop.permute.xlu1 %2126  ;;  %v2117_v27 = vpop.permute.xlu0 %2116 }
 0x5ad   :  { %v2181_v23 = vsel %vm52_vm1, %v2178_v7, %v2127_v53  ;;  %v2179_v32 = vsel %vm394_vm6, %v2176_v35, %v2117_v27 }
 0x5b0   :  { %v2139_v19 = vpop.permute.xlu1 %2138  ;;  %v2137_v47 = vpop.permute.xlu0 %2136 }
 0x5b1   :  { %v2184_v31 = vsel %vm2183_vm10, %v2180_v18, %v2137_v47  ;;  %v2185_v30 = vsel %vm2183_vm10, %v2181_v23, %v2139_v19 }
 0x5b8   :  { %v2149_v61 = vpop.permute.xlu0 %2148 }
 0x5b9   :  { %v2188_v52 = vsel %vm2187_vm12, %v2184_v31, %v2149_v61 }
 0x5c0   :  { %v2151_v51 = vpop.permute.xlu1 %2150 }
 0x5c1   :  { %v2189_v44 = vsel %vm2187_vm12, %v2185_v30, %v2151_v51 }
 0x5c4   :  { %v2141_v39 = vpop.permute.xlu1 %2140 }
 0x5ed   :  { %v2161_v60 = vpop.permute.xlu0 %2160 }
 0x5ee   :  { %v2192_v1 = vsel %vm2191_vm13, %v2188_v52, %v2161_v60 }
 0x5ef   :  { %3116 = vmatmul.mubr.msk.f32.vlgmr.msra.gmra.mrb[30].mxu1 %vm150_vm2, %v2192_v1 }
 0x5f0   :  { %3118 = vmatprep.mubr.msk.f32.mxu1 %vm3555_vm0, %v3556_v6 }
 0x5f1   :  { %v2129_v24 = vpop.permute.xlu0 %2128  ;;  %v2163_v13 = vpop.permute.xlu1 %2162 }
 0x5f2   :  { %v2182_v9 = vsel %vm52_vm1, %v2179_v32, %v2129_v24  ;;  %v2193_v14 = vsel %vm2191_vm13, %v2189_v44, %v2163_v13 }
 0x5f3   :  { %3119 = vmatmul.mubr.msk.f32.gmra.mrb[32].mxu1 %vm150_vm2, %v2193_v14  ;;  %v2186_v50 = vsel %vm2183_vm10, %v2182_v9, %v2141_v39 }
 0x5f4   :  { %3121 = vmatprep.mubr.msk.f32.mxu1 %vm3555_vm0, %v3556_v6 }
 0x5f5   :  { %v2153_v57 = vpop.permute.xlu0 %2152  ;;  %v2165_v0 = vpop.permute.xlu1 %2164 }
 0x5f6   :  { %v2190_v41 = vsel %vm2187_vm12, %v2186_v50, %v2153_v57 }
 0x5f7   :  { %v2194_v34 = vsel %vm2191_vm13, %v2190_v41, %v2165_v0 }
 0x5f8   :  { %3122 = vmatmul.mubr.msk.f32.gmra.mrb[34].mxu1 %vm150_vm2, %v2194_v34 }
 0x6c2   :  { %v2278_v17 = vpop.f32.mrb[30].mxu1 }
 0x6c3   :  { %v2318_v11 = vmul.f32 %v2811_v10, %v2278_v17  ;;  %v3117_v25 = vpop.f32.mrb[31].mxu1  ;;  %v2299_v53 = vmul.f32 %v2810_v5, %v2278_v17 }
 0x6c5   :  { %v2321_v42 = vsel %vm52_vm1, %v2318_v11, 0.0  ;;  %v2302_v48 = vsel %vm52_vm1, %v2299_v53, 0.0 }
 0x6c6   :  { %2322 = vadd.xlane.f32.xlu0 %v2321_v42  ;;  %v2283_v63 = vpop.f32.mrb[32].mxu1 }
 0x6c7   :  { %v2319_v46 = vmul.f32 %v2811_v10, %v2283_v63  ;;  %v3206_v21 = vpack.c.bf16 %v2283_v63, %v2278_v17  ;;  %v3120_v45 = vpop.f32.mrb[33].mxu1  ;;  %v2300_v59 = vmul.f32 %v2810_v5, %v2283_v63 }
 0x6c9   :  { %3207 = vmatpush3.bf16.msra.mxu0 %v3206_v21  ;;  %v2324_v16 = vsel %vm52_vm1, %v2319_v46, 0.0  ;;  %v2305_v36 = vsel %vm52_vm1, %v2300_v59, 0.0 }
 0x6ca   :  { %2325 = vadd.xlane.f32.xlu1 %v2324_v16  ;;  %3128 = vmatprep.subr.mxu0 %v3556_v6 }
 0x6cb   :  { %v2288_v37 = vpop.f32.mrb[34].mxu1 }
 0x6cc   :  { %v2320_v33 = vmul.f32 %v2811_v10, %v2288_v37  ;;  %v3123_v43 = vpop.f32.mrb[35].mxu1  ;;  %v2301_v56 = vmul.f32 %v2810_v5, %v2288_v37 }
 0x6cd   :  { %3129 = vmatpush3.msra.mxu0 %v2288_v37 }
 0x6ce   :  { %2306 = vadd.xlane.f32.xlu1 %v2305_v36  ;;  %v2327_v27 = vsel %vm52_vm1, %v2320_v33, 0.0  ;;  %v2308_v19 = vsel %vm52_vm1, %v2301_v56, 0.0 }
 0x6cf   :  { %2328 = vadd.xlane.f32.xlu0 %v2327_v27 }
 0x6d3   :  { %2303 = vadd.xlane.f32.xlu0 %v2302_v48 }
 0x6d7   :  { %2309 = vadd.xlane.f32.xlu0 %v2308_v19 }
 0x753   :  { %v2323_v26 = vpop.xlane.xlu0 %2322 }
 0x754   :  { %2330 = vxpose.xlu1.b32.start [1/3] (short) (narrow) %v2323_v26, 8 }
 0x757   :  { %v2326_v47 = vpop.xlane.xlu1 %2325 }
 0x758   :  { %2331 = vxpose.xlu1.b32.cont [2/3] (short) (narrow) %v2326_v47, 8 }
 0x75b   :  { %v2307_v20 = vpop.xlane.xlu1 %2306 }
 0x75c   :  { %v2329_v28 = vpop.xlane.xlu0 %2328 }
 0x75d   :  { %2332 = vxpose.xlu1.b32.end [3/3] (short) (narrow) %v2329_v28, 8 }
 0x760   :  { %v2304_v40 = vpop.xlane.xlu0 %2303 }
 0x764   :  { %v2310_v38 = vpop.xlane.xlu0 %2309 }
 0x7d5   :  { %v2346_v51 = vpop.trf.xlu1 }
 0x7d6   :  { %v2365_v29 = vrot.slane %v2346_v51, %v3888_v54 }
 0x7d8   :  { %v2366_v61 = vadd.f32 %v2365_v29, %v2304_v40  ;;  %v2367_v49 = vadd.f32 %v2365_v29, %v2307_v20  ;;  %v2368_v8 = vadd.f32 %v2365_v29, %v2310_v38 }
 0x7da   :  { %vm2369_vm2 = vcmp.gt.f32.partialorder %v2366_v61, 0.0  ;;  %v2372_v15 = vmul.f32 0.2, %v2366_v61  ;;  %vm2370_vm15 = vcmp.gt.f32.partialorder %v2367_v49, 0.0  ;;  %v2373_v18 = vmul.f32 0.2, %v2367_v49 }
 0x7db   :  { %v2374_v3 = vmul.f32 0.2, %v2368_v8  ;;  %vm2371_vm3 = vcmp.gt.f32.partialorder %v2368_v8, 0.0 }
 0x7dc   :  { %v2375_v2 = vsel %vm2369_vm2, %v2366_v61, %v2372_v15  ;;  %v2376_v31 = vsel %vm2370_vm15, %v2367_v49, %v2373_v18 }
 0x7dd   :  { %v2378_v52 = vsel %vm3894_vm4, %v2375_v2, -9e+15  ;;  %v2379_v54 = vsel %vm3904_vm7, %v2376_v31, -9e+15  ;;  %v2377_v60 = vsel %vm2371_vm3, %v2368_v8, %v2374_v3 }
 0x7de   :  { %v2381_v39 = vsel %vm394_vm6, %v2378_v52, -inf  ;;  %v2384_v22 = vsel %vm394_vm6, %v2379_v54, -inf  ;;  %v2380_v7 = vsel %vm3915_vm9, %v2377_v60, -9e+15 }
 0x7df   :  { %2382 = vmax.xlane.f32.xlu0 %v2381_v39  ;;  %v2387_v1 = vsel %vm394_vm6, %v2380_v7, -inf }
 0x7e3   :  { %2385 = vmax.xlane.f32.xlu0 %v2384_v22 }
 0x7e7   :  { %2388 = vmax.xlane.f32.xlu0 %v2387_v1 }
 0x86c   :  { %v2383_v55 = vpop.xlane.xlu0 %2382 }
 0x86d   :  { %v2390_v62 = vsub.f32 %v2378_v52, %v2383_v55  ;;  %v3503_v55 = vld [vmem:[%s4596_s1] sm:$0xff] }
 0x86f   :  { %v2393_v23 = vmul.f32 1.442695, %v2390_v62  ;;  %v2592_v62 = vmul.f32 %v3503_v55, %v3503_v55 }
 0x870   :  { %v2386_v35 = vpop.xlane.xlu0 %2385 }
 0x871   :  { %3447 = vpow2.f32 %v2393_v23  ;;  %v2391_v30 = vsub.f32 %v2379_v54, %v2386_v35  ;;  %v2594_v23 = vsel %vm52_vm1, %v2592_v62, 0.0  ;;  %v3504_v35 = vld [vmem:[%s4596_s1 + $0x8] sm:$0xff] }
 0x873   :  { %v2395_v32 = vmul.f32 1.442695, %v2391_v30  ;;  %v2593_v30 = vmul.f32 %v3504_v35, %v3504_v35 }
 0x874   :  { %v2389_v44 = vpop.xlane.xlu0 %2388 }
 0x875   :  { %3449 = vpow2.f32 %v2395_v32  ;;  %v2392_v12 = vsub.f32 %v2380_v7, %v2389_v44  ;;  %v2597_v32 = vsel %vm52_vm1, %v2593_v30, 0.0 }
 0x877   :  { %v2397_v24 = vmul.f32 1.442695, %v2392_v12 }
 0x879   :  { %3451 = vpow2.f32 %v2397_v24 }
 0x87b   :  { %v3448_v13 = vpop.eup %3447 }
 0x87c   :  { %v2399_v9 = vsel %vm394_vm6, %v3448_v13, 0.0 }
 0x87d   :  { %2400 = vadd.xlane.f32.xlu0 %v2399_v9 }
 0x87f   :  { %v3450_v4 = vpop.eup %3449 }
 0x880   :  { %v2402_v14 = vsel %vm394_vm6, %v3450_v4, 0.0 }
 0x881   :  { %2403 = vadd.xlane.f32.xlu0 %v2402_v14 }
 0x883   :  { %v3452_v50 = vpop.eup %3451 }
 0x884   :  { %v2405_v57 = vsel %vm394_vm6, %v3452_v50, 0.0 }
 0x885   :  { %2406 = vadd.xlane.f32.xlu0 %v2405_v57 }
 0x90a   :  { %v2401_v0 = vpop.xlane.xlu0 %2400 }
 0x90b   :  { %3453 = vrcp.f32 %v2401_v0 }
 0x90e   :  { %v2404_v41 = vpop.xlane.xlu0 %2403 }
 0x90f   :  { %3455 = vrcp.f32 %v2404_v41 }
 0x912   :  { %v2407_v34 = vpop.xlane.xlu0 %2406 }
 0x913   :  { %3457 = vrcp.f32 %v2407_v34  ;;  %v2561_v34 = vld [vmem:[%s4597_s2 + $0x8] sm:$0xff] }
 0x915   :  { %v3454_v10 = vpop.eup %3453 }
 0x916   :  { %v2411_v17 = vmul.f32 %v3454_v10, %v3448_v13 }
 0x918   :  { %3131 = vmatmul.mubr.msk.f32.vlgmr.msra.gmra.mrb[36].mxu0 %vm394_vm6, %v2411_v17 }
 0x919   :  { %v3456_v11 = vpop.eup %3455  ;;  %3133 = vmatprep.mubr.msk.f32.mxu0 %vm3555_vm0, %v3556_v6 }
 0x91a   :  { %v2412_v25 = vmul.f32 %v3456_v11, %v3450_v4  ;;  %v2560_v4 = vld [vmem:[%s4597_s2] sm:$0xff] }
 0x91b   :  { %v2570_v41 = vmul.f32 %v2560_v4, %v2560_v4 }
 0x91c   :  { %3134 = vmatmul.mubr.msk.f32.gmra.mrb[38].mxu0 %vm394_vm6, %v2412_v25 }
 0x91d   :  { %v3458_v42 = vpop.eup %3457  ;;  %3136 = vmatprep.mubr.msk.f32.mxu0 %vm3555_vm0, %v3556_v6 }
 0x91e   :  { %v2413_v63 = vmul.f32 %v3458_v42, %v3452_v50  ;;  %v2572_v42 = vsel %vm52_vm1, %v2570_v41, 0.0 }
 0x920   :  { %3137 = vmatmul.mubr.msk.f32.gmra.mrb[40].mxu0 %vm394_vm6, %v2413_v63 }
 0x9eb   :  { %v2489_v46 = vpop.f32.mrb[36].mxu0 }
 0x9ec   :  { %v3132_v21 = vpop.f32.mrb[37].mxu0  ;;  %v2506_v45 = vmin.f32 %v2489_v46, 0.0  ;;  %vm2503_vm6 = vcmp.gt.f32.partialorder %v2489_v46, 0.0 }
 0x9ee   :  { %v2509_v37 = vmul.f32 1.442695, %v2506_v45 }
 0x9ef   :  { %v2494_v5 = vpop.f32.mrb[38].mxu0 }
 0x9f0   :  { %v2507_v59 = vmin.f32 %v2494_v5, 0.0  ;;  %v3135_v16 = vpop.f32.mrb[39].mxu0  ;;  %vm2504_vm0 = vcmp.gt.f32.partialorder %v2494_v5, 0.0 }
 0x9f1   :  { %v3505_v16 = vld [vmem:[%s4595_s0] sm:$0xff]  ;;  %s3586_s0 = smov [#allocation2]  }
 0x9f2   :  { %v2511_v33 = vmul.f32 1.442695, %v2507_v59  ;;  %s2725_s16 = sshll.u32 %s3586_s0, 4  ;;  %s2726_s16 = int_to_ptr.vmem [resolvable:$true] %s2725_s16 }
 0x9f3   :  { %v2499_v43 = vpop.f32.mrb[40].mxu0  ;;  %s3506_s17 = scalar_lea.vmem %s2726_s16, 384  ;;  %p3511_p1 = scmp.lt.s32.totalorder %s2726_s16, %s2726_s16 }
 0x9f4   :  { %3459 = vpow2.f32 %v2511_v33  ;;  %v2508_v36 = vmin.f32 %v2499_v43, 0.0  ;;  %v3138_v53 = vpop.f32.mrb[41].mxu0  ;;  %vm2505_vm4 = vcmp.gt.f32.partialorder %v2499_v43, 0.0  ;;  %p3507_p0 = scmp.ne.s32.totalorder %s2726_s16, %s3506_s17  ;;  %p3512_p2 = scmp.lt.s32.totalorder %s3506_s17, %s3506_s17 }
 0x9f5   :  { %3461 = vpow2.f32 %v2509_v37  ;;  %v2691_v37 = vmul.f32 %v3505_v16, %v3505_v16 }
 0x9f6   :  { %v2513_v27 = vmul.f32 1.442695, %v2508_v36  ;;  %v2562_v36 = vmul.f32 %v3503_v55, %v2560_v4  ;;  %p3513_p3 = por %p3512_p2, %p3511_p1 }
 0x9f8   :  { %3463 = vpow2.f32 %v2513_v27  ;;  %v2564_v53 = vsel %vm52_vm1, %v2562_v36, 0.0  ;;  %v2563_v27 = vmul.f32 %v3504_v35, %v2561_v34  ;;  %p3514_p4 = pnand %p3513_p3, %p3507_p0 }
 0x9fe   :  { %v3460_v56 = vpop.eup %3459 }
 0x9ff   :  { %v2816_v6 = vadd.f32 -1.0, %v3460_v56  ;;  %v3462_v48 = vpop.eup %3461  ;;  %v2567_v56 = vsel %vm52_vm1, %v2563_v27, 0.0 }
 0xa00   :  { %v2815_v20 = vadd.f32 -1.0, %v3462_v48 }
 0xa01   :  { %v2519_v19 = vsel %vm2504_vm0, %v2494_v5, %v2816_v6 }
 0xa02   :  { %v3464_v26 = vpop.eup %3463  ;;  %v2524_v47 = vsel %vm52_vm1, %v2519_v19, -inf  ;;  %v2518_v29 = vsel %vm2503_vm6, %v2489_v46, %v2815_v20  ;;  %v2571_v46 = vmul.f32 %v2561_v34, %v2561_v34 }
 0xa03   :  { %2525 = vmax.xlane.f32.xlu0 %v2524_v47  ;;  %v2817_v28 = vadd.f32 -1.0, %v3464_v26  ;;  %v2521_v38 = vsel %vm52_vm1, %v2518_v29, -inf }
 0xa04   :  { %v2575_v5 = vsel %vm52_vm1, %v2571_v46, 0.0 }
 0xa05   :  { %v2520_v40 = vsel %vm2505_vm4, %v2499_v43, %v2817_v28  ;;  %v2692_v43 = vsel %vm52_vm1, %v2691_v37, 0.0 }
 0xa06   :  { %v2527_v51 = vsel %vm52_vm1, %v2520_v40, -inf }
 0xa07   :  { %2528 = vmax.xlane.f32.xlu0 %v2527_v51 }
 0xa0b   :  { %2522 = vmax.xlane.f32.xlu0 %v2521_v38 }
 0xa90   :  { %v2526_v61 = vpop.xlane.xlu0 %2525 }
 0xa91   :  { %v2531_v49 = vsub.f32 %v2519_v19, %v2526_v61 }
 0xa93   :  { %v2535_v8 = vmul.f32 1.442695, %v2531_v49 }
 0xa94   :  { %v2529_v15 = vpop.xlane.xlu0 %2528 }
 0xa95   :  { %3465 = vpow2.f32 %v2535_v8  ;;  %v2532_v18 = vsub.f32 %v2520_v40, %v2529_v15 }
 0xa97   :  { %v2537_v2 = vmul.f32 1.442695, %v2532_v18 }
 0xa98   :  { %v2523_v31 = vpop.xlane.xlu0 %2522 }
 0xa99   :  { %3467 = vpow2.f32 %v2537_v2  ;;  %v2530_v3 = vsub.f32 %v2518_v29, %v2523_v31 }
 0xa9b   :  { %v2533_v52 = vmul.f32 1.442695, %v2530_v3 }
 0xa9d   :  { %3469 = vpow2.f32 %v2533_v52 }
 0xa9f   :  { %v3466_v39 = vpop.eup %3465 }
 0xaa0   :  { %v2542_v54 = vsel %vm52_vm1, %v3466_v39, 0.0 }
 0xaa1   :  { %2543 = vadd.xlane.f32.xlu0 %v2542_v54 }
 0xaa3   :  { %v3468_v60 = vpop.eup %3467 }
 0xaa4   :  { %v2545_v22 = vsel %vm52_vm1, %v3468_v60, 0.0 }
 0xaa5   :  { %2546 = vadd.xlane.f32.xlu0 %v2545_v22 }
 0xaa7   :  { %v3470_v7 = vpop.eup %3469 }
 0xaa8   :  { %v2539_v1 = vsel %vm52_vm1, %v3470_v7, 0.0 }
 0xaa9   :  { %2540 = vadd.xlane.f32.xlu0 %v2539_v1 }
 0xaad   :  { %2595 = vadd.xlane.f32.xlu0 %v2594_v23 }
 0xab1   :  { %2598 = vadd.xlane.f32.xlu0 %v2597_v32 }
 0xb2e   :  { %v2544_v44 = vpop.xlane.xlu0 %2543 }
 0xb2f   :  { %3471 = vlog2.f32 %v2544_v44 }
 0xb32   :  { %v2547_v12 = vpop.xlane.xlu0 %2546 }
 0xb33   :  { %3473 = vlog2.f32 %v2547_v12 }
 0xb36   :  { %v2541_v24 = vpop.xlane.xlu0 %2540 }
 0xb37   :  { %3475 = vlog2.f32 %v2541_v24 }
 0xb39   :  { %v3472_v13 = vpop.eup %3471 }
 0xb3a   :  { %v2551_v9 = vmul.f32 0.6931472, %v3472_v13 }
 0xb3c   :  { %v2555_v14 = vsub.f32 %v2531_v49, %v2551_v9 }
 0xb3d   :  { %v3474_v50 = vpop.eup %3473 }
 0xb3e   :  { %2558 = vst.msk [vmem:[#allocation2 + $0x8] sm:$0xff] %vm52_vm1, %v2555_v14  ;;  %v2553_v57 = vmul.f32 0.6931472, %v3474_v50  ;;  %v2638_v0 = vmul.f32 %v2555_v14, %v2555_v14  ;;  %v2630_v6 = vmul.f32 %v3503_v55, %v2555_v14 }
 0xb40   :  { %v2556_v10 = vsub.f32 %v2532_v18, %v2553_v57  ;;  %v2640_v17 = vsel %vm52_vm1, %v2638_v0, 0.0  ;;  %v2632_v48 = vsel %vm52_vm1, %v2630_v6, 0.0 }
 0xb41   :  { %v3476_v11 = vpop.eup %3475  ;;  %2641 = vadd.xlane.f32.xlu0 %v2640_v17 }
 0xb42   :  { %2559 = vst.msk [vmem:[#allocation2 + $0x10] sm:$0xff] %vm52_vm1, %v2556_v10  ;;  %v2549_v25 = vmul.f32 0.6931472, %v3476_v11  ;;  %v2639_v63 = vmul.f32 %v2556_v10, %v2556_v10  ;;  %v2631_v19 = vmul.f32 %v3504_v35, %v2556_v10 }
 0xb44   :  { %v2554_v21 = vsub.f32 %v2530_v3, %v2549_v25  ;;  %v2643_v45 = vsel %vm52_vm1, %v2639_v63, 0.0  ;;  %v2635_v26 = vsel %vm52_vm1, %v2631_v19, 0.0 }
 0xb45   :  { %2573 = vadd.xlane.f32.xlu0 %v2572_v42  ;;  %2644 = vadd.xlane.f32.xlu1 %v2643_v45 }
 0xb46   :  { %2557 = vst.msk [vmem:[#allocation2] sm:$0xff] %vm52_vm1, %v2554_v21  ;;  %v2680_v59 = vmul.f32 %v2554_v21, %v2554_v21  ;;  %v2676_v47 = vmul.f32 %v3505_v16, %v2554_v21 }
 0xb48   :  { %v2681_v33 = vsel %vm52_vm1, %v2680_v59, 0.0  ;;  %v2677_v28 = vsel %vm52_vm1, %v2676_v47, 0.0 }
 0xb49   :  { %2576 = vadd.xlane.f32.xlu0 %v2575_v5 }
 0xb4d   :  { %2682 = vadd.xlane.f32.xlu0 %v2681_v33 }
 0xb51   :  { %2693 = vadd.xlane.f32.xlu0 %v2692_v43 }
 0xb55   :  { %2565 = vadd.xlane.f32.xlu0 %v2564_v53 }
 0xb59   :  { %2568 = vadd.xlane.f32.xlu0 %v2567_v56 }
 0xb5d   :  { %2633 = vadd.xlane.f32.xlu0 %v2632_v48 }
 0xb61   :  { %2636 = vadd.xlane.f32.xlu0 %v2635_v26 }
 0xb65   :  { %2678 = vadd.xlane.f32.xlu0 %v2677_v28 }
 0xb66   :  { %3517 = shalt.err (!%p3514_p4)
}
 0xb67   :  { %s3518_s20 = scalar_lea.hbm %s4604_s9, 384 }
 0xb68   :  { %p3519_p5 = scmp.ne.s32.totalorder %s4604_s9, %s3518_s20  ;;  %p3522_p6 = scmp.lt.u32.totalorder %s3518_s20, %s4604_s9 }
 0xb6a   :  { %p3524_p7 = pnand %p3522_p6, %p3519_p5 }
 0xb6c   :  { %3527 = shalt.err (!%p3524_p7)
}
 0xb6d   :  { %s3587_s3 = smov 128   ;;  %v2596_v20 = vpop.xlane.xlu0 %2595 }
 0xb6e   :  { %2731 = dma.vmem_to_hbm [thread:$0]  %s2726_s16, 384, %s4604_s9, [#allocation3], %s3587_s3, %s3587_s3, %s3579_s28   ;;  %3477 = vrsqrt.f32 %v2596_v20  ;;  %vm2602_vm1 = vcmp.eq.f32.partialorder %v2596_v20, inf  ;;  %v2605_v2 = vand.u32 2147483648, %v2596_v20  ;;  %vm2604_vm7 = vcmp.eq.f32.partialorder %v2596_v20, 0.0 }
 0xb6f   :  { %s3588_s9 = smov [#allocation4]  }
 0xb70   :  { %s2738_s28 = sshll.u32 %s3588_s9, 4  ;;  %s2739_s28 = int_to_ptr.vmem [resolvable:$true] %s2738_s28 }
 0xb71   :  { %v2599_v40 = vpop.xlane.xlu0 %2598  ;;  %s3528_s6 = scalar_lea.vmem %s2739_s28, 16  ;;  %s3532_s27 = scalar_lea.vmem %s2739_s28, 32 }
 0xb72   :  { %3479 = vrsqrt.f32 %v2599_v40  ;;  %vm2609_vm9 = vcmp.eq.f32.partialorder %v2599_v40, inf  ;;  %vm2611_vm10 = vcmp.eq.f32.partialorder %v2599_v40, 0.0  ;;  %v2612_v7 = vand.u32 2147483648, %v2599_v40  ;;  %p3529_p8 = scmp.ne.s32.totalorder %s2739_s28, %s3528_s6  ;;  %p3533_p9 = scmp.lt.s32.totalorder %s2739_s28, %s2739_s28 }
 0xb73   :  { %p3534_p10 = scmp.lt.s32.totalorder %s3532_s27, %s3528_s6 }
 0xb75   :  { %p3535_p11 = por %p3534_p10, %p3533_p9 }
 0xb77   :  { %p3536_p12 = pnand %p3535_p11, %p3529_p8 }
 0xb78   :  { %v3478_v61 = vpop.eup %3477 }
 0xb79   :  { %v2601_v49 = vmul.f32 %v3478_v61, %v2596_v20 }
 0xb7b   :  { %v2603_v31 = vsel %vm2602_vm1, %v2596_v20, %v2601_v49  ;;  %vm2715_vm1 = vcmp.eq.s32.totalorder %v3891_v58, 2 }
 0xb7c   :  { %v3480_v15 = vpop.eup %3479  ;;  %v2606_v1 = vsel %vm2604_vm7, %v2605_v2, %v2603_v31  ;;  %vm2714_vm7 = vcmp.eq.s32.totalorder %v3891_v58, 1 }
 0xb7d   :  { %v2608_v3 = vmul.f32 %v3480_v15, %v2599_v40 }
 0xb7f   :  { %v2610_v23 = vsel %vm2609_vm9, %v2599_v40, %v2608_v3  ;;  %vm2713_vm9 = vcmp.eq.s32.totalorder %v3891_v58, 0 }
 0xb80   :  { %v2613_v14 = vsel %vm2611_vm10, %v2612_v7, %v2610_v23 }
 0xbce   :  { %v2642_v51 = vpop.xlane.xlu0 %2641 }
 0xbcf   :  { %3481 = vrsqrt.f32 %v2642_v51  ;;  %vm2648_vm5 = vcmp.eq.f32.partialorder %v2642_v51, inf  ;;  %v2651_v54 = vand.u32 2147483648, %v2642_v51  ;;  %vm2650_vm8 = vcmp.eq.f32.partialorder %v2642_v51, 0.0 }
 0xbd2   :  { %v2645_v29 = vpop.xlane.xlu1 %2644  ;;  %v2574_v38 = vpop.xlane.xlu0 %2573 }
 0xbd3   :  { %3483 = vrsqrt.f32 %v2645_v29  ;;  %vm2655_vm11 = vcmp.eq.f32.partialorder %v2645_v29, inf  ;;  %vm2657_vm12 = vcmp.eq.f32.partialorder %v2645_v29, 0.0  ;;  %v2658_v44 = vand.u32 2147483648, %v2645_v29 }
 0xbd4   :  { %3485 = vrsqrt.f32 %v2574_v38  ;;  %vm2580_vm13 = vcmp.eq.f32.partialorder %v2574_v38, inf  ;;  %v2583_v13 = vand.u32 2147483648, %v2574_v38  ;;  %vm2582_vm14 = vcmp.eq.f32.partialorder %v2574_v38, 0.0 }
 0xbd6   :  { %v2577_v8 = vpop.xlane.xlu0 %2576 }
 0xbd7   :  { %3487 = vrsqrt.f32 %v2577_v8  ;;  %vm2587_vm2 = vcmp.eq.f32.partialorder %v2577_v8, inf  ;;  %v2590_v17 = vand.u32 2147483648, %v2577_v8  ;;  %vm2589_vm15 = vcmp.eq.f32.partialorder %v2577_v8, 0.0 }
 0xbd9   :  { %v3482_v18 = vpop.eup %3481 }
 0xbda   :  { %v2647_v52 = vmul.f32 %v3482_v18, %v2642_v51  ;;  %v4571_v39 = vpop.xlane.xlu0 %2682 }
 0xbdb   :  { %3489 = vrsqrt.f32 %v4571_v39  ;;  %vm2686_vm3 = vcmp.eq.f32.partialorder %v4571_v39, inf  ;;  %v2689_v53 = vand.u32 2147483648, %v4571_v39  ;;  %vm2688_vm4 = vcmp.eq.f32.partialorder %v4571_v39, 0.0 }
 0xbdc   :  { %v2649_v60 = vsel %vm2648_vm5, %v2642_v51, %v2647_v52 }
 0xbdd   :  { %v3484_v22 = vpop.eup %3483  ;;  %v2652_v55 = vsel %vm2650_vm8, %v2651_v54, %v2649_v60 }
 0xbde   :  { %v3486_v62 = vpop.eup %3485  ;;  %v2654_v35 = vmul.f32 %v3484_v22, %v2645_v29  ;;  %v2694_v30 = vpop.xlane.xlu0 %2693  ;;  %v2660_v32 = vmul.f32 %v2652_v55, %v2606_v1 }
 0xbdf   :  { %v2579_v12 = vmul.f32 %v3486_v62, %v2574_v38  ;;  %3491 = vrsqrt.f32 %v2694_v30  ;;  %vm2697_vm0 = vcmp.eq.f32.partialorder %v2694_v30, inf  ;;  %v2700_v27 = vand.u32 2147483648, %v2694_v30 }
 0xbe0   :  { %v2656_v24 = vsel %vm2655_vm11, %v2645_v29, %v2654_v35  ;;  %v2662_v9 = vmax.f32 %v2660_v32, 1e-08  ;;  %vm2699_vm6 = vcmp.eq.f32.partialorder %v2694_v30, 0.0 }
 0xbe1   :  { %v3488_v4 = vpop.eup %3487  ;;  %v2659_v50 = vsel %vm2657_vm12, %v2658_v44, %v2656_v24  ;;  %v2581_v57 = vsel %vm2580_vm13, %v2574_v38, %v2579_v12 }
 0xbe2   :  { %v2661_v0 = vmul.f32 %v2659_v50, %v2613_v14  ;;  %v2586_v41 = vmul.f32 %v3488_v4, %v2577_v8  ;;  %v2584_v34 = vsel %vm2582_vm14, %v2583_v13, %v2581_v57  ;;  %v2566_v10 = vpop.xlane.xlu0 %2565  ;;  %3493 = vrcp.f32 %v2662_v9 }
 0xbe3   :  { %v2614_v11 = vmul.f32 %v2606_v1, %v2584_v34 }
 0xbe4   :  { %v2588_v25 = vsel %vm2587_vm2, %v2577_v8, %v2586_v41  ;;  %v2663_v42 = vmax.f32 %v2661_v0, 1e-08 }
 0xbe5   :  { %v3490_v63 = vpop.eup %3489  ;;  %v2616_v46 = vmax.f32 %v2614_v11, 1e-08  ;;  %v2591_v21 = vsel %vm2589_vm15, %v2590_v17, %v2588_v25 }
 0xbe6   :  { %v2685_v45 = vmul.f32 %v3490_v63, %v4571_v39  ;;  %v2615_v5 = vmul.f32 %v2613_v14, %v2591_v21  ;;  %v2569_v59 = vpop.xlane.xlu0 %2568  ;;  %3495 = vrcp.f32 %v2663_v42 }
 0xbe7   :  { %3497 = vrcp.f32 %v2616_v46 }
 0xbe8   :  { %v2617_v16 = vmax.f32 %v2615_v5, 1e-08  ;;  %v2687_v33 = vsel %vm2686_vm3, %v4571_v39, %v2685_v45 }
 0xbe9   :  { %v3492_v37 = vpop.eup %3491  ;;  %v2690_v6 = vsel %vm2688_vm4, %v2689_v53, %v2687_v33 }
 0xbea   :  { %v2696_v43 = vmul.f32 %v3492_v37, %v2694_v30  ;;  %3499 = vrcp.f32 %v2617_v16  ;;  %v2634_v36 = vpop.xlane.xlu0 %2633 }
 0xbec   :  { %v2698_v56 = vsel %vm2697_vm0, %v2694_v30, %v2696_v43  ;;  %v3494_v19 = vpop.eup %3493 }
 0xbed   :  { %v2701_v48 = vsel %vm2699_vm6, %v2700_v27, %v2698_v56  ;;  %v2665_v40 = vmul.f32 %v3494_v19, %v2634_v36 }
 0xbee   :  { %v2702_v26 = vmul.f32 %v2701_v48, %v2690_v6  ;;  %v2637_v28 = vpop.xlane.xlu0 %2636 }
 0xbf0   :  { %v3496_v47 = vpop.eup %3495  ;;  %v2703_v20 = vmax.f32 %v2702_v26, 1e-08 }
 0xbf1   :  { %v2667_v51 = vmul.f32 %v3496_v47, %v2637_v28  ;;  %v3498_v29 = vpop.eup %3497 }
 0xbf2   :  { %3501 = vrcp.f32 %v2703_v20  ;;  %v2619_v49 = vmul.f32 %v3498_v29, %v2566_v10  ;;  %v2679_v54 = vpop.xlane.xlu0 %2678 }
 0xbf3   :  { %v2668_v38 = vadd.f32 %v2667_v51, %v2665_v40 }
 0xbf4   :  { %v3500_v61 = vpop.eup %3499 }
 0xbf5   :  { %v2621_v8 = vmul.f32 %v3500_v61, %v2569_v59  ;;  %v2669_v15 = vrot.slane %v2668_v38, 4 }
 0xbf7   :  { %v2622_v18 = vadd.f32 %v2621_v8, %v2619_v49  ;;  %v2670_v2 = vadd.f32 %v2669_v15, %v2668_v38 }
 0xbf9   :  { %v2623_v31 = vrot.slane %v2622_v18, 4  ;;  %v2671_v39 = vrot.slane %v2670_v2, 2 }
 0xbfb   :  { %v2624_v3 = vadd.f32 %v2623_v31, %v2622_v18  ;;  %v2672_v1 = vadd.f32 %v2671_v39, %v2670_v2 }
 0xbfc   :  { %v3502_v52 = vpop.eup %3501 }
 0xbfd   :  { %v2625_v60 = vrot.slane %v2624_v3, 2  ;;  %v2705_v22 = vmul.f32 %v3502_v52, %v2679_v54  ;;  %v2673_v35 = vrot.slane %v2672_v1, 1 }
 0xbff   :  { %v2706_v7 = vrot.slane %v2705_v22, 4  ;;  %v2626_v55 = vadd.f32 %v2625_v60, %v2624_v3  ;;  %v2674_v12 = vadd.f32 %v2673_v35, %v2672_v1 }
 0xc01   :  { %v2707_v62 = vadd.f32 %v2706_v7, %v2705_v22  ;;  %v2627_v30 = vrot.slane %v2626_v55, 1  ;;  %v2675_v4 = vmul.f32 0.0625, %v2674_v12 }
 0xc03   :  { %v2708_v23 = vrot.slane %v2707_v62, 2  ;;  %v2628_v13 = vadd.f32 %v2627_v30, %v2626_v55 }
 0xc05   :  { %v2709_v32 = vadd.f32 %v2708_v23, %v2707_v62  ;;  %v2629_v14 = vmul.f32 0.0625, %v2628_v13 }
 0xc07   :  { %v2710_v44 = vrot.slane %v2709_v32, 1 }
 0xc09   :  { %v2711_v24 = vadd.f32 %v2710_v44, %v2709_v32 }
 0xc0b   :  { %v2712_v9 = vmul.f32 0.125, %v2711_v24 }
 0xc0d   :  { %v2716_v50 = vsel %vm2715_vm1, %v2712_v9, 0.0 }
 0xc0e   :  { %v2717_v57 = vsel %vm2714_vm7, %v2675_v4, %v2716_v50 }
 0xc0f   :  { %v2718_v0 = vsel %vm2713_vm9, %v2629_v14, %v2717_v57 }
 0xc10   :  { %2719 = vst [vmem:[#allocation4] sm:$0x1] %v2718_v0 }
 0xc11   :  { %3539 = shalt.err (!%p3536_p12)
}
 0xc12   :  { %s3540_s4 = scalar_lea.hbm %s4605_s10, 16 }
 0xc13   :  { %p3541_p13 = scmp.ne.s32.totalorder %s4605_s10, %s3540_s4  ;;  %p3544_p0 = scmp.lt.u32.totalorder %s3540_s4, %s4605_s10 }
 0xc15   :  { %p3546_p1 = pnand %p3544_p0, %p3541_p13 }
 0xc17   :  { %3549 = shalt.err (!%p3546_p1)
}
 0xc18   :  { %2741 = dma.vmem_to_hbm [thread:$0]  %s2739_s28, 16, %s4605_s10, [#allocation5]  }
 0xc19   :  { %3550 = dma.done.wait [#allocation3], 384  }
 0xc1a   :  { %3551 = vsyncadd [#allocation3], 4294966912 }
 0xc1b   :  { %3552 = dma.done.wait [#allocation5], 16  }
 0xc1c   :  { %3553 = vsyncadd [#allocation5], 4294967280 }
 0xc1d   :  { %2748 = vsyncpa [#allocation3], 1 }
 0xc1e   :  { %2749 = vsyncpa [#allocation5], 1 }

</bundles_post_ra>
